<compile_context>
chip_gen: v6e
topology: v6e:2x2x1
jax: 0.10.0
libtpu: 0.0.40
codegen_flags: <defaults>
</compile_context>

<pallas_src>
import functools

import jax
import jax.numpy as jnp
from jax.experimental import pallas as pl
from jax.experimental.pallas import tpu as pltpu

SINKHORN_EPS = 0.05
SINKHORN_ITERS = 3
CLUSTER_ITERS = 3


def _l2norm(x, axis):
    # L2 normalize along `axis` (rsqrt goes to the EUP slot).
    return x * jax.lax.rsqrt(jnp.sum(x * x, axis=axis, keepdims=True) + 1e-12)


def _vmem_limit_bytes():
    # Generation-aware scoped-VMEM limit: half of physical capacity, clamped
    # to [32 MiB, 96 MiB]  (v5e/v6e: 128 MiB -> 64 MiB; v7x: 64 MiB -> 32 MiB).
    cap = 64 * 1024 * 1024  # conservative fallback if the query fails
    try:
        cap = int(pltpu.get_tpu_info().vmem_capacity_bytes)
    except Exception:
        pass
    return max(32 * 1024 * 1024, min(cap // 2, 96 * 1024 * 1024))


def _clusternet_kernel(x_ref, wenc_ref, benc_ref, wdec_ref, bdec_ref, proto_ref,
                       xbar_ref, logits_ref, idx_ref,
                       *, b_blk, hw, hw_pad, n_clusters, cin):
    # Block shapes:
    #   x_ref:     (cin, b_blk*hw_pad)        proto_ref: (b_blk, K, nz)
    #   xbar_ref:  (cin, b_blk*hw_pad)        logits_ref: (K, b_blk*hw_pad)
    #   idx_ref:   (1,   b_blk*hw_pad)
    # ----------------------------------------------------------------- AE ---
    x = x_ref[...]                                            # (cin, L)
    wenc = wenc_ref[...]                                      # (nz, cin)
    # Encoder 1x1 conv: contraction dim cin (=4) is far too small for the MXU;
    # unroll it into cin broadcast-FMA VPU passes (frees the vex slot).
    z = wenc[:, 0:1] * x[0:1, :] + benc_ref[...]              # (nz, L)
    for c in range(1, cin):
        z = z + wenc[:, c:c + 1] * x[c:c + 1, :]
    # Decoder 1x1 conv: contraction n_z=32 -> keep on the MXU.  Early writeback.
    xbar_ref[...] = (jnp.dot(wdec_ref[...], z, preferred_element_type=jnp.float32)
                     + bdec_ref[...])

    # ------------------------------------------------------ cluster stage ---
    needs_mask = hw_pad != hw           # static (Python) flag; no-op when dense
    if needs_mask:
        lane = jax.lax.broadcasted_iota(jnp.int32, (1, hw_pad), 1)
        valid = lane < hw                                      # (1, hw_pad)

    cluster_ids = jax.lax.broadcasted_iota(jnp.int32, (n_clusters, hw_pad), 0)

    for bi in range(b_blk):                                    # static unroll
        lo, hi = bi * hw_pad, (bi + 1) * hw_pad
        zb = z[:, lo:hi]                                       # (nz, hw_pad)
        if needs_mask:
            zb = jnp.where(valid, zb, 0.0)
        zn = _l2norm(zb, axis=0)                               # per-pixel L2 norm (hoisted)
        protos = _l2norm(proto_ref[bi], axis=-1)               # (K, nz)

        for it in range(CLUSTER_ITERS):                        # static unroll
            # cosine similarity: clusters on sublanes, pixels on lanes.
            s = jnp.dot(protos, zn, preferred_element_type=jnp.float32)  # (K, hw_pad)

            # softmax over clusters (exact division: this path feeds the
            # returned logits, so no approx reciprocals here).
            s = s - jnp.max(s, axis=0, keepdims=True)
            e = jnp.exp(s)
            p = e / jnp.sum(e, axis=0, keepdims=True)

            # SwAV-style sinkhorn on this single sample (exact division).
            Q = jnp.exp(p * (1.0 / SINKHORN_EPS))              # (K, hw_pad) f32
            if needs_mask:
                Q = jnp.where(valid, Q, 0.0)
            tot = jnp.sum(jnp.sum(Q, axis=1, keepdims=True), axis=0, keepdims=True)
            Q = Q / tot
            for si in range(SINKHORN_ITERS):                   # static unroll
                Q = Q / (jnp.sum(Q, axis=1, keepdims=True) * n_clusters)
                col = jnp.sum(Q, axis=0, keepdims=True)
                if needs_mask:
                    col = jnp.maximum(col, 1e-30)
                if si == SINKHORN_ITERS - 1:
                    Q = Q / col            # trailing `Q * hw` folded in here
                else:
                    Q = Q / (col * hw)

            # argmax over clusters (first-max tie-break), per pixel.
            # Q stays f32 between the max and the equality compare.
            maxv = jnp.max(Q, axis=0, keepdims=True)
            idx = jnp.min(jnp.where(Q == maxv, cluster_ids, n_clusters),
                          axis=0, keepdims=True)               # (1, hw_pad) int32

            if it == CLUSTER_ITERS - 1:
                # Last iteration's Q / idx are the module outputs; the final
                # prototype update is never observed downstream, skip it.
                logits_ref[:, lo:hi] = Q
                idx_ref[:, lo:hi] = idx
            else:
                one_hot = (cluster_ids == idx).astype(jnp.float32)   # (K, hw_pad)
                if needs_mask:
                    one_hot = jnp.where(valid, one_hot, 0.0)
                # Only matmul whose contraction scales with HW -> bf16 inputs,
                # f32 accumulation (one_hot is exact in bf16).
                num = jax.lax.dot_general(
                    one_hot.astype(jnp.bfloat16), zb.astype(jnp.bfloat16),
                    (((1,), (1,)), ((), ())),
                    preferred_element_type=jnp.float32)              # (K, nz)
                cnt = jnp.sum(one_hot, axis=1, keepdims=True)        # (K, 1)
                protos = _l2norm(num / jnp.maximum(cnt, 1.0), axis=-1)


def clusternet_forward(x, params, protos_init, n_clusters, *, batch_block=None):
    """x: (b, Cin, H, W) NCHW float32.  Returns (x_bar, preds) like the module."""
    wenc, benc, wdec, bdec = params
    b, cin, h, w = x.shape
    nz = wenc.shape[0]
    hw = h * w
    hw_pad = ((hw + 127) // 128) * 128        # keep every store lane-dense

    # Fuse the whole batch into one grid step by default (amortizes per-step
    # overhead, widens every lane-dense op).  On v7x (2 TensorCores) pass
    # batch_block=ceil(b/2) so both cores get work via the parallel grid axis.
    b_blk = b if batch_block is None else batch_block
    assert b % b_blk == 0, "batch_block must divide the batch size"

    # NCHW -> (cin, b*hw_pad): channels on sublanes, batch*pixels on lanes.
    x_cf = jnp.transpose(x.reshape(b, cin, hw), (1, 0, 2))     # (cin, b, hw)
    if hw_pad != hw:
        x_cf = jnp.pad(x_cf, ((0, 0), (0, 0), (0, hw_pad - hw)))
    x_2d = x_cf.reshape(cin, b * hw_pad)

    out_shape = (
        jax.ShapeDtypeStruct((cin, b * hw_pad), jnp.float32),         # x_bar
        jax.ShapeDtypeStruct((n_clusters, b * hw_pad), jnp.float32),  # logits
        jax.ShapeDtypeStruct((1, b * hw_pad), jnp.int32),             # indexes
    )

    L = b_blk * hw_pad
    grid_spec = pltpu.PrefetchScalarGridSpec(
        num_scalar_prefetch=0,
        grid=(b // b_blk,),
        in_specs=[
            pl.BlockSpec((cin, L), lambda i: (0, i)),                 # x
            pl.BlockSpec((nz, cin), lambda i: (0, 0)),                # wenc
            pl.BlockSpec((nz, 1), lambda i: (0, 0)),                  # benc
            pl.BlockSpec((cin, nz), lambda i: (0, 0)),                # wdec
            pl.BlockSpec((cin, 1), lambda i: (0, 0)),                 # bdec
            pl.BlockSpec((b_blk, n_clusters, nz), lambda i: (i, 0, 0)),  # protos
        ],
        out_specs=[
            pl.BlockSpec((cin, L), lambda i: (0, i)),
            pl.BlockSpec((n_clusters, L), lambda i: (0, i)),
            pl.BlockSpec((1, L), lambda i: (0, i)),
        ],
    )

    kernel = functools.partial(
        _clusternet_kernel, b_blk=b_blk, hw=hw, hw_pad=hw_pad,
        n_clusters=n_clusters, cin=cin)

    xbar_f, logits_f, idx_f = pl.pallas_call(
        kernel,
        out_shape=out_shape,
        grid_spec=grid_spec,
        compiler_params=pltpu.CompilerParams(
            dimension_semantics=("parallel",),
            vmem_limit_bytes=_vmem_limit_bytes()),
    )(x_2d, wenc, benc, wdec, bdec, protos_init)

    # Back to NCHW: crop lane padding, swap batch/channel (tiny dims only).
    x_bar = jnp.transpose(xbar_f.reshape(cin, b, hw_pad)[:, :, :hw],
                          (1, 0, 2)).reshape(b, cin, h, w)
    logits = jnp.transpose(logits_f.reshape(n_clusters, b, hw_pad)[:, :, :hw],
                           (1, 0, 2)).reshape(b, n_clusters, h, w)
    indexes = idx_f.reshape(b, hw_pad)[:, :hw].reshape(b, h, w)
    preds = {"logits": logits, "indexes": indexes}
    return x_bar, preds


if __name__ == "__main__":
    key = jax.random.PRNGKey(0)
    b, cin, h, w = 2, 4, 16, 16
    n_z, n_clusters = 32, 8

    ks = jax.random.split(key, 6)
    x = jax.random.normal(ks[0], (b, cin, h, w), jnp.float32)
    wenc = jax.random.normal(ks[1], (n_z, cin), jnp.float32) * 0.1
    benc = jax.random.normal(ks[2], (n_z, 1), jnp.float32) * 0.01
    wdec = jax.random.normal(ks[3], (cin, n_z), jnp.float32) * 0.1
    bdec = jax.random.normal(ks[4], (cin, 1), jnp.float32) * 0.01
    # deterministic stand-in for torch.randn prototype init
    protos_init = jax.random.normal(ks[5], (b, n_clusters, n_z), jnp.float32)

    x_bar, preds = clusternet_forward(
        x, (wenc, benc, wdec, bdec), protos_init, n_clusters)
    jax.block_until_ready((x_bar, preds))

    assert x_bar.shape == (b, cin, h, w)
    assert preds["logits"].shape == (b, n_clusters, h, w)
    assert preds["indexes"].shape == (b, h, w)
    assert preds["indexes"].dtype == jnp.int32
    print("KERNEL_OK")
</pallas_src>

<mosaic_0001>
module attributes {stable_mosaic.version = 11 : i64} {
  func.func @_clusternet_kernel(%arg0: i32, %arg1: memref<4x512xf32, #tpu.memory_space<vmem>>, %arg2: memref<32x4xf32, #tpu.memory_space<vmem>>, %arg3: memref<32x1xf32, #tpu.memory_space<vmem>>, %arg4: memref<4x32xf32, #tpu.memory_space<vmem>>, %arg5: memref<4x1xf32, #tpu.memory_space<vmem>>, %arg6: memref<2x8x32xf32, #tpu.memory_space<vmem>>, %arg7: memref<4x512xf32, #tpu.memory_space<vmem>>, %arg8: memref<8x512xf32, #tpu.memory_space<vmem>>, %arg9: memref<1x512xi32, #tpu.memory_space<vmem>>) attributes {dimension_semantics = [#tpu.dimension_semantics<parallel>], iteration_bounds = array<i64: 1>, scalar_prefetch = 0 : i64, scratch_operands = 0 : i64, tpu.core_type = #tpu.core_type<tc>, window_params = [{transform_indices = @transform_0, window_bounds = array<i64: 4, 512>}, {pipeline_mode = #tpu.pipeline_mode<synchronous>, transform_indices = @transform_1, window_bounds = array<i64: 32, 4>}, {pipeline_mode = #tpu.pipeline_mode<synchronous>, transform_indices = @transform_2, window_bounds = array<i64: 32, 1>}, {pipeline_mode = #tpu.pipeline_mode<synchronous>, transform_indices = @transform_3, window_bounds = array<i64: 4, 32>}, {pipeline_mode = #tpu.pipeline_mode<synchronous>, transform_indices = @transform_4, window_bounds = array<i64: 4, 1>}, {transform_indices = @transform_5, window_bounds = array<i64: 2, 8, 32>}, {transform_indices = @transform_6, window_bounds = array<i64: 4, 512>}, {transform_indices = @transform_7, window_bounds = array<i64: 8, 512>}, {transform_indices = @transform_8, window_bounds = array<i64: 1, 512>}]} {
    %c0 = arith.constant 0 : index
    %c0_0 = arith.constant 0 : index
    %0 = vector.load %arg1[%c0, %c0_0] : memref<4x512xf32, #tpu.memory_space<vmem>>, vector<4x512xf32>
    %c0_1 = arith.constant 0 : index
    %c0_2 = arith.constant 0 : index
    %1 = vector.load %arg2[%c0_1, %c0_2] : memref<32x4xf32, #tpu.memory_space<vmem>>, vector<32x4xf32>
    %2 = vector.extract_strided_slice %1 {offsets = [0, 0], sizes = [32, 1], strides = [1, 1]} : vector<32x4xf32> to vector<32x1xf32>
    %3 = vector.extract_strided_slice %0 {offsets = [0, 0], sizes = [1, 512], strides = [1, 1]} : vector<4x512xf32> to vector<1x512xf32>
    %4 = vector.broadcast %2 : vector<32x1xf32> to vector<32x512xf32>
    %5 = vector.broadcast %3 : vector<1x512xf32> to vector<32x512xf32>
    %6 = arith.mulf %4, %5 : vector<32x512xf32>
    %c0_3 = arith.constant 0 : index
    %c0_4 = arith.constant 0 : index
    %7 = vector.load %arg3[%c0_3, %c0_4] : memref<32x1xf32, #tpu.memory_space<vmem>>, vector<32x1xf32>
    %8 = vector.broadcast %7 : vector<32x1xf32> to vector<32x512xf32>
    %9 = arith.addf %6, %8 : vector<32x512xf32>
    %10 = vector.extract_strided_slice %1 {offsets = [0, 1], sizes = [32, 1], strides = [1, 1]} : vector<32x4xf32> to vector<32x1xf32>
    %11 = vector.extract_strided_slice %0 {offsets = [1, 0], sizes = [1, 512], strides = [1, 1]} : vector<4x512xf32> to vector<1x512xf32>
    %12 = vector.broadcast %10 : vector<32x1xf32> to vector<32x512xf32>
    %13 = vector.broadcast %11 : vector<1x512xf32> to vector<32x512xf32>
    %14 = arith.mulf %12, %13 : vector<32x512xf32>
    %15 = arith.addf %9, %14 : vector<32x512xf32>
    %16 = vector.extract_strided_slice %1 {offsets = [0, 2], sizes = [32, 1], strides = [1, 1]} : vector<32x4xf32> to vector<32x1xf32>
    %17 = vector.extract_strided_slice %0 {offsets = [2, 0], sizes = [1, 512], strides = [1, 1]} : vector<4x512xf32> to vector<1x512xf32>
    %18 = vector.broadcast %16 : vector<32x1xf32> to vector<32x512xf32>
    %19 = vector.broadcast %17 : vector<1x512xf32> to vector<32x512xf32>
    %20 = arith.mulf %18, %19 : vector<32x512xf32>
    %21 = arith.addf %15, %20 : vector<32x512xf32>
    %22 = vector.extract_strided_slice %1 {offsets = [0, 3], sizes = [32, 1], strides = [1, 1]} : vector<32x4xf32> to vector<32x1xf32>
    %23 = vector.extract_strided_slice %0 {offsets = [3, 0], sizes = [1, 512], strides = [1, 1]} : vector<4x512xf32> to vector<1x512xf32>
    %24 = vector.broadcast %22 : vector<32x1xf32> to vector<32x512xf32>
    %25 = vector.broadcast %23 : vector<1x512xf32> to vector<32x512xf32>
    %26 = arith.mulf %24, %25 : vector<32x512xf32>
    %27 = arith.addf %21, %26 : vector<32x512xf32>
    %c0_5 = arith.constant 0 : index
    %c0_6 = arith.constant 0 : index
    %28 = vector.load %arg4[%c0_5, %c0_6] : memref<4x32xf32, #tpu.memory_space<vmem>>, vector<4x32xf32>
    %cst = arith.constant dense<0.000000e+00> : vector<4x512xf32>
    %29 = tpu.matmul %28, %27, %cst {dimension_numbers = #tpu.dot_dimension_numbers<[1], [0], [0], [1], [0, 0, 1, 1], [], []>} : vector<4x32xf32>, vector<32x512xf32>, vector<4x512xf32> -> vector<4x512xf32>
    %c0_7 = arith.constant 0 : index
    %c0_8 = arith.constant 0 : index
    %30 = vector.load %arg5[%c0_7, %c0_8] : memref<4x1xf32, #tpu.memory_space<vmem>>, vector<4x1xf32>
    %31 = vector.broadcast %30 : vector<4x1xf32> to vector<4x512xf32>
    %32 = arith.addf %29, %31 : vector<4x512xf32>
    %c0_9 = arith.constant 0 : index
    %c0_10 = arith.constant 0 : index
    %33 = vector.load %arg7[%c0_9, %c0_10] : memref<4x512xf32, #tpu.memory_space<vmem>>, vector<4x512xf32>
    tpu.vector_store %arg7[%c0_9, %c0_10], %32 {strides = array<i32>} : memref<4x512xf32, #tpu.memory_space<vmem>>, vector<4x512xf32>,
    %34 = tpu.iota {dimensions = array<i32: 0>} : vector<8x256xi32>
    %35 = vector.extract_strided_slice %27 {offsets = [0, 0], sizes = [32, 256], strides = [1, 1]} : vector<32x512xf32> to vector<32x256xf32>
    %36 = arith.mulf %35, %35 : vector<32x256xf32>
    %cst_11 = arith.constant dense<0.000000e+00> : vector<256xf32>
    %37 = vector.multi_reduction <add>, %36, %cst_11 [0] : vector<32x256xf32> to vector<256xf32>
    %38 = vector.shape_cast %37 : vector<256xf32> to vector<1x256xf32>
    %cst_12 = arith.constant 9.99999996E-13 : f32
    %39 = vector.broadcast %cst_12 : f32 to vector<1x256xf32>
    %40 = arith.addf %38, %39 : vector<1x256xf32>
    %41 = math.rsqrt %40 : vector<1x256xf32>
    %42 = vector.broadcast %41 : vector<1x256xf32> to vector<32x256xf32>
    %43 = arith.mulf %35, %42 : vector<32x256xf32>
    %c0_13 = arith.constant 0 : index
    %c0_14 = arith.constant 0 : index
    %c0_15 = arith.constant 0 : index
    %44 = vector.load %arg6[%c0_13, %c0_14, %c0_15] : memref<2x8x32xf32, #tpu.memory_space<vmem>>, vector<1x8x32xf32>
    %45 = vector.shape_cast %44 : vector<1x8x32xf32> to vector<8x32xf32>
    %46 = arith.mulf %45, %45 : vector<8x32xf32>
    %cst_16 = arith.constant dense<0.000000e+00> : vector<8xf32>
    %47 = vector.multi_reduction <add>, %46, %cst_16 [1] : vector<8x32xf32> to vector<8xf32>
    %48 = vector.shape_cast %47 : vector<8xf32> to vector<8x1xf32>
    %cst_17 = arith.constant 9.99999996E-13 : f32
    %49 = vector.broadcast %cst_17 : f32 to vector<8x1xf32>
    %50 = arith.addf %48, %49 : vector<8x1xf32>
    %51 = math.rsqrt %50 : vector<8x1xf32>
    %52 = vector.broadcast %51 : vector<8x1xf32> to vector<8x32xf32>
    %53 = arith.mulf %45, %52 : vector<8x32xf32>
    %cst_18 = arith.constant dense<0.000000e+00> : vector<8x256xf32>
    %54 = tpu.matmul %53, %43, %cst_18 {dimension_numbers = #tpu.dot_dimension_numbers<[1], [0], [0], [1], [0, 0, 1, 1], [], []>} : vector<8x32xf32>, vector<32x256xf32>, vector<8x256xf32> -> vector<8x256xf32>
    %cst_19 = arith.constant dense<0xFF800000> : vector<256xf32>
    %55 = vector.multi_reduction <maximumf>, %54, %cst_19 [0] : vector<8x256xf32> to vector<256xf32>
    %56 = vector.shape_cast %55 : vector<256xf32> to vector<1x256xf32>
    %57 = vector.broadcast %56 : vector<1x256xf32> to vector<8x256xf32>
    %58 = arith.subf %54, %57 : vector<8x256xf32>
    %59 = math.exp %58 : vector<8x256xf32>
    %cst_20 = arith.constant dense<0.000000e+00> : vector<256xf32>
    %60 = vector.multi_reduction <add>, %59, %cst_20 [0] : vector<8x256xf32> to vector<256xf32>
    %61 = vector.shape_cast %60 : vector<256xf32> to vector<1x256xf32>
    %62 = vector.broadcast %61 : vector<1x256xf32> to vector<8x256xf32>
    %63 = arith.divf %59, %62 : vector<8x256xf32>
    %cst_21 = arith.constant 2.000000e+01 : f32
    %64 = vector.broadcast %cst_21 : f32 to vector<8x256xf32>
    %65 = arith.mulf %63, %64 : vector<8x256xf32>
    %66 = math.exp %65 : vector<8x256xf32>
    %cst_22 = arith.constant dense<0.000000e+00> : vector<8xf32>
    %67 = vector.multi_reduction <add>, %66, %cst_22 [1] : vector<8x256xf32> to vector<8xf32>
    %68 = vector.shape_cast %67 : vector<8xf32> to vector<8x1xf32>
    %cst_23 = arith.constant dense<0.000000e+00> : vector<1xf32>
    %69 = vector.multi_reduction <add>, %68, %cst_23 [0] : vector<8x1xf32> to vector<1xf32>
    %70 = vector.shape_cast %69 : vector<1xf32> to vector<1x1xf32>
    %71 = vector.broadcast %70 : vector<1x1xf32> to vector<8x256xf32>
    %72 = arith.divf %66, %71 : vector<8x256xf32>
    %cst_24 = arith.constant dense<0.000000e+00> : vector<8xf32>
    %73 = vector.multi_reduction <add>, %72, %cst_24 [1] : vector<8x256xf32> to vector<8xf32>
    %74 = vector.shape_cast %73 : vector<8xf32> to vector<8x1xf32>
    %cst_25 = arith.constant 8.000000e+00 : f32
    %75 = vector.broadcast %cst_25 : f32 to vector<8x1xf32>
    %76 = arith.mulf %74, %75 : vector<8x1xf32>
    %77 = vector.broadcast %76 : vector<8x1xf32> to vector<8x256xf32>
    %78 = arith.divf %72, %77 : vector<8x256xf32>
    %cst_26 = arith.constant dense<0.000000e+00> : vector<256xf32>
    %79 = vector.multi_reduction <add>, %78, %cst_26 [0] : vector<8x256xf32> to vector<256xf32>
    %80 = vector.shape_cast %79 : vector<256xf32> to vector<1x256xf32>
    %cst_27 = arith.constant 2.560000e+02 : f32
    %81 = vector.broadcast %cst_27 : f32 to vector<1x256xf32>
    %82 = arith.mulf %80, %81 : vector<1x256xf32>
    %83 = vector.broadcast %82 : vector<1x256xf32> to vector<8x256xf32>
    %84 = arith.divf %78, %83 : vector<8x256xf32>
    %cst_28 = arith.constant dense<0.000000e+00> : vector<8xf32>
    %85 = vector.multi_reduction <add>, %84, %cst_28 [1] : vector<8x256xf32> to vector<8xf32>
    %86 = vector.shape_cast %85 : vector<8xf32> to vector<8x1xf32>
    %cst_29 = arith.constant 8.000000e+00 : f32
    %87 = vector.broadcast %cst_29 : f32 to vector<8x1xf32>
    %88 = arith.mulf %86, %87 : vector<8x1xf32>
    %89 = vector.broadcast %88 : vector<8x1xf32> to vector<8x256xf32>
    %90 = arith.divf %84, %89 : vector<8x256xf32>
    %cst_30 = arith.constant dense<0.000000e+00> : vector<256xf32>
    %91 = vector.multi_reduction <add>, %90, %cst_30 [0] : vector<8x256xf32> to vector<256xf32>
    %92 = vector.shape_cast %91 : vector<256xf32> to vector<1x256xf32>
    %cst_31 = arith.constant 2.560000e+02 : f32
    %93 = vector.broadcast %cst_31 : f32 to vector<1x256xf32>
    %94 = arith.mulf %92, %93 : vector<1x256xf32>
    %95 = vector.broadcast %94 : vector<1x256xf32> to vector<8x256xf32>
    %96 = arith.divf %90, %95 : vector<8x256xf32>
    %cst_32 = arith.constant dense<0.000000e+00> : vector<8xf32>
    %97 = vector.multi_reduction <add>, %96, %cst_32 [1] : vector<8x256xf32> to vector<8xf32>
    %98 = vector.shape_cast %97 : vector<8xf32> to vector<8x1xf32>
    %cst_33 = arith.constant 8.000000e+00 : f32
    %99 = vector.broadcast %cst_33 : f32 to vector<8x1xf32>
    %100 = arith.mulf %98, %99 : vector<8x1xf32>
    %101 = vector.broadcast %100 : vector<8x1xf32> to vector<8x256xf32>
    %102 = arith.divf %96, %101 : vector<8x256xf32>
    %cst_34 = arith.constant dense<0.000000e+00> : vector<256xf32>
    %103 = vector.multi_reduction <add>, %102, %cst_34 [0] : vector<8x256xf32> to vector<256xf32>
    %104 = vector.shape_cast %103 : vector<256xf32> to vector<1x256xf32>
    %105 = vector.broadcast %104 : vector<1x256xf32> to vector<8x256xf32>
    %106 = arith.divf %102, %105 : vector<8x256xf32>
    %cst_35 = arith.constant dense<0xFF800000> : vector<256xf32>
    %107 = vector.multi_reduction <maximumf>, %106, %cst_35 [0] : vector<8x256xf32> to vector<256xf32>
    %108 = vector.shape_cast %107 : vector<256xf32> to vector<1x256xf32>
    %109 = vector.broadcast %108 : vector<1x256xf32> to vector<8x256xf32>
    %110 = arith.cmpf oeq, %106, %109 : vector<8x256xf32>
    %c8_i32 = arith.constant 8 : i32
    %111 = vector.broadcast %c8_i32 : i32 to vector<8x256xi32>
    %112 = arith.select %110, %34, %111 : vector<8x256xi1>, vector<8x256xi32>
    %cst_36 = arith.constant dense<2147483647> : vector<256xi32>
    %113 = vector.multi_reduction <minsi>, %112, %cst_36 [0] : vector<8x256xi32> to vector<256xi32>
    %114 = vector.shape_cast %113 : vector<256xi32> to vector<1x256xi32>
    %115 = vector.broadcast %114 : vector<1x256xi32> to vector<8x256xi32>
    %116 = arith.cmpi eq, %34, %115 : vector<8x256xi32>
    %117 = arith.extui %116 : vector<8x256xi1> to vector<8x256xi32>
    %118 = arith.sitofp %117 : vector<8x256xi32> to vector<8x256xf32>
    %119 = arith.truncf %118 : vector<8x256xf32> to vector<8x256xbf16>
    %120 = arith.truncf %35 : vector<32x256xf32> to vector<32x256xbf16>
    %cst_37 = arith.constant dense<0.000000e+00> : vector<8x32xf32>
    %121 = tpu.matmul %119, %120, %cst_37 {dimension_numbers = #tpu.dot_dimension_numbers<[1], [1], [0], [0], [0, 0, 1, 0], [], []>} : vector<8x256xbf16>, vector<32x256xbf16>, vector<8x32xf32> -> vector<8x32xf32>
    %cst_38 = arith.constant dense<0.000000e+00> : vector<8xf32>
    %122 = vector.multi_reduction <add>, %118, %cst_38 [1] : vector<8x256xf32> to vector<8xf32>
    %123 = vector.shape_cast %122 : vector<8xf32> to vector<8x1xf32>
    %cst_39 = arith.constant 1.000000e+00 : f32
    %124 = vector.broadcast %cst_39 : f32 to vector<8x1xf32>
    %125 = arith.maximumf %123, %124 : vector<8x1xf32>
    %126 = vector.broadcast %125 : vector<8x1xf32> to vector<8x32xf32>
    %127 = arith.divf %121, %126 : vector<8x32xf32>
    %128 = arith.mulf %127, %127 : vector<8x32xf32>
    %cst_40 = arith.constant dense<0.000000e+00> : vector<8xf32>
    %129 = vector.multi_reduction <add>, %128, %cst_40 [1] : vector<8x32xf32> to vector<8xf32>
    %130 = vector.shape_cast %129 : vector<8xf32> to vector<8x1xf32>
    %cst_41 = arith.constant 9.99999996E-13 : f32
    %131 = vector.broadcast %cst_41 : f32 to vector<8x1xf32>
    %132 = arith.addf %130, %131 : vector<8x1xf32>
    %133 = math.rsqrt %132 : vector<8x1xf32>
    %134 = vector.broadcast %133 : vector<8x1xf32> to vector<8x32xf32>
    %135 = arith.mulf %127, %134 : vector<8x32xf32>
    %cst_42 = arith.constant dense<0.000000e+00> : vector<8x256xf32>
    %136 = tpu.matmul %135, %43, %cst_42 {dimension_numbers = #tpu.dot_dimension_numbers<[1], [0], [0], [1], [0, 0, 1, 1], [], []>} : vector<8x32xf32>, vector<32x256xf32>, vector<8x256xf32> -> vector<8x256xf32>
    %cst_43 = arith.constant dense<0xFF800000> : vector<256xf32>
    %137 = vector.multi_reduction <maximumf>, %136, %cst_43 [0] : vector<8x256xf32> to vector<256xf32>
    %138 = vector.shape_cast %137 : vector<256xf32> to vector<1x256xf32>
    %139 = vector.broadcast %138 : vector<1x256xf32> to vector<8x256xf32>
    %140 = arith.subf %136, %139 : vector<8x256xf32>
    %141 = math.exp %140 : vector<8x256xf32>
    %cst_44 = arith.constant dense<0.000000e+00> : vector<256xf32>
    %142 = vector.multi_reduction <add>, %141, %cst_44 [0] : vector<8x256xf32> to vector<256xf32>
    %143 = vector.shape_cast %142 : vector<256xf32> to vector<1x256xf32>
    %144 = vector.broadcast %143 : vector<1x256xf32> to vector<8x256xf32>
    %145 = arith.divf %141, %144 : vector<8x256xf32>
    %cst_45 = arith.constant 2.000000e+01 : f32
    %146 = vector.broadcast %cst_45 : f32 to vector<8x256xf32>
    %147 = arith.mulf %145, %146 : vector<8x256xf32>
    %148 = math.exp %147 : vector<8x256xf32>
    %cst_46 = arith.constant dense<0.000000e+00> : vector<8xf32>
    %149 = vector.multi_reduction <add>, %148, %cst_46 [1] : vector<8x256xf32> to vector<8xf32>
    %150 = vector.shape_cast %149 : vector<8xf32> to vector<8x1xf32>
    %cst_47 = arith.constant dense<0.000000e+00> : vector<1xf32>
    %151 = vector.multi_reduction <add>, %150, %cst_47 [0] : vector<8x1xf32> to vector<1xf32>
    %152 = vector.shape_cast %151 : vector<1xf32> to vector<1x1xf32>
    %153 = vector.broadcast %152 : vector<1x1xf32> to vector<8x256xf32>
    %154 = arith.divf %148, %153 : vector<8x256xf32>
    %cst_48 = arith.constant dense<0.000000e+00> : vector<8xf32>
    %155 = vector.multi_reduction <add>, %154, %cst_48 [1] : vector<8x256xf32> to vector<8xf32>
    %156 = vector.shape_cast %155 : vector<8xf32> to vector<8x1xf32>
    %cst_49 = arith.constant 8.000000e+00 : f32
    %157 = vector.broadcast %cst_49 : f32 to vector<8x1xf32>
    %158 = arith.mulf %156, %157 : vector<8x1xf32>
    %159 = vector.broadcast %158 : vector<8x1xf32> to vector<8x256xf32>
    %160 = arith.divf %154, %159 : vector<8x256xf32>
    %cst_50 = arith.constant dense<0.000000e+00> : vector<256xf32>
    %161 = vector.multi_reduction <add>, %160, %cst_50 [0] : vector<8x256xf32> to vector<256xf32>
    %162 = vector.shape_cast %161 : vector<256xf32> to vector<1x256xf32>
    %cst_51 = arith.constant 2.560000e+02 : f32
    %163 = vector.broadcast %cst_51 : f32 to vector<1x256xf32>
    %164 = arith.mulf %162, %163 : vector<1x256xf32>
    %165 = vector.broadcast %164 : vector<1x256xf32> to vector<8x256xf32>
    %166 = arith.divf %160, %165 : vector<8x256xf32>
    %cst_52 = arith.constant dense<0.000000e+00> : vector<8xf32>
    %167 = vector.multi_reduction <add>, %166, %cst_52 [1] : vector<8x256xf32> to vector<8xf32>
    %168 = vector.shape_cast %167 : vector<8xf32> to vector<8x1xf32>
    %cst_53 = arith.constant 8.000000e+00 : f32
    %169 = vector.broadcast %cst_53 : f32 to vector<8x1xf32>
    %170 = arith.mulf %168, %169 : vector<8x1xf32>
    %171 = vector.broadcast %170 : vector<8x1xf32> to vector<8x256xf32>
    %172 = arith.divf %166, %171 : vector<8x256xf32>
    %cst_54 = arith.constant dense<0.000000e+00> : vector<256xf32>
    %173 = vector.multi_reduction <add>, %172, %cst_54 [0] : vector<8x256xf32> to vector<256xf32>
    %174 = vector.shape_cast %173 : vector<256xf32> to vector<1x256xf32>
    %cst_55 = arith.constant 2.560000e+02 : f32
    %175 = vector.broadcast %cst_55 : f32 to vector<1x256xf32>
    %176 = arith.mulf %174, %175 : vector<1x256xf32>
    %177 = vector.broadcast %176 : vector<1x256xf32> to vector<8x256xf32>
    %178 = arith.divf %172, %177 : vector<8x256xf32>
    %cst_56 = arith.constant dense<0.000000e+00> : vector<8xf32>
    %179 = vector.multi_reduction <add>, %178, %cst_56 [1] : vector<8x256xf32> to vector<8xf32>
    %180 = vector.shape_cast %179 : vector<8xf32> to vector<8x1xf32>
    %cst_57 = arith.constant 8.000000e+00 : f32
    %181 = vector.broadcast %cst_57 : f32 to vector<8x1xf32>
    %182 = arith.mulf %180, %181 : vector<8x1xf32>
    %183 = vector.broadcast %182 : vector<8x1xf32> to vector<8x256xf32>
    %184 = arith.divf %178, %183 : vector<8x256xf32>
    %cst_58 = arith.constant dense<0.000000e+00> : vector<256xf32>
    %185 = vector.multi_reduction <add>, %184, %cst_58 [0] : vector<8x256xf32> to vector<256xf32>
    %186 = vector.shape_cast %185 : vector<256xf32> to vector<1x256xf32>
    %187 = vector.broadcast %186 : vector<1x256xf32> to vector<8x256xf32>
    %188 = arith.divf %184, %187 : vector<8x256xf32>
    %cst_59 = arith.constant dense<0xFF800000> : vector<256xf32>
    %189 = vector.multi_reduction <maximumf>, %188, %cst_59 [0] : vector<8x256xf32> to vector<256xf32>
    %190 = vector.shape_cast %189 : vector<256xf32> to vector<1x256xf32>
    %191 = vector.broadcast %190 : vector<1x256xf32> to vector<8x256xf32>
    %192 = arith.cmpf oeq, %188, %191 : vector<8x256xf32>
    %c8_i32_60 = arith.constant 8 : i32
    %193 = vector.broadcast %c8_i32_60 : i32 to vector<8x256xi32>
    %194 = arith.select %192, %34, %193 : vector<8x256xi1>, vector<8x256xi32>
    %cst_61 = arith.constant dense<2147483647> : vector<256xi32>
    %195 = vector.multi_reduction <minsi>, %194, %cst_61 [0] : vector<8x256xi32> to vector<256xi32>
    %196 = vector.shape_cast %195 : vector<256xi32> to vector<1x256xi32>
    %197 = vector.broadcast %196 : vector<1x256xi32> to vector<8x256xi32>
    %198 = arith.cmpi eq, %34, %197 : vector<8x256xi32>
    %199 = arith.extui %198 : vector<8x256xi1> to vector<8x256xi32>
    %200 = arith.sitofp %199 : vector<8x256xi32> to vector<8x256xf32>
    %201 = arith.truncf %200 : vector<8x256xf32> to vector<8x256xbf16>
    %202 = arith.truncf %35 : vector<32x256xf32> to vector<32x256xbf16>
    %cst_62 = arith.constant dense<0.000000e+00> : vector<8x32xf32>
    %203 = tpu.matmul %201, %202, %cst_62 {dimension_numbers = #tpu.dot_dimension_numbers<[1], [1], [0], [0], [0, 0, 1, 0], [], []>} : vector<8x256xbf16>, vector<32x256xbf16>, vector<8x32xf32> -> vector<8x32xf32>
    %cst_63 = arith.constant dense<0.000000e+00> : vector<8xf32>
    %204 = vector.multi_reduction <add>, %200, %cst_63 [1] : vector<8x256xf32> to vector<8xf32>
    %205 = vector.shape_cast %204 : vector<8xf32> to vector<8x1xf32>
    %cst_64 = arith.constant 1.000000e+00 : f32
    %206 = vector.broadcast %cst_64 : f32 to vector<8x1xf32>
    %207 = arith.maximumf %205, %206 : vector<8x1xf32>
    %208 = vector.broadcast %207 : vector<8x1xf32> to vector<8x32xf32>
    %209 = arith.divf %203, %208 : vector<8x32xf32>
    %210 = arith.mulf %209, %209 : vector<8x32xf32>
    %cst_65 = arith.constant dense<0.000000e+00> : vector<8xf32>
    %211 = vector.multi_reduction <add>, %210, %cst_65 [1] : vector<8x32xf32> to vector<8xf32>
    %212 = vector.shape_cast %211 : vector<8xf32> to vector<8x1xf32>
    %cst_66 = arith.constant 9.99999996E-13 : f32
    %213 = vector.broadcast %cst_66 : f32 to vector<8x1xf32>
    %214 = arith.addf %212, %213 : vector<8x1xf32>
    %215 = math.rsqrt %214 : vector<8x1xf32>
    %216 = vector.broadcast %215 : vector<8x1xf32> to vector<8x32xf32>
    %217 = arith.mulf %209, %216 : vector<8x32xf32>
    %cst_67 = arith.constant dense<0.000000e+00> : vector<8x256xf32>
    %218 = tpu.matmul %217, %43, %cst_67 {dimension_numbers = #tpu.dot_dimension_numbers<[1], [0], [0], [1], [0, 0, 1, 1], [], []>} : vector<8x32xf32>, vector<32x256xf32>, vector<8x256xf32> -> vector<8x256xf32>
    %cst_68 = arith.constant dense<0xFF800000> : vector<256xf32>
    %219 = vector.multi_reduction <maximumf>, %218, %cst_68 [0] : vector<8x256xf32> to vector<256xf32>
    %220 = vector.shape_cast %219 : vector<256xf32> to vector<1x256xf32>
    %221 = vector.broadcast %220 : vector<1x256xf32> to vector<8x256xf32>
    %222 = arith.subf %218, %221 : vector<8x256xf32>
    %223 = math.exp %222 : vector<8x256xf32>
    %cst_69 = arith.constant dense<0.000000e+00> : vector<256xf32>
    %224 = vector.multi_reduction <add>, %223, %cst_69 [0] : vector<8x256xf32> to vector<256xf32>
    %225 = vector.shape_cast %224 : vector<256xf32> to vector<1x256xf32>
    %226 = vector.broadcast %225 : vector<1x256xf32> to vector<8x256xf32>
    %227 = arith.divf %223, %226 : vector<8x256xf32>
    %cst_70 = arith.constant 2.000000e+01 : f32
    %228 = vector.broadcast %cst_70 : f32 to vector<8x256xf32>
    %229 = arith.mulf %227, %228 : vector<8x256xf32>
    %230 = math.exp %229 : vector<8x256xf32>
    %cst_71 = arith.constant dense<0.000000e+00> : vector<8xf32>
    %231 = vector.multi_reduction <add>, %230, %cst_71 [1] : vector<8x256xf32> to vector<8xf32>
    %232 = vector.shape_cast %231 : vector<8xf32> to vector<8x1xf32>
    %cst_72 = arith.constant dense<0.000000e+00> : vector<1xf32>
    %233 = vector.multi_reduction <add>, %232, %cst_72 [0] : vector<8x1xf32> to vector<1xf32>
    %234 = vector.shape_cast %233 : vector<1xf32> to vector<1x1xf32>
    %235 = vector.broadcast %234 : vector<1x1xf32> to vector<8x256xf32>
    %236 = arith.divf %230, %235 : vector<8x256xf32>
    %cst_73 = arith.constant dense<0.000000e+00> : vector<8xf32>
    %237 = vector.multi_reduction <add>, %236, %cst_73 [1] : vector<8x256xf32> to vector<8xf32>
    %238 = vector.shape_cast %237 : vector<8xf32> to vector<8x1xf32>
    %cst_74 = arith.constant 8.000000e+00 : f32
    %239 = vector.broadcast %cst_74 : f32 to vector<8x1xf32>
    %240 = arith.mulf %238, %239 : vector<8x1xf32>
    %241 = vector.broadcast %240 : vector<8x1xf32> to vector<8x256xf32>
    %242 = arith.divf %236, %241 : vector<8x256xf32>
    %cst_75 = arith.constant dense<0.000000e+00> : vector<256xf32>
    %243 = vector.multi_reduction <add>, %242, %cst_75 [0] : vector<8x256xf32> to vector<256xf32>
    %244 = vector.shape_cast %243 : vector<256xf32> to vector<1x256xf32>
    %cst_76 = arith.constant 2.560000e+02 : f32
    %245 = vector.broadcast %cst_76 : f32 to vector<1x256xf32>
    %246 = arith.mulf %244, %245 : vector<1x256xf32>
    %247 = vector.broadcast %246 : vector<1x256xf32> to vector<8x256xf32>
    %248 = arith.divf %242, %247 : vector<8x256xf32>
    %cst_77 = arith.constant dense<0.000000e+00> : vector<8xf32>
    %249 = vector.multi_reduction <add>, %248, %cst_77 [1] : vector<8x256xf32> to vector<8xf32>
    %250 = vector.shape_cast %249 : vector<8xf32> to vector<8x1xf32>
    %cst_78 = arith.constant 8.000000e+00 : f32
    %251 = vector.broadcast %cst_78 : f32 to vector<8x1xf32>
    %252 = arith.mulf %250, %251 : vector<8x1xf32>
    %253 = vector.broadcast %252 : vector<8x1xf32> to vector<8x256xf32>
    %254 = arith.divf %248, %253 : vector<8x256xf32>
    %cst_79 = arith.constant dense<0.000000e+00> : vector<256xf32>
    %255 = vector.multi_reduction <add>, %254, %cst_79 [0] : vector<8x256xf32> to vector<256xf32>
    %256 = vector.shape_cast %255 : vector<256xf32> to vector<1x256xf32>
    %cst_80 = arith.constant 2.560000e+02 : f32
    %257 = vector.broadcast %cst_80 : f32 to vector<1x256xf32>
    %258 = arith.mulf %256, %257 : vector<1x256xf32>
    %259 = vector.broadcast %258 : vector<1x256xf32> to vector<8x256xf32>
    %260 = arith.divf %254, %259 : vector<8x256xf32>
    %cst_81 = arith.constant dense<0.000000e+00> : vector<8xf32>
    %261 = vector.multi_reduction <add>, %260, %cst_81 [1] : vector<8x256xf32> to vector<8xf32>
    %262 = vector.shape_cast %261 : vector<8xf32> to vector<8x1xf32>
    %cst_82 = arith.constant 8.000000e+00 : f32
    %263 = vector.broadcast %cst_82 : f32 to vector<8x1xf32>
    %264 = arith.mulf %262, %263 : vector<8x1xf32>
    %265 = vector.broadcast %264 : vector<8x1xf32> to vector<8x256xf32>
    %266 = arith.divf %260, %265 : vector<8x256xf32>
    %cst_83 = arith.constant dense<0.000000e+00> : vector<256xf32>
    %267 = vector.multi_reduction <add>, %266, %cst_83 [0] : vector<8x256xf32> to vector<256xf32>
    %268 = vector.shape_cast %267 : vector<256xf32> to vector<1x256xf32>
    %269 = vector.broadcast %268 : vector<1x256xf32> to vector<8x256xf32>
    %270 = arith.divf %266, %269 : vector<8x256xf32>
    %cst_84 = arith.constant dense<0xFF800000> : vector<256xf32>
    %271 = vector.multi_reduction <maximumf>, %270, %cst_84 [0] : vector<8x256xf32> to vector<256xf32>
    %272 = vector.shape_cast %271 : vector<256xf32> to vector<1x256xf32>
    %273 = vector.broadcast %272 : vector<1x256xf32> to vector<8x256xf32>
    %274 = arith.cmpf oeq, %270, %273 : vector<8x256xf32>
    %c8_i32_85 = arith.constant 8 : i32
    %275 = vector.broadcast %c8_i32_85 : i32 to vector<8x256xi32>
    %276 = arith.select %274, %34, %275 : vector<8x256xi1>, vector<8x256xi32>
    %cst_86 = arith.constant dense<2147483647> : vector<256xi32>
    %277 = vector.multi_reduction <minsi>, %276, %cst_86 [0] : vector<8x256xi32> to vector<256xi32>
    %278 = vector.shape_cast %277 : vector<256xi32> to vector<1x256xi32>
    %c0_87 = arith.constant 0 : index
    %c0_88 = arith.constant 0 : index
    %279 = vector.load %arg8[%c0_87, %c0_88] : memref<8x512xf32, #tpu.memory_space<vmem>>, vector<8x256xf32>
    tpu.vector_store %arg8[%c0_87, %c0_88], %270 {strides = array<i32>} : memref<8x512xf32, #tpu.memory_space<vmem>>, vector<8x256xf32>,
    %c0_89 = arith.constant 0 : index
    %c0_90 = arith.constant 0 : index
    %280 = vector.load %arg9[%c0_89, %c0_90] : memref<1x512xi32, #tpu.memory_space<vmem>>, vector<1x256xi32>
    tpu.vector_store %arg9[%c0_89, %c0_90], %278 {strides = array<i32>} : memref<1x512xi32, #tpu.memory_space<vmem>>, vector<1x256xi32>,
    %281 = vector.extract_strided_slice %27 {offsets = [0, 256], sizes = [32, 256], strides = [1, 1]} : vector<32x512xf32> to vector<32x256xf32>
    %282 = arith.mulf %281, %281 : vector<32x256xf32>
    %cst_91 = arith.constant dense<0.000000e+00> : vector<256xf32>
    %283 = vector.multi_reduction <add>, %282, %cst_91 [0] : vector<32x256xf32> to vector<256xf32>
    %284 = vector.shape_cast %283 : vector<256xf32> to vector<1x256xf32>
    %cst_92 = arith.constant 9.99999996E-13 : f32
    %285 = vector.broadcast %cst_92 : f32 to vector<1x256xf32>
    %286 = arith.addf %284, %285 : vector<1x256xf32>
    %287 = math.rsqrt %286 : vector<1x256xf32>
    %288 = vector.broadcast %287 : vector<1x256xf32> to vector<32x256xf32>
    %289 = arith.mulf %281, %288 : vector<32x256xf32>
    %c1 = arith.constant 1 : index
    %c0_93 = arith.constant 0 : index
    %c0_94 = arith.constant 0 : index
    %290 = vector.load %arg6[%c1, %c0_93, %c0_94] : memref<2x8x32xf32, #tpu.memory_space<vmem>>, vector<1x8x32xf32>
    %291 = vector.shape_cast %290 : vector<1x8x32xf32> to vector<8x32xf32>
    %292 = arith.mulf %291, %291 : vector<8x32xf32>
    %cst_95 = arith.constant dense<0.000000e+00> : vector<8xf32>
    %293 = vector.multi_reduction <add>, %292, %cst_95 [1] : vector<8x32xf32> to vector<8xf32>
    %294 = vector.shape_cast %293 : vector<8xf32> to vector<8x1xf32>
    %cst_96 = arith.constant 9.99999996E-13 : f32
    %295 = vector.broadcast %cst_96 : f32 to vector<8x1xf32>
    %296 = arith.addf %294, %295 : vector<8x1xf32>
    %297 = math.rsqrt %296 : vector<8x1xf32>
    %298 = vector.broadcast %297 : vector<8x1xf32> to vector<8x32xf32>
    %299 = arith.mulf %291, %298 : vector<8x32xf32>
    %cst_97 = arith.constant dense<0.000000e+00> : vector<8x256xf32>
    %300 = tpu.matmul %299, %289, %cst_97 {dimension_numbers = #tpu.dot_dimension_numbers<[1], [0], [0], [1], [0, 0, 1, 1], [], []>} : vector<8x32xf32>, vector<32x256xf32>, vector<8x256xf32> -> vector<8x256xf32>
    %cst_98 = arith.constant dense<0xFF800000> : vector<256xf32>
    %301 = vector.multi_reduction <maximumf>, %300, %cst_98 [0] : vector<8x256xf32> to vector<256xf32>
    %302 = vector.shape_cast %301 : vector<256xf32> to vector<1x256xf32>
    %303 = vector.broadcast %302 : vector<1x256xf32> to vector<8x256xf32>
    %304 = arith.subf %300, %303 : vector<8x256xf32>
    %305 = math.exp %304 : vector<8x256xf32>
    %cst_99 = arith.constant dense<0.000000e+00> : vector<256xf32>
    %306 = vector.multi_reduction <add>, %305, %cst_99 [0] : vector<8x256xf32> to vector<256xf32>
    %307 = vector.shape_cast %306 : vector<256xf32> to vector<1x256xf32>
    %308 = vector.broadcast %307 : vector<1x256xf32> to vector<8x256xf32>
    %309 = arith.divf %305, %308 : vector<8x256xf32>
    %cst_100 = arith.constant 2.000000e+01 : f32
    %310 = vector.broadcast %cst_100 : f32 to vector<8x256xf32>
    %311 = arith.mulf %309, %310 : vector<8x256xf32>
    %312 = math.exp %311 : vector<8x256xf32>
    %cst_101 = arith.constant dense<0.000000e+00> : vector<8xf32>
    %313 = vector.multi_reduction <add>, %312, %cst_101 [1] : vector<8x256xf32> to vector<8xf32>
    %314 = vector.shape_cast %313 : vector<8xf32> to vector<8x1xf32>
    %cst_102 = arith.constant dense<0.000000e+00> : vector<1xf32>
    %315 = vector.multi_reduction <add>, %314, %cst_102 [0] : vector<8x1xf32> to vector<1xf32>
    %316 = vector.shape_cast %315 : vector<1xf32> to vector<1x1xf32>
    %317 = vector.broadcast %316 : vector<1x1xf32> to vector<8x256xf32>
    %318 = arith.divf %312, %317 : vector<8x256xf32>
    %cst_103 = arith.constant dense<0.000000e+00> : vector<8xf32>
    %319 = vector.multi_reduction <add>, %318, %cst_103 [1] : vector<8x256xf32> to vector<8xf32>
    %320 = vector.shape_cast %319 : vector<8xf32> to vector<8x1xf32>
    %cst_104 = arith.constant 8.000000e+00 : f32
    %321 = vector.broadcast %cst_104 : f32 to vector<8x1xf32>
    %322 = arith.mulf %320, %321 : vector<8x1xf32>
    %323 = vector.broadcast %322 : vector<8x1xf32> to vector<8x256xf32>
    %324 = arith.divf %318, %323 : vector<8x256xf32>
    %cst_105 = arith.constant dense<0.000000e+00> : vector<256xf32>
    %325 = vector.multi_reduction <add>, %324, %cst_105 [0] : vector<8x256xf32> to vector<256xf32>
    %326 = vector.shape_cast %325 : vector<256xf32> to vector<1x256xf32>
    %cst_106 = arith.constant 2.560000e+02 : f32
    %327 = vector.broadcast %cst_106 : f32 to vector<1x256xf32>
    %328 = arith.mulf %326, %327 : vector<1x256xf32>
    %329 = vector.broadcast %328 : vector<1x256xf32> to vector<8x256xf32>
    %330 = arith.divf %324, %329 : vector<8x256xf32>
    %cst_107 = arith.constant dense<0.000000e+00> : vector<8xf32>
    %331 = vector.multi_reduction <add>, %330, %cst_107 [1] : vector<8x256xf32> to vector<8xf32>
    %332 = vector.shape_cast %331 : vector<8xf32> to vector<8x1xf32>
    %cst_108 = arith.constant 8.000000e+00 : f32
    %333 = vector.broadcast %cst_108 : f32 to vector<8x1xf32>
    %334 = arith.mulf %332, %333 : vector<8x1xf32>
    %335 = vector.broadcast %334 : vector<8x1xf32> to vector<8x256xf32>
    %336 = arith.divf %330, %335 : vector<8x256xf32>
    %cst_109 = arith.constant dense<0.000000e+00> : vector<256xf32>
    %337 = vector.multi_reduction <add>, %336, %cst_109 [0] : vector<8x256xf32> to vector<256xf32>
    %338 = vector.shape_cast %337 : vector<256xf32> to vector<1x256xf32>
    %cst_110 = arith.constant 2.560000e+02 : f32
    %339 = vector.broadcast %cst_110 : f32 to vector<1x256xf32>
    %340 = arith.mulf %338, %339 : vector<1x256xf32>
    %341 = vector.broadcast %340 : vector<1x256xf32> to vector<8x256xf32>
    %342 = arith.divf %336, %341 : vector<8x256xf32>
    %cst_111 = arith.constant dense<0.000000e+00> : vector<8xf32>
    %343 = vector.multi_reduction <add>, %342, %cst_111 [1] : vector<8x256xf32> to vector<8xf32>
    %344 = vector.shape_cast %343 : vector<8xf32> to vector<8x1xf32>
    %cst_112 = arith.constant 8.000000e+00 : f32
    %345 = vector.broadcast %cst_112 : f32 to vector<8x1xf32>
    %346 = arith.mulf %344, %345 : vector<8x1xf32>
    %347 = vector.broadcast %346 : vector<8x1xf32> to vector<8x256xf32>
    %348 = arith.divf %342, %347 : vector<8x256xf32>
    %cst_113 = arith.constant dense<0.000000e+00> : vector<256xf32>
    %349 = vector.multi_reduction <add>, %348, %cst_113 [0] : vector<8x256xf32> to vector<256xf32>
    %350 = vector.shape_cast %349 : vector<256xf32> to vector<1x256xf32>
    %351 = vector.broadcast %350 : vector<1x256xf32> to vector<8x256xf32>
    %352 = arith.divf %348, %351 : vector<8x256xf32>
    %cst_114 = arith.constant dense<0xFF800000> : vector<256xf32>
    %353 = vector.multi_reduction <maximumf>, %352, %cst_114 [0] : vector<8x256xf32> to vector<256xf32>
    %354 = vector.shape_cast %353 : vector<256xf32> to vector<1x256xf32>
    %355 = vector.broadcast %354 : vector<1x256xf32> to vector<8x256xf32>
    %356 = arith.cmpf oeq, %352, %355 : vector<8x256xf32>
    %c8_i32_115 = arith.constant 8 : i32
    %357 = vector.broadcast %c8_i32_115 : i32 to vector<8x256xi32>
    %358 = arith.select %356, %34, %357 : vector<8x256xi1>, vector<8x256xi32>
    %cst_116 = arith.constant dense<2147483647> : vector<256xi32>
    %359 = vector.multi_reduction <minsi>, %358, %cst_116 [0] : vector<8x256xi32> to vector<256xi32>
    %360 = vector.shape_cast %359 : vector<256xi32> to vector<1x256xi32>
    %361 = vector.broadcast %360 : vector<1x256xi32> to vector<8x256xi32>
    %362 = arith.cmpi eq, %34, %361 : vector<8x256xi32>
    %363 = arith.extui %362 : vector<8x256xi1> to vector<8x256xi32>
    %364 = arith.sitofp %363 : vector<8x256xi32> to vector<8x256xf32>
    %365 = arith.truncf %364 : vector<8x256xf32> to vector<8x256xbf16>
    %366 = arith.truncf %281 : vector<32x256xf32> to vector<32x256xbf16>
    %cst_117 = arith.constant dense<0.000000e+00> : vector<8x32xf32>
    %367 = tpu.matmul %365, %366, %cst_117 {dimension_numbers = #tpu.dot_dimension_numbers<[1], [1], [0], [0], [0, 0, 1, 0], [], []>} : vector<8x256xbf16>, vector<32x256xbf16>, vector<8x32xf32> -> vector<8x32xf32>
    %cst_118 = arith.constant dense<0.000000e+00> : vector<8xf32>
    %368 = vector.multi_reduction <add>, %364, %cst_118 [1] : vector<8x256xf32> to vector<8xf32>
    %369 = vector.shape_cast %368 : vector<8xf32> to vector<8x1xf32>
    %cst_119 = arith.constant 1.000000e+00 : f32
    %370 = vector.broadcast %cst_119 : f32 to vector<8x1xf32>
    %371 = arith.maximumf %369, %370 : vector<8x1xf32>
    %372 = vector.broadcast %371 : vector<8x1xf32> to vector<8x32xf32>
    %373 = arith.divf %367, %372 : vector<8x32xf32>
    %374 = arith.mulf %373, %373 : vector<8x32xf32>
    %cst_120 = arith.constant dense<0.000000e+00> : vector<8xf32>
    %375 = vector.multi_reduction <add>, %374, %cst_120 [1] : vector<8x32xf32> to vector<8xf32>
    %376 = vector.shape_cast %375 : vector<8xf32> to vector<8x1xf32>
    %cst_121 = arith.constant 9.99999996E-13 : f32
    %377 = vector.broadcast %cst_121 : f32 to vector<8x1xf32>
    %378 = arith.addf %376, %377 : vector<8x1xf32>
    %379 = math.rsqrt %378 : vector<8x1xf32>
    %380 = vector.broadcast %379 : vector<8x1xf32> to vector<8x32xf32>
    %381 = arith.mulf %373, %380 : vector<8x32xf32>
    %cst_122 = arith.constant dense<0.000000e+00> : vector<8x256xf32>
    %382 = tpu.matmul %381, %289, %cst_122 {dimension_numbers = #tpu.dot_dimension_numbers<[1], [0], [0], [1], [0, 0, 1, 1], [], []>} : vector<8x32xf32>, vector<32x256xf32>, vector<8x256xf32> -> vector<8x256xf32>
    %cst_123 = arith.constant dense<0xFF800000> : vector<256xf32>
    %383 = vector.multi_reduction <maximumf>, %382, %cst_123 [0] : vector<8x256xf32> to vector<256xf32>
    %384 = vector.shape_cast %383 : vector<256xf32> to vector<1x256xf32>
    %385 = vector.broadcast %384 : vector<1x256xf32> to vector<8x256xf32>
    %386 = arith.subf %382, %385 : vector<8x256xf32>
    %387 = math.exp %386 : vector<8x256xf32>
    %cst_124 = arith.constant dense<0.000000e+00> : vector<256xf32>
    %388 = vector.multi_reduction <add>, %387, %cst_124 [0] : vector<8x256xf32> to vector<256xf32>
    %389 = vector.shape_cast %388 : vector<256xf32> to vector<1x256xf32>
    %390 = vector.broadcast %389 : vector<1x256xf32> to vector<8x256xf32>
    %391 = arith.divf %387, %390 : vector<8x256xf32>
    %cst_125 = arith.constant 2.000000e+01 : f32
    %392 = vector.broadcast %cst_125 : f32 to vector<8x256xf32>
    %393 = arith.mulf %391, %392 : vector<8x256xf32>
    %394 = math.exp %393 : vector<8x256xf32>
    %cst_126 = arith.constant dense<0.000000e+00> : vector<8xf32>
    %395 = vector.multi_reduction <add>, %394, %cst_126 [1] : vector<8x256xf32> to vector<8xf32>
    %396 = vector.shape_cast %395 : vector<8xf32> to vector<8x1xf32>
    %cst_127 = arith.constant dense<0.000000e+00> : vector<1xf32>
    %397 = vector.multi_reduction <add>, %396, %cst_127 [0] : vector<8x1xf32> to vector<1xf32>
    %398 = vector.shape_cast %397 : vector<1xf32> to vector<1x1xf32>
    %399 = vector.broadcast %398 : vector<1x1xf32> to vector<8x256xf32>
    %400 = arith.divf %394, %399 : vector<8x256xf32>
    %cst_128 = arith.constant dense<0.000000e+00> : vector<8xf32>
    %401 = vector.multi_reduction <add>, %400, %cst_128 [1] : vector<8x256xf32> to vector<8xf32>
    %402 = vector.shape_cast %401 : vector<8xf32> to vector<8x1xf32>
    %cst_129 = arith.constant 8.000000e+00 : f32
    %403 = vector.broadcast %cst_129 : f32 to vector<8x1xf32>
    %404 = arith.mulf %402, %403 : vector<8x1xf32>
    %405 = vector.broadcast %404 : vector<8x1xf32> to vector<8x256xf32>
    %406 = arith.divf %400, %405 : vector<8x256xf32>
    %cst_130 = arith.constant dense<0.000000e+00> : vector<256xf32>
    %407 = vector.multi_reduction <add>, %406, %cst_130 [0] : vector<8x256xf32> to vector<256xf32>
    %408 = vector.shape_cast %407 : vector<256xf32> to vector<1x256xf32>
    %cst_131 = arith.constant 2.560000e+02 : f32
    %409 = vector.broadcast %cst_131 : f32 to vector<1x256xf32>
    %410 = arith.mulf %408, %409 : vector<1x256xf32>
    %411 = vector.broadcast %410 : vector<1x256xf32> to vector<8x256xf32>
    %412 = arith.divf %406, %411 : vector<8x256xf32>
    %cst_132 = arith.constant dense<0.000000e+00> : vector<8xf32>
    %413 = vector.multi_reduction <add>, %412, %cst_132 [1] : vector<8x256xf32> to vector<8xf32>
    %414 = vector.shape_cast %413 : vector<8xf32> to vector<8x1xf32>
    %cst_133 = arith.constant 8.000000e+00 : f32
    %415 = vector.broadcast %cst_133 : f32 to vector<8x1xf32>
    %416 = arith.mulf %414, %415 : vector<8x1xf32>
    %417 = vector.broadcast %416 : vector<8x1xf32> to vector<8x256xf32>
    %418 = arith.divf %412, %417 : vector<8x256xf32>
    %cst_134 = arith.constant dense<0.000000e+00> : vector<256xf32>
    %419 = vector.multi_reduction <add>, %418, %cst_134 [0] : vector<8x256xf32> to vector<256xf32>
    %420 = vector.shape_cast %419 : vector<256xf32> to vector<1x256xf32>
    %cst_135 = arith.constant 2.560000e+02 : f32
    %421 = vector.broadcast %cst_135 : f32 to vector<1x256xf32>
    %422 = arith.mulf %420, %421 : vector<1x256xf32>
    %423 = vector.broadcast %422 : vector<1x256xf32> to vector<8x256xf32>
    %424 = arith.divf %418, %423 : vector<8x256xf32>
    %cst_136 = arith.constant dense<0.000000e+00> : vector<8xf32>
    %425 = vector.multi_reduction <add>, %424, %cst_136 [1] : vector<8x256xf32> to vector<8xf32>
    %426 = vector.shape_cast %425 : vector<8xf32> to vector<8x1xf32>
    %cst_137 = arith.constant 8.000000e+00 : f32
    %427 = vector.broadcast %cst_137 : f32 to vector<8x1xf32>
    %428 = arith.mulf %426, %427 : vector<8x1xf32>
    %429 = vector.broadcast %428 : vector<8x1xf32> to vector<8x256xf32>
    %430 = arith.divf %424, %429 : vector<8x256xf32>
    %cst_138 = arith.constant dense<0.000000e+00> : vector<256xf32>
    %431 = vector.multi_reduction <add>, %430, %cst_138 [0] : vector<8x256xf32> to vector<256xf32>
    %432 = vector.shape_cast %431 : vector<256xf32> to vector<1x256xf32>
    %433 = vector.broadcast %432 : vector<1x256xf32> to vector<8x256xf32>
    %434 = arith.divf %430, %433 : vector<8x256xf32>
    %cst_139 = arith.constant dense<0xFF800000> : vector<256xf32>
    %435 = vector.multi_reduction <maximumf>, %434, %cst_139 [0] : vector<8x256xf32> to vector<256xf32>
    %436 = vector.shape_cast %435 : vector<256xf32> to vector<1x256xf32>
    %437 = vector.broadcast %436 : vector<1x256xf32> to vector<8x256xf32>
    %438 = arith.cmpf oeq, %434, %437 : vector<8x256xf32>
    %c8_i32_140 = arith.constant 8 : i32
    %439 = vector.broadcast %c8_i32_140 : i32 to vector<8x256xi32>
    %440 = arith.select %438, %34, %439 : vector<8x256xi1>, vector<8x256xi32>
    %cst_141 = arith.constant dense<2147483647> : vector<256xi32>
    %441 = vector.multi_reduction <minsi>, %440, %cst_141 [0] : vector<8x256xi32> to vector<256xi32>
    %442 = vector.shape_cast %441 : vector<256xi32> to vector<1x256xi32>
    %443 = vector.broadcast %442 : vector<1x256xi32> to vector<8x256xi32>
    %444 = arith.cmpi eq, %34, %443 : vector<8x256xi32>
    %445 = arith.extui %444 : vector<8x256xi1> to vector<8x256xi32>
    %446 = arith.sitofp %445 : vector<8x256xi32> to vector<8x256xf32>
    %447 = arith.truncf %446 : vector<8x256xf32> to vector<8x256xbf16>
    %448 = arith.truncf %281 : vector<32x256xf32> to vector<32x256xbf16>
    %cst_142 = arith.constant dense<0.000000e+00> : vector<8x32xf32>
    %449 = tpu.matmul %447, %448, %cst_142 {dimension_numbers = #tpu.dot_dimension_numbers<[1], [1], [0], [0], [0, 0, 1, 0], [], []>} : vector<8x256xbf16>, vector<32x256xbf16>, vector<8x32xf32> -> vector<8x32xf32>
    %cst_143 = arith.constant dense<0.000000e+00> : vector<8xf32>
    %450 = vector.multi_reduction <add>, %446, %cst_143 [1] : vector<8x256xf32> to vector<8xf32>
    %451 = vector.shape_cast %450 : vector<8xf32> to vector<8x1xf32>
    %cst_144 = arith.constant 1.000000e+00 : f32
    %452 = vector.broadcast %cst_144 : f32 to vector<8x1xf32>
    %453 = arith.maximumf %451, %452 : vector<8x1xf32>
    %454 = vector.broadcast %453 : vector<8x1xf32> to vector<8x32xf32>
    %455 = arith.divf %449, %454 : vector<8x32xf32>
    %456 = arith.mulf %455, %455 : vector<8x32xf32>
    %cst_145 = arith.constant dense<0.000000e+00> : vector<8xf32>
    %457 = vector.multi_reduction <add>, %456, %cst_145 [1] : vector<8x32xf32> to vector<8xf32>
    %458 = vector.shape_cast %457 : vector<8xf32> to vector<8x1xf32>
    %cst_146 = arith.constant 9.99999996E-13 : f32
    %459 = vector.broadcast %cst_146 : f32 to vector<8x1xf32>
    %460 = arith.addf %458, %459 : vector<8x1xf32>
    %461 = math.rsqrt %460 : vector<8x1xf32>
    %462 = vector.broadcast %461 : vector<8x1xf32> to vector<8x32xf32>
    %463 = arith.mulf %455, %462 : vector<8x32xf32>
    %cst_147 = arith.constant dense<0.000000e+00> : vector<8x256xf32>
    %464 = tpu.matmul %463, %289, %cst_147 {dimension_numbers = #tpu.dot_dimension_numbers<[1], [0], [0], [1], [0, 0, 1, 1], [], []>} : vector<8x32xf32>, vector<32x256xf32>, vector<8x256xf32> -> vector<8x256xf32>
    %cst_148 = arith.constant dense<0xFF800000> : vector<256xf32>
    %465 = vector.multi_reduction <maximumf>, %464, %cst_148 [0] : vector<8x256xf32> to vector<256xf32>
    %466 = vector.shape_cast %465 : vector<256xf32> to vector<1x256xf32>
    %467 = vector.broadcast %466 : vector<1x256xf32> to vector<8x256xf32>
    %468 = arith.subf %464, %467 : vector<8x256xf32>
    %469 = math.exp %468 : vector<8x256xf32>
    %cst_149 = arith.constant dense<0.000000e+00> : vector<256xf32>
    %470 = vector.multi_reduction <add>, %469, %cst_149 [0] : vector<8x256xf32> to vector<256xf32>
    %471 = vector.shape_cast %470 : vector<256xf32> to vector<1x256xf32>
    %472 = vector.broadcast %471 : vector<1x256xf32> to vector<8x256xf32>
    %473 = arith.divf %469, %472 : vector<8x256xf32>
    %cst_150 = arith.constant 2.000000e+01 : f32
    %474 = vector.broadcast %cst_150 : f32 to vector<8x256xf32>
    %475 = arith.mulf %473, %474 : vector<8x256xf32>
    %476 = math.exp %475 : vector<8x256xf32>
    %cst_151 = arith.constant dense<0.000000e+00> : vector<8xf32>
    %477 = vector.multi_reduction <add>, %476, %cst_151 [1] : vector<8x256xf32> to vector<8xf32>
    %478 = vector.shape_cast %477 : vector<8xf32> to vector<8x1xf32>
    %cst_152 = arith.constant dense<0.000000e+00> : vector<1xf32>
    %479 = vector.multi_reduction <add>, %478, %cst_152 [0] : vector<8x1xf32> to vector<1xf32>
    %480 = vector.shape_cast %479 : vector<1xf32> to vector<1x1xf32>
    %481 = vector.broadcast %480 : vector<1x1xf32> to vector<8x256xf32>
    %482 = arith.divf %476, %481 : vector<8x256xf32>
    %cst_153 = arith.constant dense<0.000000e+00> : vector<8xf32>
    %483 = vector.multi_reduction <add>, %482, %cst_153 [1] : vector<8x256xf32> to vector<8xf32>
    %484 = vector.shape_cast %483 : vector<8xf32> to vector<8x1xf32>
    %cst_154 = arith.constant 8.000000e+00 : f32
    %485 = vector.broadcast %cst_154 : f32 to vector<8x1xf32>
    %486 = arith.mulf %484, %485 : vector<8x1xf32>
    %487 = vector.broadcast %486 : vector<8x1xf32> to vector<8x256xf32>
    %488 = arith.divf %482, %487 : vector<8x256xf32>
    %cst_155 = arith.constant dense<0.000000e+00> : vector<256xf32>
    %489 = vector.multi_reduction <add>, %488, %cst_155 [0] : vector<8x256xf32> to vector<256xf32>
    %490 = vector.shape_cast %489 : vector<256xf32> to vector<1x256xf32>
    %cst_156 = arith.constant 2.560000e+02 : f32
    %491 = vector.broadcast %cst_156 : f32 to vector<1x256xf32>
    %492 = arith.mulf %490, %491 : vector<1x256xf32>
    %493 = vector.broadcast %492 : vector<1x256xf32> to vector<8x256xf32>
    %494 = arith.divf %488, %493 : vector<8x256xf32>
    %cst_157 = arith.constant dense<0.000000e+00> : vector<8xf32>
    %495 = vector.multi_reduction <add>, %494, %cst_157 [1] : vector<8x256xf32> to vector<8xf32>
    %496 = vector.shape_cast %495 : vector<8xf32> to vector<8x1xf32>
    %cst_158 = arith.constant 8.000000e+00 : f32
    %497 = vector.broadcast %cst_158 : f32 to vector<8x1xf32>
    %498 = arith.mulf %496, %497 : vector<8x1xf32>
    %499 = vector.broadcast %498 : vector<8x1xf32> to vector<8x256xf32>
    %500 = arith.divf %494, %499 : vector<8x256xf32>
    %cst_159 = arith.constant dense<0.000000e+00> : vector<256xf32>
    %501 = vector.multi_reduction <add>, %500, %cst_159 [0] : vector<8x256xf32> to vector<256xf32>
    %502 = vector.shape_cast %501 : vector<256xf32> to vector<1x256xf32>
    %cst_160 = arith.constant 2.560000e+02 : f32
    %503 = vector.broadcast %cst_160 : f32 to vector<1x256xf32>
    %504 = arith.mulf %502, %503 : vector<1x256xf32>
    %505 = vector.broadcast %504 : vector<1x256xf32> to vector<8x256xf32>
    %506 = arith.divf %500, %505 : vector<8x256xf32>
    %cst_161 = arith.constant dense<0.000000e+00> : vector<8xf32>
    %507 = vector.multi_reduction <add>, %506, %cst_161 [1] : vector<8x256xf32> to vector<8xf32>
    %508 = vector.shape_cast %507 : vector<8xf32> to vector<8x1xf32>
    %cst_162 = arith.constant 8.000000e+00 : f32
    %509 = vector.broadcast %cst_162 : f32 to vector<8x1xf32>
    %510 = arith.mulf %508, %509 : vector<8x1xf32>
    %511 = vector.broadcast %510 : vector<8x1xf32> to vector<8x256xf32>
    %512 = arith.divf %506, %511 : vector<8x256xf32>
    %cst_163 = arith.constant dense<0.000000e+00> : vector<256xf32>
    %513 = vector.multi_reduction <add>, %512, %cst_163 [0] : vector<8x256xf32> to vector<256xf32>
    %514 = vector.shape_cast %513 : vector<256xf32> to vector<1x256xf32>
    %515 = vector.broadcast %514 : vector<1x256xf32> to vector<8x256xf32>
    %516 = arith.divf %512, %515 : vector<8x256xf32>
    %cst_164 = arith.constant dense<0xFF800000> : vector<256xf32>
    %517 = vector.multi_reduction <maximumf>, %516, %cst_164 [0] : vector<8x256xf32> to vector<256xf32>
    %518 = vector.shape_cast %517 : vector<256xf32> to vector<1x256xf32>
    %519 = vector.broadcast %518 : vector<1x256xf32> to vector<8x256xf32>
    %520 = arith.cmpf oeq, %516, %519 : vector<8x256xf32>
    %c8_i32_165 = arith.constant 8 : i32
    %521 = vector.broadcast %c8_i32_165 : i32 to vector<8x256xi32>
    %522 = arith.select %520, %34, %521 : vector<8x256xi1>, vector<8x256xi32>
    %cst_166 = arith.constant dense<2147483647> : vector<256xi32>
    %523 = vector.multi_reduction <minsi>, %522, %cst_166 [0] : vector<8x256xi32> to vector<256xi32>
    %524 = vector.shape_cast %523 : vector<256xi32> to vector<1x256xi32>
    %c0_167 = arith.constant 0 : index
    %c256 = arith.constant 256 : index
    %525 = vector.load %arg8[%c0_167, %c256] : memref<8x512xf32, #tpu.memory_space<vmem>>, vector<8x256xf32>
    tpu.vector_store %arg8[%c0_167, %c256], %516 {strides = array<i32>} : memref<8x512xf32, #tpu.memory_space<vmem>>, vector<8x256xf32>,
    %c0_168 = arith.constant 0 : index
    %c256_169 = arith.constant 256 : index
    %526 = vector.load %arg9[%c0_168, %c256_169] : memref<1x512xi32, #tpu.memory_space<vmem>>, vector<1x256xi32>
    tpu.vector_store %arg9[%c0_168, %c256_169], %524 {strides = array<i32>} : memref<1x512xi32, #tpu.memory_space<vmem>>, vector<1x256xi32>,
    return
  }
  func.func @transform_0(%arg0: i32) -> (i32, i32) {
    %c0_i32 = arith.constant 0 : i32
    %c0_i32_0 = arith.constant 0 : i32
    return %c0_i32, %arg0 : i32, i32
  }
  func.func @transform_1(%arg0: i32) -> (i32, i32) {
    %c0_i32 = arith.constant 0 : i32
    %c0_i32_0 = arith.constant 0 : i32
    %c0_i32_1 = arith.constant 0 : i32
    return %c0_i32, %c0_i32_0 : i32, i32
  }
  func.func @transform_2(%arg0: i32) -> (i32, i32) {
    %c0_i32 = arith.constant 0 : i32
    %c0_i32_0 = arith.constant 0 : i32
    %c0_i32_1 = arith.constant 0 : i32
    return %c0_i32, %c0_i32_0 : i32, i32
  }
  func.func @transform_3(%arg0: i32) -> (i32, i32) {
    %c0_i32 = arith.constant 0 : i32
    %c0_i32_0 = arith.constant 0 : i32
    %c0_i32_1 = arith.constant 0 : i32
    return %c0_i32, %c0_i32_0 : i32, i32
  }
  func.func @transform_4(%arg0: i32) -> (i32, i32) {
    %c0_i32 = arith.constant 0 : i32
    %c0_i32_0 = arith.constant 0 : i32
    %c0_i32_1 = arith.constant 0 : i32
    return %c0_i32, %c0_i32_0 : i32, i32
  }
  func.func @transform_5(%arg0: i32) -> (i32, i32, i32) {
    %c0_i32 = arith.constant 0 : i32
    %c0_i32_0 = arith.constant 0 : i32
    %c0_i32_1 = arith.constant 0 : i32
    return %arg0, %c0_i32, %c0_i32_0 : i32, i32, i32
  }
  func.func @transform_6(%arg0: i32) -> (i32, i32) {
    %c0_i32 = arith.constant 0 : i32
    %c0_i32_0 = arith.constant 0 : i32
    return %c0_i32, %arg0 : i32, i32
  }
  func.func @transform_7(%arg0: i32) -> (i32, i32) {
    %c0_i32 = arith.constant 0 : i32
    %c0_i32_0 = arith.constant 0 : i32
    return %c0_i32, %arg0 : i32, i32
  }
  func.func @transform_8(%arg0: i32) -> (i32, i32) {
    %c0_i32 = arith.constant 0 : i32
    %c0_i32_0 = arith.constant 0 : i32
    return %c0_i32, %arg0 : i32, i32
  }
}

</mosaic_0001>

<bundles_post_ra>
// kernel: tpu_custom_call.1
= control target key start
LH: loop header
LB: loop body
LE: loop exit
PB: predicated region body
PF: predicated region fallthrough
CT: control target
= control target key end

     0   :  { %14 = vsyncpa [#allocation3], 0  ;;  %v2731_v2 = vmov 0   ;;  %s3286_s0 = inlined_call_operand.vmem [shape: f32[4,512], index: 0, kind: input, shape index: {}]   ;;  %s3287_s1 = inlined_call_operand.vmem [shape: f32[32,4], index: 1, kind: input, shape index: {}]   ;;  %s3288_s2 = inlined_call_operand.vmem [shape: f32[32,1], index: 2, kind: input, shape index: {}]   ;;  %s3289_s3 = inlined_call_operand.vmem [shape: f32[4,32], index: 3, kind: input, shape index: {}]   ;;  %s3290_s4 = inlined_call_operand.vmem [shape: f32[4,1], index: 4, kind: input, shape index: {}]   ;;  %s3291_s5 = inlined_call_operand.vmem [shape: f32[2,8,32], index: 5, kind: input, shape index: {}]   ;;  %s3292_s6 = inlined_call_operand.hbm [shape: f32[4,512], index: 6, kind: output, shape index: {0}]   ;;  %s3293_s7 = inlined_call_operand.hbm [shape: f32[8,512], index: 7, kind: output, shape index: {1}]   ;;  %s3294_s8 = inlined_call_operand.hbm [shape: s32[1,512], index: 8, kind: output, shape index: {2}]  }
   0x1   :  { %v33_v0 = vld [vmem:[%s3287_s1 + $0x10] sm:$0xff]  ;;  %v31_v1 = vld [vmem:[%s3287_s1] sm:$0xff]  ;;  %2434 = vset.pattern.permute.xlu1 %v2731_v2  ;;  %2433 = vset.pattern.permute.xlu0 %v2731_v2  ;;  %v32_v4 = vld [vmem:[%s3287_s1 + $0x8] sm:$0xff] }
   0x2   :  { %47 = vperm.xlu1 %2434, %v33_v0   ;;  %37 = vperm.xlu0 %2433, %v31_v1   ;;  %v109_v3 = vld [vmem:[%s3288_s2] sm:$0xff] }
   0x3   :  { %15 = vsyncpa [#allocation5], 0  ;;  %v110_v5 = vld [vmem:[%s3288_s2 + $0x8] sm:$0xff]  ;;  %v2732_v6 = vmov 1   ;;  %v34_v7 = vld [vmem:[%s3287_s1 + $0x18] sm:$0xff]  ;;  %v2733_v9 = vmov 2   ;;  %v57_v16 = vlaneseq }
   0x4   :  { %v111_v8 = vld [vmem:[%s3288_s2 + $0x10] sm:$0xff]  ;;  %v112_v10 = vld [vmem:[%s3288_s2 + $0x18] sm:$0xff]  ;;  %v2734_v11 = vmov 3   ;;  %v2735_v12 = vmov 0.0   ;;  %v2815_v13 = vld [vmem:[%s3291_s5] sm:$0xff]  ;;  %vm408_vm0 = vcmask 261120  }
   0x5   :  { %547 = vmatprep.mubr.f32.mxu1 %v2735_v12  ;;  %476 = vmatprep.mubr.f32.mxu0 %v2735_v12  ;;  %v605_v14 = vmul.f32 %v2815_v13, %v2815_v13  ;;  %v2821_v17 = vshrl.u32 %v57_v16, 7  ;;  %v29_v24 = vld [vmem:[%s3286_s0] sm:$0xff]  ;;  %v30_v25 = vld [vmem:[%s3286_s0 + $0x8] sm:$0xff] }
   0x6   :  { %115 = vperm.xlu1 %2434, %v109_v3   ;;  %42 = vperm.xlu0 %2433, %v32_v4  }
   0x7   :  { %v606_v15 = vsel %vm408_vm0, %v605_v14, 0.0  ;;  %v59_v20 = vsub.s32 0, %v2821_v17  ;;  %v63_v21 = vsub.s32 4, %v2821_v17  ;;  %v167_v26 = vsub.s32 1, %v2821_v17 }
   0x8   :  { %v171_v27 = vsub.s32 5, %v2821_v17  ;;  %v251_v28 = vsub.s32 2, %v2821_v17  ;;  %v255_v29 = vsub.s32 6, %v2821_v17  ;;  %v335_v30 = vsub.s32 3, %v2821_v17 }
   0x9   :  { %v339_v31 = vsub.s32 7, %v2821_v17  ;;  %v60_v32 = vrot.slane %v29_v24, %v59_v20  ;;  %v64_v33 = vrot.slane %v29_v24, %v63_v21  ;;  %v68_v34 = vrot.slane %v30_v25, %v59_v20 }
   0xa   :  { %2435 = vset.pattern.permute.xlu1 %v2732_v6  ;;  %120 = vperm.xlu0 %2433, %v110_v5   ;;  %v72_v35 = vrot.slane %v30_v25, %v63_v21  ;;  %v168_v38 = vrot.slane %v29_v24, %v167_v26  ;;  %v172_v39 = vrot.slane %v29_v24, %v171_v27 }
   0xb   :  { %150 = vperm.xlu1 %2435, %v31_v1   ;;  %v176_v40 = vrot.slane %v30_v25, %v167_v26  ;;  %v180_v41 = vrot.slane %v30_v25, %v171_v27  ;;  %v252_v42 = vrot.slane %v29_v24, %v251_v28  ;;  %v256_v43 = vrot.slane %v29_v24, %v255_v29 }
   0xc   :  { %v260_v44 = vrot.slane %v30_v25, %v251_v28  ;;  %v264_v45 = vrot.slane %v30_v25, %v255_v29  ;;  %v336_v46 = vrot.slane %v29_v24, %v335_v30  ;;  %v340_v47 = vrot.slane %v29_v24, %v339_v31 }
   0xd   :  { %v80_v48 = vrot.slane %v60_v32, %v59_v20  ;;  %v84_v49 = vrot.slane %v64_v33, %v59_v20  ;;  %v88_v50 = vrot.slane %v68_v34, %v59_v20  ;;  %v92_v51 = vrot.slane %v72_v35, %v59_v20 }
   0xe   :  { %2436 = vset.pattern.permute.xlu0 %v2732_v6  ;;  %v2841_v52 = vrot.slane %v168_v38, %v167_v26  ;;  %v2843_v53 = vrot.slane %v172_v39, %v167_v26  ;;  %v344_v55 = vrot.slane %v30_v25, %v335_v30  ;;  %v348_v56 = vrot.slane %v30_v25, %v339_v31 }
   0xf   :  { %2437 = vset.pattern.permute.xlu1 %v2731_v2  ;;  %154 = vperm.xlu0 %2436, %v32_v4   ;;  %v2845_v57 = vrot.slane %v176_v40, %v167_v26  ;;  %v2847_v58 = vrot.slane %v180_v41, %v167_v26  ;;  %v2849_v60 = vrot.slane %v252_v42, %v251_v28 }
  0x10   :  { %52 = vperm.xlu1 %2437, %v34_v7   ;;  %v2851_v61 = vrot.slane %v256_v43, %v251_v28  ;;  %v2853_v62 = vrot.slane %v260_v44, %v251_v28  ;;  %v2855_v63 = vrot.slane %v264_v45, %v251_v28 }
  0x13   :  { %158 = vperm.xlu0 %2436, %v33_v0  }
  0x14   :  { %125 = vperm.xlu1 %2437, %v111_v8  }
  0x17   :  { %2439 = vset.pattern.permute.xlu0 %v2733_v9 }
  0x18   :  { %2438 = vset.pattern.permute.xlu1 %v2733_v9  ;;  %238 = vperm.xlu0 %2439, %v32_v4  }
  0x19   :  { %234 = vperm.xlu1 %2438, %v31_v1  }
  0x1c   :  { %242 = vperm.xlu0 %2439, %v33_v0  }
  0x1d   :  { %2440 = vset.pattern.permute.xlu1 %v2731_v2 }
  0x1e   :  { %130 = vperm.xlu1 %2440, %v112_v10   ;;  %v2863_v10 = vrot.slane %v348_v56, %v335_v30 }
  0x20   :  { %2443 = vset.pattern.permute.xlu0 %v2734_v11 }
  0x21   :  { %322 = vperm.xlu0 %2443, %v32_v4  }
  0x22   :  { %2441 = vset.pattern.permute.xlu1 %v2732_v6 }
  0x23   :  { %162 = vperm.xlu1 %2441, %v34_v7  }
  0x25   :  { %330 = vperm.xlu0 %2443, %v34_v7  }
  0x27   :  { %2442 = vset.pattern.permute.xlu1 %v2734_v11 }
  0x28   :  { %318 = vperm.xlu1 %2442, %v31_v1   ;;  %v2859_v1 = vrot.slane %v340_v47, %v335_v30 }
  0x29   :  { %2446 = vset.pattern.permute.xlu0 %v2731_v2 }
  0x2c   :  { %2444 = vset.pattern.permute.xlu1 %v2733_v9  ;;  %v2861_v9 = vrot.slane %v344_v55, %v335_v30 }
  0x2d   :  { %246 = vperm.xlu1 %2444, %v34_v7  }
  0x31   :  { %2445 = vset.pattern.permute.xlu1 %v2734_v11 }
  0x32   :  { %326 = vperm.xlu1 %2445, %v33_v0   ;;  %v2857_v0 = vrot.slane %v336_v46, %v335_v30 }
  0x56   :  { %607 = vadd.xlane.f32.xlu1 %v606_v15 }
  0x7d   :  { %v2823_v18 = vpop.permute.xlu1 %47  ;;  %v38_v19 = vpop.permute.xlu0 %37 }
  0x7e   :  { %v93_v2 = vmul.f32 %v80_v48, %v38_v19  ;;  %v94_v3 = vmul.f32 %v84_v49, %v38_v19  ;;  %v95_v4 = vmul.f32 %v88_v50, %v38_v19  ;;  %v96_v5 = vmul.f32 %v92_v51, %v38_v19 }
  0x7f   :  { %v101_v11 = vmul.f32 %v80_v48, %v2823_v18  ;;  %v102_v14 = vmul.f32 %v84_v49, %v2823_v18  ;;  %v103_v34 = vmul.f32 %v88_v50, %v2823_v18  ;;  %v104_v35 = vmul.f32 %v92_v51, %v2823_v18 }
  0x81   :  { %v2827_v22 = vpop.permute.xlu1 %115  ;;  %v43_v23 = vpop.permute.xlu0 %42 }
  0x82   :  { %v97_v6 = vmul.f32 %v80_v48, %v43_v23  ;;  %v98_v7 = vmul.f32 %v84_v49, %v43_v23  ;;  %v99_v15 = vmul.f32 %v88_v50, %v43_v23  ;;  %v100_v20 = vmul.f32 %v92_v51, %v43_v23 }
  0x83   :  { %v133_v27 = vadd.f32 %v2827_v22, %v93_v2  ;;  %v134_v28 = vadd.f32 %v2827_v22, %v94_v3  ;;  %v135_v29 = vadd.f32 %v2827_v22, %v95_v4  ;;  %v136_v30 = vadd.f32 %v2827_v22, %v96_v5 }
  0x85   :  { %v121_v36 = vpop.permute.xlu0 %120 }
  0x86   :  { %v151_v37 = vpop.permute.xlu1 %150  ;;  %v137_v31 = vadd.f32 %v121_v36, %v97_v6  ;;  %v138_v32 = vadd.f32 %v121_v36, %v98_v7  ;;  %v139_v38 = vadd.f32 %v121_v36, %v99_v15 }
  0x87   :  { %v201_v24 = vmul.f32 %v2841_v52, %v151_v37  ;;  %v202_v25 = vmul.f32 %v2843_v53, %v151_v37  ;;  %v203_v19 = vmul.f32 %v2845_v57, %v151_v37  ;;  %v204_v26 = vmul.f32 %v2847_v58, %v151_v37 }
  0x88   :  { %v140_v37 = vadd.f32 %v121_v36, %v100_v20 }
  0x89   :  { %v217_v40 = vadd.f32 %v201_v24, %v133_v27  ;;  %v218_v41 = vadd.f32 %v202_v25, %v134_v28  ;;  %v219_v42 = vadd.f32 %v203_v19, %v135_v29  ;;  %v220_v43 = vadd.f32 %v204_v26, %v136_v30 }
  0x8a   :  { %v155_v54 = vpop.permute.xlu0 %154 }
  0x8b   :  { %v53_v59 = vpop.permute.xlu1 %52  ;;  %v205_v23 = vmul.f32 %v2841_v52, %v155_v54  ;;  %v206_v33 = vmul.f32 %v2843_v53, %v155_v54  ;;  %v207_v46 = vmul.f32 %v2845_v57, %v155_v54  ;;  %v208_v47 = vmul.f32 %v2847_v58, %v155_v54 }
  0x8c   :  { %v105_v45 = vmul.f32 %v80_v48, %v53_v59  ;;  %v106_v22 = vmul.f32 %v84_v49, %v53_v59  ;;  %v107_v55 = vmul.f32 %v88_v50, %v53_v59  ;;  %v108_v56 = vmul.f32 %v92_v51, %v53_v59 }
  0x8d   :  { %v221_v2 = vadd.f32 %v205_v23, %v137_v31  ;;  %v222_v3 = vadd.f32 %v206_v33, %v138_v32  ;;  %v224_v20 = vadd.f32 %v208_v47, %v140_v37 }
  0x8e   :  { %v159_v8 = vpop.permute.xlu0 %158 }
  0x8f   :  { %v126_v21 = vpop.permute.xlu1 %125  ;;  %v209_v36 = vmul.f32 %v2841_v52, %v159_v8  ;;  %v210_v5 = vmul.f32 %v2843_v53, %v159_v8  ;;  %v211_v15 = vmul.f32 %v2845_v57, %v159_v8  ;;  %v212_v48 = vmul.f32 %v2847_v58, %v159_v8 }
  0x90   :  { %v141_v4 = vadd.f32 %v126_v21, %v101_v11  ;;  %v142_v18 = vadd.f32 %v126_v21, %v102_v14  ;;  %v143_v6 = vadd.f32 %v126_v21, %v103_v34  ;;  %v144_v7 = vadd.f32 %v126_v21, %v104_v35 }
  0x91   :  { %v223_v11 = vadd.f32 %v207_v46, %v139_v38 }
  0x92   :  { %v2891_v25 = vadd.f32 %v209_v36, %v141_v4  ;;  %v226_v19 = vadd.f32 %v210_v5, %v142_v18  ;;  %v2895_v27 = vadd.f32 %v211_v15, %v143_v6  ;;  %v228_v28 = vadd.f32 %v212_v48, %v144_v7 }
  0x93   :  { %v239_v39 = vpop.permute.xlu0 %238 }
  0x94   :  { %v235_v44 = vpop.permute.xlu1 %234  ;;  %v289_v54 = vmul.f32 %v2849_v60, %v239_v39  ;;  %v290_v50 = vmul.f32 %v2851_v61, %v239_v39  ;;  %v292_v51 = vmul.f32 %v2855_v63, %v239_v39  ;;  %v291_v14 = vmul.f32 %v2853_v62, %v239_v39 }
  0x95   :  { %v285_v24 = vmul.f32 %v2849_v60, %v235_v44  ;;  %v286_v21 = vmul.f32 %v2851_v61, %v235_v44  ;;  %v287_v8 = vmul.f32 %v2853_v62, %v235_v44  ;;  %v288_v26 = vmul.f32 %v2855_v63, %v235_v44 }
  0x96   :  { %v305_v32 = vadd.f32 %v289_v54, %v221_v2  ;;  %v306_v23 = vadd.f32 %v290_v50, %v222_v3  ;;  %v308_v33 = vadd.f32 %v292_v51, %v224_v20  ;;  %v307_v35 = vadd.f32 %v291_v14, %v223_v11 }
  0x97   :  { %v243_v49 = vpop.permute.xlu0 %242  ;;  %v301_v38 = vadd.f32 %v285_v24, %v217_v40  ;;  %v302_v37 = vadd.f32 %v286_v21, %v218_v41  ;;  %v303_v44 = vadd.f32 %v287_v8, %v219_v42  ;;  %v304_v47 = vadd.f32 %v288_v26, %v220_v43 }
  0x98   :  { %v294_v29 = vmul.f32 %v2851_v61, %v243_v49  ;;  %v296_v30 = vmul.f32 %v2855_v63, %v243_v49  ;;  %v2904_v36 = vmul.f32 %v2849_v60, %v243_v49  ;;  %v2907_v2 = vmul.f32 %v2853_v62, %v243_v49 }
  0x99   :  { %v131_v59 = vpop.permute.xlu1 %130 }
  0x9a   :  { %v2909_v3 = vadd.f32 %v294_v29, %v226_v19  ;;  %v2911_v5 = vadd.f32 %v296_v30, %v228_v28  ;;  %v145_v6 = vadd.f32 %v131_v59, %v105_v45  ;;  %v146_v7 = vadd.f32 %v131_v59, %v106_v22 }
  0x9b   :  { %v147_v15 = vadd.f32 %v131_v59, %v107_v55  ;;  %v148_v20 = vadd.f32 %v131_v59, %v108_v56 }
  0x9c   :  { %v323_v31 = vpop.permute.xlu0 %322 }
  0x9d   :  { %v376_v34 = vmul.f32 %v2863_v10, %v323_v31  ;;  %v375_v46 = vmul.f32 %v2861_v9, %v323_v31  ;;  %v373_v4 = vmul.f32 %v2857_v0, %v323_v31  ;;  %v374_v18 = vmul.f32 %v2859_v1, %v323_v31 }
  0x9e   :  { %v163_v39 = vpop.permute.xlu1 %162 }
  0x9f   :  { %v213_v40 = vmul.f32 %v2841_v52, %v163_v39  ;;  %v214_v41 = vmul.f32 %v2843_v53, %v163_v39  ;;  %v215_v42 = vmul.f32 %v2845_v57, %v163_v39  ;;  %v2916_v43 = vadd.f32 %v376_v34, %v308_v33 }
  0xa0   :  { %v2918_v48 = vadd.f32 %v375_v46, %v307_v35  ;;  %v216_v49 = vmul.f32 %v2847_v58, %v163_v39  ;;  %v2921_v50 = vadd.f32 %v374_v18, %v306_v23  ;;  %v2923_v51 = vadd.f32 %v373_v4, %v305_v32  ;;  %v331_v22 = vpop.permute.xlu0 %330 }
  0xa1   :  { %v229_v55 = vadd.f32 %v213_v40, %v145_v6  ;;  %v230_v11 = vadd.f32 %v214_v41, %v146_v7  ;;  %v231_v14 = vadd.f32 %v215_v42, %v147_v15  ;;  %v1462_v58 = vmul.f32 %v2916_v43, %v2916_v43 }
  0xa2   :  { %v1461_v56 = vmul.f32 %v2918_v48, %v2918_v48  ;;  %v232_v19 = vadd.f32 %v216_v49, %v148_v20  ;;  %v381_v8 = vmul.f32 %v2857_v0, %v331_v22  ;;  %v382_v26 = vmul.f32 %v2859_v1, %v331_v22 }
  0xa3   :  { %v319_v54 = vpop.permute.xlu1 %318  ;;  %v383_v28 = vmul.f32 %v2861_v9, %v331_v22  ;;  %v384_v30 = vmul.f32 %v2863_v10, %v331_v22  ;;  %v569_v39 = vmul.f32 %v2921_v50, %v2921_v50 }
  0xa4   :  { %v369_v52 = vmul.f32 %v2857_v0, %v319_v54  ;;  %v370_v53 = vmul.f32 %v2859_v1, %v319_v54  ;;  %v371_v57 = vmul.f32 %v2861_v9, %v319_v54  ;;  %v372_v45 = vmul.f32 %v2863_v10, %v319_v54 }
  0xa6   :  { %v2933_v59 = vadd.f32 %v370_v53, %v302_v37  ;;  %v2935_v24 = vadd.f32 %v372_v45, %v304_v47  ;;  %v2937_v21 = vadd.f32 %v371_v57, %v303_v44  ;;  %v2945_v32 = vadd.f32 %v369_v52, %v301_v38 }
  0xa7   :  { %v309_v53 = vadd.f32 %v2904_v36, %v2891_v25  ;;  %v311_v57 = vadd.f32 %v2907_v2, %v2895_v27 }
  0xa8   :  { %v247_v29 = vpop.permute.xlu1 %246  ;;  %v1460_v31 = vmul.f32 %v2935_v24, %v2935_v24  ;;  %v1459_v23 = vmul.f32 %v2937_v21, %v2937_v21  ;;  %v567_v46 = vmul.f32 %v2933_v59, %v2933_v59 }
  0xa9   :  { %v297_v33 = vmul.f32 %v2849_v60, %v247_v29  ;;  %v298_v34 = vmul.f32 %v2851_v61, %v247_v29  ;;  %v299_v35 = vmul.f32 %v2853_v62, %v247_v29  ;;  %v300_v37 = vmul.f32 %v2855_v63, %v247_v29 }
  0xaa   :  { %v1476_v44 = vadd.f32 %v1462_v58, %v1460_v31  ;;  %v1467_v38 = vadd.f32 %v1461_v56, %v1459_v23  ;;  %v568_v60 = vmul.f32 %v2923_v51, %v2923_v51  ;;  %v566_v61 = vmul.f32 %v2945_v32, %v2945_v32 }
  0xab   :  { %v313_v47 = vadd.f32 %v297_v33, %v229_v55  ;;  %v314_v4 = vadd.f32 %v298_v34, %v230_v11  ;;  %v315_v18 = vadd.f32 %v299_v35, %v231_v14  ;;  %v316_v40 = vadd.f32 %v300_v37, %v232_v19 }
  0xac   :  { %v2963_v62 = vpack.c.bf16 %v2916_v43, %v2935_v24  ;;  %v2967_v63 = vpack.c.bf16 %v2918_v48, %v2937_v21  ;;  %v583_v45 = vadd.f32 %v569_v39, %v567_v46  ;;  %v3050_v39 = vpack.c.bf16 %v2921_v50, %v2933_v59 }
  0xad   :  { %v327_v41 = vpop.permute.xlu1 %326  ;;  %v2969_v42 = vadd.f32 %v382_v26, %v314_v4  ;;  %v2971_v6 = vadd.f32 %v384_v30, %v316_v40  ;;  %v2973_v7 = vadd.f32 %v381_v8, %v313_v47  ;;  %v2975_v15 = vadd.f32 %v383_v28, %v315_v18  ;;  %v401_v26 = vld [vmem:[%s3289_s3] sm:$0xf] }
  0xae   :  { %v377_v20 = vmul.f32 %v2857_v0, %v327_v41  ;;  %v378_v49 = vmul.f32 %v2859_v1, %v327_v41  ;;  %v379_v54 = vmul.f32 %v2861_v9, %v327_v41  ;;  %v380_v52 = vmul.f32 %v2863_v10, %v327_v41 }
  0xaf   :  { %436 = vmatprep.subr.mxu0 %v2969_v42  ;;  %507 = vmatprep.subr.mxu1 %v2971_v6  ;;  %v574_v9 = vadd.f32 %v568_v60, %v566_v61  ;;  %v573_v10 = vmul.f32 %v2969_v42, %v2969_v42  ;;  %v1466_v25 = vmul.f32 %v2971_v6, %v2971_v6 }
  0xb0   :  { %437 = vmatpush1.msra.mxu0 %v2973_v7  ;;  %508 = vmatpush1.msra.mxu1 %v2975_v15  ;;  %v2990_v0 = vadd.f32 %v378_v49, %v2909_v3  ;;  %v2993_v1 = vadd.f32 %v380_v52, %v2911_v5  ;;  %v2999_v27 = vadd.f32 %v377_v20, %v309_v53 }
  0xb1   :  { %v3001_v36 = vadd.f32 %v379_v54, %v311_v57  ;;  %v572_v2 = vmul.f32 %v2973_v7, %v2973_v7  ;;  %v1465_v22 = vmul.f32 %v2975_v15, %v2975_v15  ;;  %v3058_v53 = vpack.c.bf16 %v2923_v51, %v2945_v32 }
  0xb2   :  { %438 = vmatprep.subr.mxu0 %v2990_v0  ;;  %v571_v3 = vmul.f32 %v2990_v0, %v2990_v0  ;;  %509 = vmatprep.subr.mxu1 %v2993_v1  ;;  %v1464_v5 = vmul.f32 %v2993_v1, %v2993_v1  ;;  %v570_v55 = vmul.f32 %v2999_v27, %v2999_v27 }
  0xb3   :  { %439 = vmatpush1.msra.mxu0 %v2999_v27  ;;  %510 = vmatpush1.msra.mxu1 %v3001_v36  ;;  %v1463_v11 = vmul.f32 %v3001_v36, %v3001_v36  ;;  %v3023_v56 = vpack.c.bf16 %v2971_v6, %v2993_v1  ;;  %v3032_v28 = vpack.c.bf16 %v2975_v15, %v3001_v36 }
  0xb4   :  { %440 = vmatprep.subr.mxu0 %v2921_v50  ;;  %511 = vmatprep.subr.mxu1 %v2916_v43  ;;  %v584_v14 = vadd.f32 %v583_v45, %v571_v3  ;;  %v1477_v58 = vadd.f32 %v1476_v44, %v1464_v5  ;;  %v575_v19 = vadd.f32 %v574_v9, %v570_v55 }
  0xb5   :  { %441 = vmatpush1.msra.mxu0 %v2923_v51  ;;  %512 = vmatpush1.msra.mxu1 %v2918_v48  ;;  %v1468_v8 = vadd.f32 %v1467_v38, %v1463_v11  ;;  %v3038_v31 = vpack.c.bf16 %v2969_v42, %v2990_v0  ;;  %v3044_v34 = vpack.c.bf16 %v2973_v7, %v2999_v27 }
  0xb6   :  { %442 = vmatprep.subr.mxu0 %v2933_v59  ;;  %v585_v29 = vadd.f32 %v584_v14, %v573_v10  ;;  %513 = vmatprep.subr.mxu1 %v2935_v24  ;;  %v1478_v30 = vadd.f32 %v1477_v58, %v1466_v25  ;;  %v576_v23 = vadd.f32 %v575_v19, %v572_v2 }
  0xb7   :  { %443 = vmatpush1.msra.mxu0 %v2945_v32  ;;  %514 = vmatpush1.msra.mxu1 %v2937_v21  ;;  %v1469_v33 = vadd.f32 %v1468_v8, %v1465_v22 }
  0xb8   :  { %v586_v35 = vrot.slane %v585_v29, 4  ;;  %v1479_v37 = vrot.slane %v1478_v30, 4  ;;  %869 = vmatprep.subr.bf16.mxu1 %v3038_v31  ;;  %2391 = vmatmul.mubr.msk.f32.vlgmr.msra.gmra.mxu1 %vm408_vm0, %v401_v26  ;;  %v577_v46 = vrot.slane %v576_v23, 4 }
  0xb9   :  { %v1470_v44 = vrot.slane %v1469_v33, 4  ;;  %870 = vmatpush1.bf16.xpose.msra.mxu1 %v3044_v34  ;;  %2390 = vmatmul.mubr.msk.f32.vlgmr.msra.gmra.mxu0 %vm408_vm0, %v401_v26 }
  0xba   :  { %v587_v38 = vadd.f32 %v586_v35, %v585_v29  ;;  %v1480_v47 = vadd.f32 %v1479_v37, %v1478_v30  ;;  %871 = vmatprep.subr.bf16.mxu1 %v3050_v39  ;;  %679 = vmatprep.mubr.f32.mxu0 %v2735_v12  ;;  %v578_v4 = vadd.f32 %v577_v46, %v576_v23 }
  0xbb   :  { %v1471_v18 = vadd.f32 %v1470_v44, %v1469_v33 }
  0xbc   :  { %v588_v40 = vrot.slane %v587_v38, 2  ;;  %v1481_v60 = vrot.slane %v1480_v47, 2  ;;  %v579_v61 = vrot.slane %v578_v4, 2 }
  0xbd   :  { %v1472_v41 = vrot.slane %v1471_v18, 2 }
  0xbe   :  { %v589_v20 = vadd.f32 %v588_v40, %v587_v38  ;;  %v1482_v49 = vadd.f32 %v1481_v60, %v1480_v47  ;;  %v580_v54 = vadd.f32 %v579_v61, %v578_v4 }
  0xbf   :  { %v1473_v52 = vadd.f32 %v1472_v41, %v1471_v18 }
  0xc0   :  { %v590_v57 = vrot.slane %v589_v20, 1  ;;  %v1483_v45 = vrot.slane %v1482_v49, 1  ;;  %v581_v9 = vrot.slane %v580_v54, 1 }
  0xc1   :  { %v1474_v10 = vrot.slane %v1473_v52, 1  ;;  %872 = vmatpush1.bf16.xpose.msra.mxu1 %v3058_v53 }
  0xc2   :  { %v591_v25 = vadd.f32 %v590_v57, %v589_v20  ;;  %v1484_v2 = vadd.f32 %v1483_v45, %v1482_v49  ;;  %v582_v3 = vadd.f32 %v581_v9, %v580_v54 }
  0xc3   :  { %v1475_v5 = vadd.f32 %v1474_v10, %v1473_v52 }
  0xc4   :  { %v593_v22 = vadd.f32 1e-12, %v591_v25  ;;  %v1486_v55 = vadd.f32 1e-12, %v1484_v2  ;;  %v592_v11 = vadd.f32 1e-12, %v582_v3 }
  0xc5   :  { %v1485_v14 = vadd.f32 1e-12, %v1475_v5 }
  0xc6   :  { %2447 = vrsqrt.f32 %v593_v22 }
  0xc7   :  { %2449 = vrsqrt.f32 %v1486_v55 }
  0xc8   :  { %2451 = vrsqrt.f32 %v592_v11 }
  0xc9   :  { %2453 = vrsqrt.f32 %v1485_v14 }
  0xd3   :  { %v2448_v58 = vpop.eup %2447 }
  0xd4   :  { %v2450_v19 = vpop.eup %2449  ;;  %v603_v8 = vmul.f32 %v2448_v58, %v2969_v42  ;;  %v3078_v42 = vmul.f32 %v2448_v58, %v2990_v0  ;;  %v3098_v0 = vmul.f32 %v2448_v58, %v2921_v50 }
  0xd5   :  { %v2452_v26 = vpop.eup %2451  ;;  %v3063_v29 = vmul.f32 %v2450_v19, %v2971_v6  ;;  %v3066_v30 = vmul.f32 %v2450_v19, %v2993_v1  ;;  %v3069_v23 = vmul.f32 %v2450_v19, %v2916_v43  ;;  %v3072_v33 = vmul.f32 %v2450_v19, %v2935_v24 }
  0xd6   :  { %v2454_v35 = vpop.eup %2453  ;;  %639 = vmatprep.subr.mxu0 %v603_v8  ;;  %1231 = vmatprep.subr.mxu1 %v603_v8  ;;  %v3075_v37 = vmul.f32 %v2452_v26, %v2973_v7  ;;  %v3091_v24 = vmul.f32 %v2452_v26, %v2999_v27 }
  0xd7   :  { %v3081_v6 = vmul.f32 %v2454_v35, %v2975_v15  ;;  %v3084_v1 = vmul.f32 %v2454_v35, %v3001_v36  ;;  %v3087_v43 = vmul.f32 %v2454_v35, %v2918_v48  ;;  %v3094_v7 = vmul.f32 %v2454_v35, %v2937_v21 }
  0xd8   :  { %640 = vmatpush1.msra.mxu0 %v3075_v37  ;;  %v3102_v15 = vmul.f32 %v2452_v26, %v2923_v51  ;;  %v3106_v48 = vmul.f32 %v2448_v58, %v2933_v59  ;;  %v3110_v21 = vmul.f32 %v2452_v26, %v2945_v32 }
  0xd9   :  { %641 = vmatprep.subr.mxu0 %v3078_v42 }
  0xda   :  { %642 = vmatpush1.msra.mxu0 %v3091_v24 }
  0xdb   :  { %643 = vmatprep.subr.mxu0 %v3098_v0 }
  0xdc   :  { %644 = vmatpush1.msra.mxu0 %v3102_v15 }
  0xdd   :  { %645 = vmatprep.subr.mxu0 %v3106_v48 }
  0xde   :  { %646 = vmatpush1.msra.mxu0 %v3110_v21 }
  0xdf   :  { %937 = vmatprep.subr.mxu0 %v603_v8  ;;  %v608_v50 = vpop.xlane.xlu1 %607 }
  0xe0   :  { %v609_v27 = vadd.f32 1e-12, %v608_v50 }
  0xe2   :  { %2455 = vrsqrt.f32 %v609_v27 }
  0xef   :  { %v2456_v51 = vpop.eup %2455 }
  0xf0   :  { %v611_v36 = vmul.f32 %v2456_v51, %v2815_v13 }
  0xf2   :  { %2392 = vmatmul.mubr.msk.f32.vlgmr.msra.gmra.mxu0 %vm408_vm0, %v611_v36 }
  0xf3   :  { %938 = vmatpush1.msra.mxu0 %v3075_v37  ;;  %977 = vmatprep.mubr.f32.mxu0 %v2735_v12 }
  0xf4   :  { %939 = vmatprep.subr.mxu0 %v3078_v42 }
  0xf5   :  { %940 = vmatpush1.msra.mxu0 %v3091_v24 }
  0xf6   :  { %941 = vmatprep.subr.mxu0 %v3098_v0 }
  0xf7   :  { %942 = vmatpush1.msra.mxu0 %v3102_v15 }
  0xf8   :  { %943 = vmatprep.subr.mxu0 %v3106_v48 }
  0xf9   :  { %944 = vmatpush1.msra.mxu0 %v3110_v21 }
  0xfa   :  { %1163 = vmatprep.subr.bf16.mxu0 %v3038_v31 }
 0x179   :  { %v3125_v13 = vpop.f32.mrf.mxu0 }
 0x17b   :  { %v3127_v59 = vpop.f32.mrf.mxu0 }
 0x1b2   :  { %v681_v32 = vpop.f32.mrf.mxu0 }
 0x1b3   :  { %v686_v46 = vrot.slane %v681_v32, 4 }
 0x1b4   :  { %v683_v44 = vpop.f32.mrf.mxu0 }
 0x1b5   :  { %v687_v38 = vmax.f32 %v681_v32, %v686_v46  ;;  %v692_v47 = vrot.slane %v683_v44, 4 }
 0x1b7   :  { %v688_v4 = vrot.slane %v687_v38, 2  ;;  %v693_v18 = vmax.f32 %v683_v44, %v692_v47 }
 0x1b9   :  { %v689_v40 = vmax.f32 %v687_v38, %v688_v4  ;;  %v694_v60 = vrot.slane %v693_v18, 2 }
 0x1bb   :  { %v690_v61 = vrot.slane %v689_v40, 1  ;;  %v695_v41 = vmax.f32 %v693_v18, %v694_v60 }
 0x1bd   :  { %v691_v20 = vmax.f32 %v689_v40, %v690_v61  ;;  %v696_v49 = vrot.slane %v695_v41, 1 }
 0x1bf   :  { %v698_v54 = vsub.f32 %v681_v32, %v691_v20  ;;  %v697_v52 = vmax.f32 %v695_v41, %v696_v49 }
 0x1c1   :  { %v700_v31 = vmul.f32 1.442695, %v698_v54  ;;  %v699_v57 = vsub.f32 %v683_v44, %v697_v52 }
 0x1c3   :  { %2457 = vpow2.f32 %v700_v31  ;;  %v702_v45 = vmul.f32 1.442695, %v699_v57 }
 0x1c5   :  { %2459 = vpow2.f32 %v702_v45 }
 0x1d0   :  { %v2458_v9 = vpop.eup %2457 }
 0x1d1   :  { %v704_v10 = vrot.slane %v2458_v9, 4 }
 0x1d2   :  { %v2460_v25 = vpop.eup %2459 }
 0x1d3   :  { %v710_v2 = vrot.slane %v2460_v25, 4  ;;  %v705_v3 = vadd.f32 %v2458_v9, %v704_v10 }
 0x1d5   :  { %v706_v5 = vrot.slane %v705_v3, 2  ;;  %v711_v22 = vadd.f32 %v2460_v25, %v710_v2 }
 0x1d7   :  { %v707_v55 = vadd.f32 %v706_v5, %v705_v3  ;;  %v712_v11 = vrot.slane %v711_v22, 2 }
 0x1d9   :  { %v708_v14 = vrot.slane %v707_v55, 1  ;;  %v713_v58 = vadd.f32 %v712_v11, %v711_v22 }
 0x1db   :  { %v709_v19 = vadd.f32 %v708_v14, %v707_v55  ;;  %v714_v8 = vrot.slane %v713_v58, 1 }
 0x1dd   :  { %v715_v26 = vadd.f32 %v714_v8, %v713_v58  ;;  %2461 = vrcp.f32 %v709_v19 }
 0x1df   :  { %2463 = vrcp.f32 %v715_v26 }
 0x1ea   :  { %v2462_v35 = vpop.eup %2461 }
 0x1eb   :  { %v717_v50 = vmul.f32 %v2462_v35, %v2458_v9 }
 0x1ec   :  { %v2464_v27 = vpop.eup %2463 }
 0x1ed   :  { %v719_v51 = vmul.f32 %v2464_v27, %v2460_v25  ;;  %v720_v36 = vmul.f32 20.0, %v717_v50 }
 0x1ef   :  { %v721_v32 = vmul.f32 20.0, %v719_v51  ;;  %v722_v46 = vmul.f32 1.442695, %v720_v36 }
 0x1f1   :  { %v724_v44 = vmul.f32 1.442695, %v721_v32  ;;  %2465 = vpow2.f32 %v722_v46 }
 0x1f3   :  { %2467 = vpow2.f32 %v724_v44 }
 0x1fe   :  { %v2466_v38 = vpop.eup %2465 }
 0x200   :  { %v2468_v47 = vpop.eup %2467 }
 0x201   :  { %v726_v4 = vadd.f32 %v2468_v47, %v2466_v38 }
 0x203   :  { %727 = vadd.xlane.f32.xlu0 %v726_v4 }
 0x28c   :  { %v728_v18 = vpop.xlane.xlu0 %727 }
 0x28d   :  { %v729_v40 = vrot.slane %v728_v18, 4 }
 0x28f   :  { %v730_v60 = vadd.f32 %v729_v40, %v728_v18 }
 0x291   :  { %v731_v61 = vrot.slane %v730_v60, 2 }
 0x293   :  { %v732_v41 = vadd.f32 %v731_v61, %v730_v60 }
 0x295   :  { %v733_v20 = vrot.slane %v732_v41, 1 }
 0x297   :  { %v734_v49 = vadd.f32 %v733_v20, %v732_v41 }
 0x299   :  { %2469 = vrcp.f32 %v734_v49 }
 0x2a6   :  { %v2470_v54 = vpop.eup %2469 }
 0x2a7   :  { %v736_v52 = vmul.f32 %v2470_v54, %v2466_v38  ;;  %v737_v31 = vmul.f32 %v2470_v54, %v2468_v47 }
 0x2a9   :  { %v738_v57 = vadd.f32 %v737_v31, %v736_v52 }
 0x2ab   :  { %739 = vadd.xlane.f32.xlu0 %v738_v57 }
 0x334   :  { %v740_v45 = vpop.xlane.xlu0 %739 }
 0x335   :  { %v741_v9 = vmul.f32 8.0, %v740_v45 }
 0x337   :  { %2471 = vrcp.f32 %v741_v9 }
 0x344   :  { %v2472_v10 = vpop.eup %2471 }
 0x345   :  { %v743_v25 = vmul.f32 %v2472_v10, %v736_v52  ;;  %v744_v2 = vmul.f32 %v2472_v10, %v737_v31 }
 0x347   :  { %v745_v3 = vrot.slane %v743_v25, 4  ;;  %v751_v5 = vrot.slane %v744_v2, 4 }
 0x349   :  { %v746_v22 = vadd.f32 %v745_v3, %v743_v25  ;;  %v752_v55 = vadd.f32 %v751_v5, %v744_v2 }
 0x34b   :  { %v747_v11 = vrot.slane %v746_v22, 2  ;;  %v753_v14 = vrot.slane %v752_v55, 2 }
 0x34d   :  { %v748_v58 = vadd.f32 %v747_v11, %v746_v22  ;;  %v754_v19 = vadd.f32 %v753_v14, %v752_v55 }
 0x34f   :  { %v749_v8 = vrot.slane %v748_v58, 1  ;;  %v755_v26 = vrot.slane %v754_v19, 1 }
 0x351   :  { %v750_v35 = vadd.f32 %v749_v8, %v748_v58  ;;  %v756_v50 = vadd.f32 %v755_v26, %v754_v19 }
 0x353   :  { %v757_v27 = vmul.f32 256.0, %v750_v35  ;;  %v758_v51 = vmul.f32 256.0, %v756_v50 }
 0x355   :  { %2473 = vrcp.f32 %v757_v27 }
 0x356   :  { %2475 = vrcp.f32 %v758_v51 }
 0x362   :  { %v2474_v36 = vpop.eup %2473 }
 0x363   :  { %v2476_v32 = vpop.eup %2475  ;;  %v760_v46 = vmul.f32 %v2474_v36, %v743_v25 }
 0x364   :  { %v762_v44 = vmul.f32 %v2476_v32, %v744_v2 }
 0x366   :  { %v763_v38 = vadd.f32 %v762_v44, %v760_v46 }
 0x368   :  { %764 = vadd.xlane.f32.xlu1 %v763_v38 }
 0x3f1   :  { %v765_v47 = vpop.xlane.xlu1 %764 }
 0x3f2   :  { %v766_v4 = vmul.f32 8.0, %v765_v47 }
 0x3f4   :  { %2477 = vrcp.f32 %v766_v4 }
 0x401   :  { %v2478_v18 = vpop.eup %2477 }
 0x402   :  { %v768_v40 = vmul.f32 %v2478_v18, %v760_v46  ;;  %v769_v60 = vmul.f32 %v2478_v18, %v762_v44 }
 0x404   :  { %v770_v61 = vrot.slane %v768_v40, 4  ;;  %v776_v41 = vrot.slane %v769_v60, 4 }
 0x406   :  { %v771_v20 = vadd.f32 %v770_v61, %v768_v40  ;;  %v777_v49 = vadd.f32 %v776_v41, %v769_v60 }
 0x408   :  { %v772_v54 = vrot.slane %v771_v20, 2  ;;  %v778_v52 = vrot.slane %v777_v49, 2 }
 0x40a   :  { %v773_v31 = vadd.f32 %v772_v54, %v771_v20  ;;  %v779_v57 = vadd.f32 %v778_v52, %v777_v49 }
 0x40c   :  { %v774_v45 = vrot.slane %v773_v31, 1  ;;  %v780_v9 = vrot.slane %v779_v57, 1 }
 0x40e   :  { %v775_v10 = vadd.f32 %v774_v45, %v773_v31  ;;  %v781_v25 = vadd.f32 %v780_v9, %v779_v57 }
 0x410   :  { %v782_v2 = vmul.f32 256.0, %v775_v10  ;;  %v783_v3 = vmul.f32 256.0, %v781_v25 }
 0x412   :  { %2479 = vrcp.f32 %v782_v2 }
 0x413   :  { %2481 = vrcp.f32 %v783_v3 }
 0x41f   :  { %v2480_v5 = vpop.eup %2479 }
 0x420   :  { %v2482_v22 = vpop.eup %2481  ;;  %v785_v55 = vmul.f32 %v2480_v5, %v768_v40 }
 0x421   :  { %v787_v11 = vmul.f32 %v2482_v22, %v769_v60 }
 0x423   :  { %v788_v14 = vadd.f32 %v787_v11, %v785_v55 }
 0x425   :  { %789 = vadd.xlane.f32.xlu0 %v788_v14 }
 0x4ae   :  { %v790_v58 = vpop.xlane.xlu0 %789 }
 0x4af   :  { %v791_v19 = vmul.f32 8.0, %v790_v58 }
 0x4b1   :  { %2483 = vrcp.f32 %v791_v19 }
 0x4be   :  { %v2484_v8 = vpop.eup %2483 }
 0x4bf   :  { %v793_v26 = vmul.f32 %v2484_v8, %v785_v55  ;;  %v794_v35 = vmul.f32 %v2484_v8, %v787_v11 }
 0x4c1   :  { %v795_v50 = vrot.slane %v793_v26, 4  ;;  %v801_v27 = vrot.slane %v794_v35, 4 }
 0x4c3   :  { %v796_v51 = vadd.f32 %v795_v50, %v793_v26  ;;  %v802_v36 = vadd.f32 %v801_v27, %v794_v35 }
 0x4c5   :  { %v797_v32 = vrot.slane %v796_v51, 2  ;;  %v803_v46 = vrot.slane %v802_v36, 2 }
 0x4c7   :  { %v798_v44 = vadd.f32 %v797_v32, %v796_v51  ;;  %v804_v38 = vadd.f32 %v803_v46, %v802_v36 }
 0x4c9   :  { %v799_v47 = vrot.slane %v798_v44, 1  ;;  %v805_v4 = vrot.slane %v804_v38, 1 }
 0x4cb   :  { %v800_v18 = vadd.f32 %v799_v47, %v798_v44  ;;  %v806_v40 = vadd.f32 %v805_v4, %v804_v38  ;;  %v2736_v38 = vmov 1.0|1.0  }
 0x4cd   :  { %2485 = vrcp.f32 %v800_v18 }
 0x4ce   :  { %2487 = vrcp.f32 %v806_v40 }
 0x4da   :  { %v2486_v60 = vpop.eup %2485 }
 0x4db   :  { %v2488_v61 = vpop.eup %2487  ;;  %v808_v41 = vmul.f32 %v2486_v60, %v793_v26 }
 0x4dc   :  { %v810_v20 = vmul.f32 %v2488_v61, %v794_v35 }
 0x4dd   :  { %v811_v49 = vrot.slane %v808_v41, 4 }
 0x4de   :  { %v817_v54 = vrot.slane %v810_v20, 4 }
 0x4df   :  { %v812_v52 = vmax.f32 %v808_v41, %v811_v49 }
 0x4e0   :  { %v818_v31 = vmax.f32 %v810_v20, %v817_v54 }
 0x4e1   :  { %v813_v57 = vrot.slane %v812_v52, 2 }
 0x4e2   :  { %v819_v45 = vrot.slane %v818_v31, 2 }
 0x4e3   :  { %v814_v9 = vmax.f32 %v812_v52, %v813_v57 }
 0x4e4   :  { %v820_v10 = vmax.f32 %v818_v31, %v819_v45 }
 0x4e5   :  { %v815_v25 = vrot.slane %v814_v9, 1 }
 0x4e6   :  { %v821_v2 = vrot.slane %v820_v10, 1 }
 0x4e7   :  { %v816_v3 = vmax.f32 %v814_v9, %v815_v25 }
 0x4e8   :  { %v822_v5 = vmax.f32 %v820_v10, %v821_v2 }
 0x4e9   :  { %vm823_vm1 = vcmp.eq.f32.partialorder %v808_v41, %v816_v3 }
 0x4ea   :  { %vm824_vm2 = vcmp.eq.f32.partialorder %v810_v20, %v822_v5  ;;  %v825_v22 = vsel %vm823_vm1, %v2821_v17, 8 }
 0x4eb   :  { %v826_v55 = vsel %vm824_vm2, %v2821_v17, 8  ;;  %v827_v11 = vrot.slane %v825_v22, 4 }
 0x4ec   :  { %v836_v14 = vrot.slane %v826_v55, 4 }
 0x4ed   :  { %vm828_vm3 = vcmp.lt.s32.totalorder %v825_v22, %v827_v11 }
 0x4ee   :  { %vm837_vm4 = vcmp.lt.s32.totalorder %v826_v55, %v836_v14  ;;  %v829_v58 = vsel %vm828_vm3, %v825_v22, %v827_v11 }
 0x4ef   :  { %v838_v19 = vsel %vm837_vm4, %v826_v55, %v836_v14  ;;  %v830_v8 = vrot.slane %v829_v58, 2 }
 0x4f0   :  { %v839_v26 = vrot.slane %v838_v19, 2 }
 0x4f1   :  { %vm831_vm5 = vcmp.lt.s32.totalorder %v829_v58, %v830_v8 }
 0x4f2   :  { %vm840_vm6 = vcmp.lt.s32.totalorder %v838_v19, %v839_v26  ;;  %v832_v35 = vsel %vm831_vm5, %v829_v58, %v830_v8 }
 0x4f3   :  { %v841_v50 = vsel %vm840_vm6, %v838_v19, %v839_v26  ;;  %v833_v27 = vrot.slane %v832_v35, 1 }
 0x4f4   :  { %v842_v51 = vrot.slane %v841_v50, 1 }
 0x4f5   :  { %vm834_vm7 = vcmp.lt.s32.totalorder %v832_v35, %v833_v27 }
 0x4f6   :  { %vm843_vm8 = vcmp.lt.s32.totalorder %v841_v50, %v842_v51  ;;  %v835_v36 = vsel %vm834_vm7, %v832_v35, %v833_v27 }
 0x4f7   :  { %v844_v32 = vsel %vm843_vm8, %v841_v50, %v842_v51  ;;  %vm845_vm9 = vcmp.eq.s32.totalorder %v2821_v17, %v835_v36 }
 0x4f8   :  { %vm846_vm10 = vcmp.eq.s32.totalorder %v2821_v17, %v844_v32  ;;  %vm2397_vm11 = vmpackc.low %vm845_vm9, %vm845_vm9  ;;  %v2393_v46 = vsel %vm845_vm9, 1.0, %v2735_v12 }
 0x4f9   :  { %vm2395_vm12 = vmpackc.low %vm846_vm10, %vm846_vm10  ;;  %v2394_v44 = vsel %vm846_vm10, 1.0, %v2735_v12 }
 0x4fa   :  { %2396 = vmatprep.mubr.msk.bf16.mxu1 %vm2395_vm12, %v2736_v38  ;;  %v897_v47 = vadd.f32 %v2394_v44, %v2393_v46 }
 0x4fb   :  { %2398 = vmatmul.mubr.msk.bf16.vlgmr.msra.gmra.mxu1 %vm2397_vm11, %v2736_v38 }
 0x4fc   :  { %1232 = vmatpush1.msra.mxu1 %v3075_v37  ;;  %898 = vadd.xlane.f32.xlu1 %v897_v47  ;;  %v3146_v37 = vpop.f32.mrf.mxu1 }
 0x4fd   :  { %1233 = vmatprep.subr.mxu1 %v3078_v42  ;;  %1271 = vmatprep.mubr.f32.mxu1 %v2735_v12 }
 0x4fe   :  { %1234 = vmatpush1.msra.mxu1 %v3091_v24  ;;  %v3148_v42 = vpop.f32.mrf.mxu1 }
 0x4ff   :  { %1235 = vmatprep.subr.mxu1 %v3098_v0 }
 0x500   :  { %1236 = vmatpush1.msra.mxu1 %v3102_v15 }
 0x501   :  { %1237 = vmatprep.subr.mxu1 %v3106_v48 }
 0x502   :  { %1238 = vmatpush1.msra.mxu1 %v3110_v21 }
 0x503   :  { %1533 = vmatprep.subr.mxu1 %v3063_v29 }
 0x585   :  { %v899_v4 = vpop.xlane.xlu1 %898 }
 0x586   :  { %v900_v18 = vmax.f32 %v899_v4, 1.0 }
 0x588   :  { %2489 = vrcp.f32 %v900_v18 }
 0x595   :  { %v2490_v40 = vpop.eup %2489 }
 0x5bb   :  { %v891_v60 = vpop.f32.mrf.mxu1 }
 0x5bc   :  { %v902_v24 = vmul.f32 %v2490_v40, %v891_v60 }
 0x5bd   :  { %v893_v61 = vpop.f32.mrf.mxu1 }
 0x5be   :  { %v903_v0 = vmul.f32 %v902_v24, %v902_v24 }
 0x5bf   :  { %v894_v41 = vpop.f32.mrf.mxu1 }
 0x5c0   :  { %v904_v15 = vsel %vm408_vm0, %v903_v0, 0.0 }
 0x5c1   :  { %v895_v48 = vpop.f32.mrf.mxu1  ;;  %905 = vadd.xlane.f32.xlu0 %v904_v15 }
 0x64a   :  { %v906_v21 = vpop.xlane.xlu0 %905 }
 0x64b   :  { %v907_v20 = vadd.f32 1e-12, %v906_v21 }
 0x64d   :  { %2491 = vrsqrt.f32 %v907_v20 }
 0x65a   :  { %v2492_v49 = vpop.eup %2491 }
 0x65b   :  { %v909_v54 = vmul.f32 %v2492_v49, %v902_v24 }
 0x65d   :  { %2399 = vmatmul.mubr.msk.f32.vlgmr.msra.gmra.mxu0 %vm408_vm0, %v909_v54 }
 0x65e   :  { %1164 = vmatpush1.bf16.xpose.msra.mxu0 %v3044_v34 }
 0x65f   :  { %1165 = vmatprep.subr.bf16.mxu0 %v3050_v39 }
 0x666   :  { %1166 = vmatpush1.bf16.xpose.msra.mxu0 %v3058_v53 }
 0x667   :  { %1763 = vmatprep.subr.bf16.mxu0 %v3023_v56 }
 0x71d   :  { %v979_v52 = vpop.f32.mrf.mxu0 }
 0x71e   :  { %v984_v31 = vrot.slane %v979_v52, 4 }
 0x71f   :  { %v981_v57 = vpop.f32.mrf.mxu0 }
 0x720   :  { %v985_v45 = vmax.f32 %v979_v52, %v984_v31  ;;  %v990_v9 = vrot.slane %v981_v57, 4 }
 0x722   :  { %v986_v10 = vrot.slane %v985_v45, 2  ;;  %v991_v25 = vmax.f32 %v981_v57, %v990_v9 }
 0x724   :  { %v987_v2 = vmax.f32 %v985_v45, %v986_v10  ;;  %v992_v3 = vrot.slane %v991_v25, 2 }
 0x726   :  { %v988_v5 = vrot.slane %v987_v2, 1  ;;  %v993_v22 = vmax.f32 %v991_v25, %v992_v3 }
 0x728   :  { %v989_v55 = vmax.f32 %v987_v2, %v988_v5  ;;  %v994_v11 = vrot.slane %v993_v22, 1 }
 0x72a   :  { %v996_v34 = vsub.f32 %v979_v52, %v989_v55  ;;  %v995_v14 = vmax.f32 %v993_v22, %v994_v11 }
 0x72c   :  { %v998_v39 = vmul.f32 1.442695, %v996_v34  ;;  %v997_v58 = vsub.f32 %v981_v57, %v995_v14 }
 0x72e   :  { %2493 = vpow2.f32 %v998_v39  ;;  %v1000_v53 = vmul.f32 1.442695, %v997_v58 }
 0x730   :  { %2495 = vpow2.f32 %v1000_v53 }
 0x73b   :  { %v2494_v19 = vpop.eup %2493 }
 0x73c   :  { %v1002_v8 = vrot.slane %v2494_v19, 4 }
 0x73d   :  { %v2496_v26 = vpop.eup %2495 }
 0x73e   :  { %v1008_v35 = vrot.slane %v2496_v26, 4  ;;  %v1003_v50 = vadd.f32 %v2494_v19, %v1002_v8 }
 0x740   :  { %v1004_v27 = vrot.slane %v1003_v50, 2  ;;  %v1009_v51 = vadd.f32 %v2496_v26, %v1008_v35 }
 0x742   :  { %v1005_v36 = vadd.f32 %v1004_v27, %v1003_v50  ;;  %v1010_v32 = vrot.slane %v1009_v51, 2 }
 0x744   :  { %v1006_v46 = vrot.slane %v1005_v36, 1  ;;  %v1011_v44 = vadd.f32 %v1010_v32, %v1009_v51 }
 0x746   :  { %v1007_v47 = vadd.f32 %v1006_v46, %v1005_v36  ;;  %v1012_v4 = vrot.slane %v1011_v44, 1 }
 0x748   :  { %v1013_v18 = vadd.f32 %v1012_v4, %v1011_v44  ;;  %2497 = vrcp.f32 %v1007_v47 }
 0x74a   :  { %2499 = vrcp.f32 %v1013_v18 }
 0x755   :  { %v2498_v40 = vpop.eup %2497 }
 0x756   :  { %v1015_v60 = vmul.f32 %v2498_v40, %v2494_v19 }
 0x757   :  { %v2500_v24 = vpop.eup %2499 }
 0x758   :  { %v1017_v61 = vmul.f32 %v2500_v24, %v2496_v26  ;;  %v1018_v0 = vmul.f32 20.0, %v1015_v60 }
 0x75a   :  { %v1019_v41 = vmul.f32 20.0, %v1017_v61  ;;  %v1020_v15 = vmul.f32 1.442695, %v1018_v0 }
 0x75c   :  { %v1022_v48 = vmul.f32 1.442695, %v1019_v41  ;;  %2501 = vpow2.f32 %v1020_v15 }
 0x75e   :  { %2503 = vpow2.f32 %v1022_v48 }
 0x769   :  { %v2502_v21 = vpop.eup %2501 }
 0x76b   :  { %v2504_v20 = vpop.eup %2503 }
 0x76c   :  { %v1024_v49 = vadd.f32 %v2504_v20, %v2502_v21 }
 0x76e   :  { %1025 = vadd.xlane.f32.xlu1 %v1024_v49 }
 0x7f7   :  { %v1026_v54 = vpop.xlane.xlu1 %1025 }
 0x7f8   :  { %v1027_v52 = vrot.slane %v1026_v54, 4 }
 0x7fa   :  { %v1028_v31 = vadd.f32 %v1027_v52, %v1026_v54 }
 0x7fc   :  { %v1029_v57 = vrot.slane %v1028_v31, 2 }
 0x7fe   :  { %v1030_v45 = vadd.f32 %v1029_v57, %v1028_v31 }
 0x800   :  { %v1031_v9 = vrot.slane %v1030_v45, 1 }
 0x802   :  { %v1032_v10 = vadd.f32 %v1031_v9, %v1030_v45 }
 0x804   :  { %2505 = vrcp.f32 %v1032_v10 }
 0x811   :  { %v2506_v25 = vpop.eup %2505 }
 0x812   :  { %v1034_v2 = vmul.f32 %v2506_v25, %v2502_v21  ;;  %v1035_v3 = vmul.f32 %v2506_v25, %v2504_v20 }
 0x814   :  { %v1036_v5 = vadd.f32 %v1035_v3, %v1034_v2 }
 0x816   :  { %1037 = vadd.xlane.f32.xlu0 %v1036_v5 }
 0x89f   :  { %v1038_v22 = vpop.xlane.xlu0 %1037 }
 0x8a0   :  { %v1039_v55 = vmul.f32 8.0, %v1038_v22 }
 0x8a2   :  { %2507 = vrcp.f32 %v1039_v55 }
 0x8af   :  { %v2508_v11 = vpop.eup %2507 }
 0x8b0   :  { %v1041_v34 = vmul.f32 %v2508_v11, %v1034_v2  ;;  %v1042_v14 = vmul.f32 %v2508_v11, %v1035_v3 }
 0x8b2   :  { %v1043_v39 = vrot.slane %v1041_v34, 4  ;;  %v1049_v58 = vrot.slane %v1042_v14, 4 }
 0x8b4   :  { %v1044_v53 = vadd.f32 %v1043_v39, %v1041_v34  ;;  %v1050_v19 = vadd.f32 %v1049_v58, %v1042_v14 }
 0x8b6   :  { %v1045_v8 = vrot.slane %v1044_v53, 2  ;;  %v1051_v26 = vrot.slane %v1050_v19, 2 }
 0x8b8   :  { %v1046_v35 = vadd.f32 %v1045_v8, %v1044_v53  ;;  %v1052_v50 = vadd.f32 %v1051_v26, %v1050_v19 }
 0x8ba   :  { %v1047_v27 = vrot.slane %v1046_v35, 1  ;;  %v1053_v51 = vrot.slane %v1052_v50, 1 }
 0x8bc   :  { %v1048_v36 = vadd.f32 %v1047_v27, %v1046_v35  ;;  %v1054_v32 = vadd.f32 %v1053_v51, %v1052_v50 }
 0x8be   :  { %v1055_v46 = vmul.f32 256.0, %v1048_v36  ;;  %v1056_v44 = vmul.f32 256.0, %v1054_v32 }
 0x8c0   :  { %2509 = vrcp.f32 %v1055_v46 }
 0x8c1   :  { %2511 = vrcp.f32 %v1056_v44 }
 0x8cd   :  { %v2510_v47 = vpop.eup %2509 }
 0x8ce   :  { %v2512_v4 = vpop.eup %2511  ;;  %v1058_v18 = vmul.f32 %v2510_v47, %v1041_v34 }
 0x8cf   :  { %v1060_v40 = vmul.f32 %v2512_v4, %v1042_v14 }
 0x8d1   :  { %v1061_v60 = vadd.f32 %v1060_v40, %v1058_v18 }
 0x8d3   :  { %1062 = vadd.xlane.f32.xlu1 %v1061_v60 }
 0x95c   :  { %v1063_v24 = vpop.xlane.xlu1 %1062 }
 0x95d   :  { %v1064_v61 = vmul.f32 8.0, %v1063_v24 }
 0x95f   :  { %2513 = vrcp.f32 %v1064_v61 }
 0x96c   :  { %v2514_v0 = vpop.eup %2513 }
 0x96d   :  { %v1066_v41 = vmul.f32 %v2514_v0, %v1058_v18  ;;  %v1067_v15 = vmul.f32 %v2514_v0, %v1060_v40 }
 0x96f   :  { %v1068_v48 = vrot.slane %v1066_v41, 4  ;;  %v1074_v21 = vrot.slane %v1067_v15, 4 }
 0x971   :  { %v1069_v20 = vadd.f32 %v1068_v48, %v1066_v41  ;;  %v1075_v49 = vadd.f32 %v1074_v21, %v1067_v15 }
 0x973   :  { %v1070_v54 = vrot.slane %v1069_v20, 2  ;;  %v1076_v52 = vrot.slane %v1075_v49, 2 }
 0x975   :  { %v1071_v31 = vadd.f32 %v1070_v54, %v1069_v20  ;;  %v1077_v57 = vadd.f32 %v1076_v52, %v1075_v49 }
 0x977   :  { %v1072_v45 = vrot.slane %v1071_v31, 1  ;;  %v1078_v9 = vrot.slane %v1077_v57, 1 }
 0x979   :  { %v1073_v10 = vadd.f32 %v1072_v45, %v1071_v31  ;;  %v1079_v25 = vadd.f32 %v1078_v9, %v1077_v57 }
 0x97b   :  { %v1080_v2 = vmul.f32 256.0, %v1073_v10  ;;  %v1081_v3 = vmul.f32 256.0, %v1079_v25 }
 0x97d   :  { %2515 = vrcp.f32 %v1080_v2 }
 0x97e   :  { %2517 = vrcp.f32 %v1081_v3 }
 0x98a   :  { %v2516_v5 = vpop.eup %2515 }
 0x98b   :  { %v2518_v22 = vpop.eup %2517  ;;  %v1083_v55 = vmul.f32 %v2516_v5, %v1066_v41 }
 0x98c   :  { %v1085_v11 = vmul.f32 %v2518_v22, %v1067_v15 }
 0x98e   :  { %v1086_v34 = vadd.f32 %v1085_v11, %v1083_v55 }
 0x990   :  { %1087 = vadd.xlane.f32.xlu0 %v1086_v34 }
 0xa19   :  { %v1088_v14 = vpop.xlane.xlu0 %1087 }
 0xa1a   :  { %v1089_v39 = vmul.f32 8.0, %v1088_v14 }
 0xa1c   :  { %2519 = vrcp.f32 %v1089_v39 }
 0xa29   :  { %v2520_v58 = vpop.eup %2519 }
 0xa2a   :  { %v1091_v53 = vmul.f32 %v2520_v58, %v1083_v55  ;;  %v1092_v19 = vmul.f32 %v2520_v58, %v1085_v11 }
 0xa2c   :  { %v1093_v8 = vrot.slane %v1091_v53, 4  ;;  %v1099_v26 = vrot.slane %v1092_v19, 4 }
 0xa2e   :  { %v1094_v35 = vadd.f32 %v1093_v8, %v1091_v53  ;;  %v1100_v50 = vadd.f32 %v1099_v26, %v1092_v19  ;;  %v2407_v26 = vld [vmem:[%s3291_s5 + $0x8] sm:$0xff] }
 0xa30   :  { %v1095_v27 = vrot.slane %v1094_v35, 2  ;;  %v1101_v51 = vrot.slane %v1100_v50, 2 }
 0xa32   :  { %v1096_v36 = vadd.f32 %v1095_v27, %v1094_v35  ;;  %v1102_v32 = vadd.f32 %v1101_v51, %v1100_v50  ;;  %v1499_v35 = vmul.f32 %v2407_v26, %v2407_v26 }
 0xa34   :  { %v1097_v46 = vrot.slane %v1096_v36, 1  ;;  %v1103_v44 = vrot.slane %v1102_v32, 1  ;;  %v1500_v50 = vsel %vm408_vm0, %v1499_v35, 0.0 }
 0xa36   :  { %v1098_v47 = vadd.f32 %v1097_v46, %v1096_v36  ;;  %v1104_v4 = vadd.f32 %v1103_v44, %v1102_v32 }
 0xa38   :  { %2521 = vrcp.f32 %v1098_v47 }
 0xa39   :  { %2523 = vrcp.f32 %v1104_v4 }
 0xa45   :  { %v2522_v18 = vpop.eup %2521 }
 0xa46   :  { %v2524_v40 = vpop.eup %2523  ;;  %v1106_v60 = vmul.f32 %v2522_v18, %v1091_v53 }
 0xa47   :  { %v1108_v24 = vmul.f32 %v2524_v40, %v1092_v19 }
 0xa48   :  { %v1109_v61 = vrot.slane %v1106_v60, 4 }
 0xa49   :  { %v1115_v0 = vrot.slane %v1108_v24, 4 }
 0xa4a   :  { %v1110_v41 = vmax.f32 %v1106_v60, %v1109_v61 }
 0xa4b   :  { %v1116_v15 = vmax.f32 %v1108_v24, %v1115_v0 }
 0xa4c   :  { %v1111_v48 = vrot.slane %v1110_v41, 2 }
 0xa4d   :  { %v1117_v21 = vrot.slane %v1116_v15, 2 }
 0xa4e   :  { %v1112_v20 = vmax.f32 %v1110_v41, %v1111_v48 }
 0xa4f   :  { %v1118_v49 = vmax.f32 %v1116_v15, %v1117_v21 }
 0xa50   :  { %v1113_v54 = vrot.slane %v1112_v20, 1 }
 0xa51   :  { %v1119_v52 = vrot.slane %v1118_v49, 1 }
 0xa52   :  { %v1114_v31 = vmax.f32 %v1112_v20, %v1113_v54 }
 0xa53   :  { %v1120_v57 = vmax.f32 %v1118_v49, %v1119_v52 }
 0xa54   :  { %vm1121_vm13 = vcmp.eq.f32.partialorder %v1106_v60, %v1114_v31 }
 0xa55   :  { %vm1122_vm14 = vcmp.eq.f32.partialorder %v1108_v24, %v1120_v57  ;;  %v1123_v45 = vsel %vm1121_vm13, %v2821_v17, 8 }
 0xa56   :  { %v1124_v9 = vsel %vm1122_vm14, %v2821_v17, 8  ;;  %v1125_v10 = vrot.slane %v1123_v45, 4 }
 0xa57   :  { %v1134_v25 = vrot.slane %v1124_v9, 4 }
 0xa58   :  { %vm1126_vm15 = vcmp.lt.s32.totalorder %v1123_v45, %v1125_v10 }
 0xa59   :  { %vm1135_vm1 = vcmp.lt.s32.totalorder %v1124_v9, %v1134_v25  ;;  %v1127_v2 = vsel %vm1126_vm15, %v1123_v45, %v1125_v10 }
 0xa5a   :  { %v1136_v3 = vsel %vm1135_vm1, %v1124_v9, %v1134_v25  ;;  %v1128_v5 = vrot.slane %v1127_v2, 2 }
 0xa5b   :  { %v1137_v22 = vrot.slane %v1136_v3, 2 }
 0xa5c   :  { %vm1129_vm2 = vcmp.lt.s32.totalorder %v1127_v2, %v1128_v5 }
 0xa5d   :  { %vm1138_vm3 = vcmp.lt.s32.totalorder %v1136_v3, %v1137_v22  ;;  %v1130_v55 = vsel %vm1129_vm2, %v1127_v2, %v1128_v5 }
 0xa5e   :  { %v1139_v11 = vsel %vm1138_vm3, %v1136_v3, %v1137_v22  ;;  %v1131_v34 = vrot.slane %v1130_v55, 1 }
 0xa5f   :  { %v1140_v14 = vrot.slane %v1139_v11, 1 }
 0xa60   :  { %vm1132_vm4 = vcmp.lt.s32.totalorder %v1130_v55, %v1131_v34 }
 0xa61   :  { %vm1141_vm5 = vcmp.lt.s32.totalorder %v1139_v11, %v1140_v14  ;;  %v1133_v39 = vsel %vm1132_vm4, %v1130_v55, %v1131_v34 }
 0xa62   :  { %v1142_v58 = vsel %vm1141_vm5, %v1139_v11, %v1140_v14  ;;  %vm1143_vm6 = vcmp.eq.s32.totalorder %v2821_v17, %v1133_v39 }
 0xa63   :  { %vm1144_vm7 = vcmp.eq.s32.totalorder %v2821_v17, %v1142_v58  ;;  %vm2404_vm8 = vmpackc.low %vm1143_vm6, %vm1143_vm6  ;;  %v2400_v53 = vsel %vm1143_vm6, 1.0, %v2735_v12 }
 0xa64   :  { %vm2402_vm9 = vmpackc.low %vm1144_vm7, %vm1144_vm7  ;;  %v2401_v19 = vsel %vm1144_vm7, 1.0, %v2735_v12 }
 0xa65   :  { %2403 = vmatprep.mubr.msk.bf16.mxu0 %vm2402_vm9, %v2736_v38  ;;  %v1191_v8 = vadd.f32 %v2401_v19, %v2400_v53 }
 0xa66   :  { %2405 = vmatmul.mubr.msk.bf16.vlgmr.msra.gmra.mxu0 %vm2404_vm8, %v2736_v38 }
 0xa67   :  { %1764 = vmatpush1.bf16.xpose.msra.mxu0 %v3032_v28  ;;  %1192 = vadd.xlane.f32.xlu1 %v1191_v8 }
 0xa68   :  { %1765 = vmatprep.subr.bf16.mxu0 %v2963_v62 }
 0xa6b   :  { %1501 = vadd.xlane.f32.xlu1 %v1500_v50 }
 0xa6f   :  { %1766 = vmatpush1.bf16.xpose.msra.mxu0 %v2967_v63 }
 0xa70   :  { %2125 = vmatprep.subr.mxu0 %v3063_v29 }
 0xaf0   :  { %v1193_v27 = vpop.xlane.xlu1 %1192 }
 0xaf1   :  { %v1194_v51 = vmax.f32 %v1193_v27, 1.0 }
 0xaf3   :  { %2525 = vrcp.f32 %v1194_v51 }
 0xaf4   :  { %v1502_v24 = vpop.xlane.xlu1 %1501 }
 0xaf5   :  { %v1503_v0 = vadd.f32 1e-12, %v1502_v24 }
 0xb00   :  { %v2526_v36 = vpop.eup %2525 }
 0xb26   :  { %v1185_v32 = vpop.f32.mrf.mxu0 }
 0xb27   :  { %v1196_v46 = vmul.f32 %v2526_v36, %v1185_v32 }
 0xb28   :  { %v1187_v44 = vpop.f32.mrf.mxu0 }
 0xb29   :  { %v1197_v47 = vmul.f32 %v1196_v46, %v1196_v46 }
 0xb2a   :  { %v1188_v4 = vpop.f32.mrf.mxu0 }
 0xb2b   :  { %v1198_v18 = vsel %vm408_vm0, %v1197_v47, 0.0 }
 0xb2c   :  { %v1189_v40 = vpop.f32.mrf.mxu0  ;;  %1199 = vadd.xlane.f32.xlu0 %v1198_v18 }
 0xbb5   :  { %v1200_v60 = vpop.xlane.xlu0 %1199 }
 0xbb6   :  { %v1201_v61 = vadd.f32 1e-12, %v1200_v60 }
 0xbb8   :  { %2527 = vrsqrt.f32 %v1201_v61 }
 0xbb9   :  { %2529 = vrsqrt.f32 %v1503_v0 }
 0xbc5   :  { %v2528_v41 = vpop.eup %2527 }
 0xbc6   :  { %v1203_v15 = vmul.f32 %v2528_v41, %v1196_v46  ;;  %v2530_v48 = vpop.eup %2529 }
 0xbc7   :  { %v1505_v21 = vmul.f32 %v2530_v48, %v2407_v26 }
 0xbc8   :  { %2406 = vmatmul.mubr.msk.f32.vlgmr.msra.gmra.mxu1 %vm408_vm0, %v1203_v15 }
 0xbc9   :  { %1534 = vmatpush1.msra.mxu1 %v3081_v6  ;;  %1573 = vmatprep.mubr.f32.mxu1 %v2735_v12 }
 0xbca   :  { %1535 = vmatprep.subr.mxu1 %v3066_v30 }
 0xbcb   :  { %1536 = vmatpush1.msra.mxu1 %v3084_v1 }
 0xbcc   :  { %1537 = vmatprep.subr.mxu1 %v3069_v23 }
 0xbcd   :  { %1538 = vmatpush1.msra.mxu1 %v3087_v43 }
 0xbce   :  { %1539 = vmatprep.subr.mxu1 %v3072_v33 }
 0xbcf   :  { %1540 = vmatpush1.msra.mxu1 %v3094_v7 }
 0xbd0   :  { %2408 = vmatmul.mubr.msk.f32.vlgmr.msra.gmra.mxu1 %vm408_vm0, %v1505_v21  ;;  %1831 = vmatprep.subr.mxu1 %v3063_v29 }
 0xbd1   :  { %1832 = vmatpush1.msra.mxu1 %v3081_v6  ;;  %1871 = vmatprep.mubr.f32.mxu1 %v2735_v12 }
 0xbd2   :  { %1833 = vmatprep.subr.mxu1 %v3066_v30 }
 0xbd3   :  { %1834 = vmatpush1.msra.mxu1 %v3084_v1 }
 0xbd4   :  { %1835 = vmatprep.subr.mxu1 %v3069_v23 }
 0xbd5   :  { %1836 = vmatpush1.msra.mxu1 %v3087_v43 }
 0xbd6   :  { %1837 = vmatprep.subr.mxu1 %v3072_v33 }
 0xbd7   :  { %1838 = vmatpush1.msra.mxu1 %v3094_v7 }
 0xbd8   :  { %2057 = vmatprep.subr.bf16.mxu1 %v3023_v56 }
 0xc88   :  { %v3193_v20 = vpop.f32.mrf.mxu1 }
 0xc8a   :  { %v3195_v29 = vpop.f32.mrf.mxu1 }
 0xc90   :  { %v1575_v49 = vpop.f32.mrf.mxu1 }
 0xc91   :  { %v1580_v54 = vrot.slane %v1575_v49, 4 }
 0xc92   :  { %v1577_v52 = vpop.f32.mrf.mxu1 }
 0xc93   :  { %v1581_v31 = vmax.f32 %v1575_v49, %v1580_v54  ;;  %v1586_v57 = vrot.slane %v1577_v52, 4 }
 0xc95   :  { %v1582_v45 = vrot.slane %v1581_v31, 2  ;;  %v1587_v9 = vmax.f32 %v1577_v52, %v1586_v57 }
 0xc97   :  { %v1583_v10 = vmax.f32 %v1581_v31, %v1582_v45  ;;  %v1588_v25 = vrot.slane %v1587_v9, 2 }
 0xc99   :  { %v1584_v2 = vrot.slane %v1583_v10, 1  ;;  %v1589_v3 = vmax.f32 %v1587_v9, %v1588_v25 }
 0xc9b   :  { %v1585_v5 = vmax.f32 %v1583_v10, %v1584_v2  ;;  %v1590_v22 = vrot.slane %v1589_v3, 1 }
 0xc9d   :  { %v1592_v55 = vsub.f32 %v1575_v49, %v1585_v5  ;;  %v1591_v11 = vmax.f32 %v1589_v3, %v1590_v22 }
 0xc9f   :  { %v1594_v56 = vmul.f32 1.442695, %v1592_v55  ;;  %v1593_v34 = vsub.f32 %v1577_v52, %v1591_v11 }
 0xca1   :  { %2531 = vpow2.f32 %v1594_v56  ;;  %v1596_v14 = vmul.f32 1.442695, %v1593_v34 }
 0xca3   :  { %2533 = vpow2.f32 %v1596_v14 }
 0xcae   :  { %v2532_v39 = vpop.eup %2531 }
 0xcaf   :  { %v1598_v58 = vrot.slane %v2532_v39, 4 }
 0xcb0   :  { %v2534_v53 = vpop.eup %2533 }
 0xcb1   :  { %v1604_v19 = vrot.slane %v2534_v53, 4  ;;  %v1599_v8 = vadd.f32 %v2532_v39, %v1598_v58 }
 0xcb3   :  { %v1600_v26 = vrot.slane %v1599_v8, 2  ;;  %v1605_v35 = vadd.f32 %v2534_v53, %v1604_v19 }
 0xcb5   :  { %v1601_v50 = vadd.f32 %v1600_v26, %v1599_v8  ;;  %v1606_v27 = vrot.slane %v1605_v35, 2 }
 0xcb7   :  { %v1602_v51 = vrot.slane %v1601_v50, 1  ;;  %v1607_v36 = vadd.f32 %v1606_v27, %v1605_v35 }
 0xcb9   :  { %v1603_v32 = vadd.f32 %v1602_v51, %v1601_v50  ;;  %v1608_v46 = vrot.slane %v1607_v36, 1 }
 0xcbb   :  { %v1609_v44 = vadd.f32 %v1608_v46, %v1607_v36  ;;  %2535 = vrcp.f32 %v1603_v32 }
 0xcbd   :  { %2537 = vrcp.f32 %v1609_v44 }
 0xcc8   :  { %v2536_v47 = vpop.eup %2535 }
 0xcc9   :  { %v1611_v4 = vmul.f32 %v2536_v47, %v2532_v39 }
 0xcca   :  { %v2538_v18 = vpop.eup %2537 }
 0xccb   :  { %v1613_v40 = vmul.f32 %v2538_v18, %v2534_v53  ;;  %v1614_v60 = vmul.f32 20.0, %v1611_v4 }
 0xccd   :  { %v1615_v24 = vmul.f32 20.0, %v1613_v40  ;;  %v1616_v61 = vmul.f32 1.442695, %v1614_v60 }
 0xccf   :  { %v1618_v0 = vmul.f32 1.442695, %v1615_v24  ;;  %2539 = vpow2.f32 %v1616_v61 }
 0xcd1   :  { %2541 = vpow2.f32 %v1618_v0 }
 0xcdc   :  { %v2540_v41 = vpop.eup %2539 }
 0xcde   :  { %v2542_v15 = vpop.eup %2541 }
 0xcdf   :  { %v1620_v48 = vadd.f32 %v2542_v15, %v2540_v41 }
 0xce1   :  { %1621 = vadd.xlane.f32.xlu0 %v1620_v48 }
 0xd6a   :  { %v1622_v21 = vpop.xlane.xlu0 %1621 }
 0xd6b   :  { %v1623_v49 = vrot.slane %v1622_v21, 4 }
 0xd6d   :  { %v1624_v54 = vadd.f32 %v1623_v49, %v1622_v21 }
 0xd6f   :  { %v1625_v52 = vrot.slane %v1624_v54, 2 }
 0xd71   :  { %v1626_v31 = vadd.f32 %v1625_v52, %v1624_v54 }
 0xd73   :  { %v1627_v57 = vrot.slane %v1626_v31, 1 }
 0xd75   :  { %v1628_v45 = vadd.f32 %v1627_v57, %v1626_v31 }
 0xd77   :  { %2543 = vrcp.f32 %v1628_v45 }
 0xd84   :  { %v2544_v9 = vpop.eup %2543 }
 0xd85   :  { %v1630_v10 = vmul.f32 %v2544_v9, %v2540_v41  ;;  %v1631_v25 = vmul.f32 %v2544_v9, %v2542_v15 }
 0xd87   :  { %v1632_v2 = vadd.f32 %v1631_v25, %v1630_v10 }
 0xd89   :  { %1633 = vadd.xlane.f32.xlu1 %v1632_v2 }
 0xe12   :  { %v1634_v3 = vpop.xlane.xlu1 %1633 }
 0xe13   :  { %v1635_v5 = vmul.f32 8.0, %v1634_v3 }
 0xe15   :  { %2545 = vrcp.f32 %v1635_v5 }
 0xe22   :  { %v2546_v22 = vpop.eup %2545 }
 0xe23   :  { %v1637_v55 = vmul.f32 %v2546_v22, %v1630_v10  ;;  %v1638_v11 = vmul.f32 %v2546_v22, %v1631_v25 }
 0xe25   :  { %v1639_v56 = vrot.slane %v1637_v55, 4  ;;  %v1645_v34 = vrot.slane %v1638_v11, 4 }
 0xe27   :  { %v1640_v14 = vadd.f32 %v1639_v56, %v1637_v55  ;;  %v1646_v39 = vadd.f32 %v1645_v34, %v1638_v11 }
 0xe29   :  { %v1641_v58 = vrot.slane %v1640_v14, 2  ;;  %v1647_v53 = vrot.slane %v1646_v39, 2 }
 0xe2b   :  { %v1642_v19 = vadd.f32 %v1641_v58, %v1640_v14  ;;  %v1648_v8 = vadd.f32 %v1647_v53, %v1646_v39 }
 0xe2d   :  { %v1643_v26 = vrot.slane %v1642_v19, 1  ;;  %v1649_v35 = vrot.slane %v1648_v8, 1 }
 0xe2f   :  { %v1644_v50 = vadd.f32 %v1643_v26, %v1642_v19  ;;  %v1650_v27 = vadd.f32 %v1649_v35, %v1648_v8 }
 0xe31   :  { %v1651_v51 = vmul.f32 256.0, %v1644_v50  ;;  %v1652_v36 = vmul.f32 256.0, %v1650_v27 }
 0xe33   :  { %2547 = vrcp.f32 %v1651_v51 }
 0xe34   :  { %2549 = vrcp.f32 %v1652_v36 }
 0xe40   :  { %v2548_v32 = vpop.eup %2547 }
 0xe41   :  { %v2550_v46 = vpop.eup %2549  ;;  %v1654_v44 = vmul.f32 %v2548_v32, %v1637_v55 }
 0xe42   :  { %v1656_v47 = vmul.f32 %v2550_v46, %v1638_v11 }
 0xe44   :  { %v1657_v4 = vadd.f32 %v1656_v47, %v1654_v44 }
 0xe46   :  { %1658 = vadd.xlane.f32.xlu0 %v1657_v4 }
 0xecf   :  { %v1659_v18 = vpop.xlane.xlu0 %1658 }
 0xed0   :  { %v1660_v40 = vmul.f32 8.0, %v1659_v18 }
 0xed2   :  { %2551 = vrcp.f32 %v1660_v40 }
 0xedf   :  { %v2552_v60 = vpop.eup %2551 }
 0xee0   :  { %v1662_v24 = vmul.f32 %v2552_v60, %v1654_v44  ;;  %v1663_v61 = vmul.f32 %v2552_v60, %v1656_v47 }
 0xee2   :  { %v1664_v0 = vrot.slane %v1662_v24, 4  ;;  %v1670_v41 = vrot.slane %v1663_v61, 4 }
 0xee4   :  { %v1665_v15 = vadd.f32 %v1664_v0, %v1662_v24  ;;  %v1671_v48 = vadd.f32 %v1670_v41, %v1663_v61 }
 0xee6   :  { %v1666_v21 = vrot.slane %v1665_v15, 2  ;;  %v1672_v49 = vrot.slane %v1671_v48, 2 }
 0xee8   :  { %v1667_v54 = vadd.f32 %v1666_v21, %v1665_v15  ;;  %v1673_v52 = vadd.f32 %v1672_v49, %v1671_v48 }
 0xeea   :  { %v1668_v31 = vrot.slane %v1667_v54, 1  ;;  %v1674_v57 = vrot.slane %v1673_v52, 1 }
 0xeec   :  { %v1669_v45 = vadd.f32 %v1668_v31, %v1667_v54  ;;  %v1675_v9 = vadd.f32 %v1674_v57, %v1673_v52 }
 0xeee   :  { %v1676_v10 = vmul.f32 256.0, %v1669_v45  ;;  %v1677_v25 = vmul.f32 256.0, %v1675_v9 }
 0xef0   :  { %2553 = vrcp.f32 %v1676_v10 }
 0xef1   :  { %2555 = vrcp.f32 %v1677_v25 }
 0xefd   :  { %v2554_v2 = vpop.eup %2553 }
 0xefe   :  { %v2556_v3 = vpop.eup %2555  ;;  %v1679_v5 = vmul.f32 %v2554_v2, %v1662_v24 }
 0xeff   :  { %v1681_v22 = vmul.f32 %v2556_v3, %v1663_v61 }
 0xf01   :  { %v1682_v55 = vadd.f32 %v1681_v22, %v1679_v5 }
 0xf03   :  { %1683 = vadd.xlane.f32.xlu1 %v1682_v55 }
 0xf8c   :  { %v1684_v11 = vpop.xlane.xlu1 %1683 }
 0xf8d   :  { %v1685_v56 = vmul.f32 8.0, %v1684_v11 }
 0xf8f   :  { %2557 = vrcp.f32 %v1685_v56 }
 0xf9c   :  { %v2558_v34 = vpop.eup %2557 }
 0xf9d   :  { %v1687_v14 = vmul.f32 %v2558_v34, %v1679_v5  ;;  %v1688_v39 = vmul.f32 %v2558_v34, %v1681_v22 }
 0xf9f   :  { %v1689_v58 = vrot.slane %v1687_v14, 4  ;;  %v1695_v53 = vrot.slane %v1688_v39, 4 }
 0xfa1   :  { %v1690_v19 = vadd.f32 %v1689_v58, %v1687_v14  ;;  %v1696_v8 = vadd.f32 %v1695_v53, %v1688_v39 }
 0xfa3   :  { %v1691_v26 = vrot.slane %v1690_v19, 2  ;;  %v1697_v35 = vrot.slane %v1696_v8, 2 }
 0xfa5   :  { %v1692_v50 = vadd.f32 %v1691_v26, %v1690_v19  ;;  %v1698_v27 = vadd.f32 %v1697_v35, %v1696_v8 }
 0xfa7   :  { %v1693_v51 = vrot.slane %v1692_v50, 1  ;;  %v1699_v36 = vrot.slane %v1698_v27, 1 }
 0xfa9   :  { %v1694_v32 = vadd.f32 %v1693_v51, %v1692_v50  ;;  %v1700_v46 = vadd.f32 %v1699_v36, %v1698_v27 }
 0xfab   :  { %2559 = vrcp.f32 %v1694_v32 }
 0xfac   :  { %2561 = vrcp.f32 %v1700_v46 }
 0xfb8   :  { %v2560_v44 = vpop.eup %2559 }
 0xfb9   :  { %v2562_v47 = vpop.eup %2561  ;;  %v1702_v4 = vmul.f32 %v2560_v44, %v1687_v14 }
 0xfba   :  { %v1704_v18 = vmul.f32 %v2562_v47, %v1688_v39 }
 0xfbb   :  { %v1705_v40 = vrot.slane %v1702_v4, 4 }
 0xfbc   :  { %v1711_v60 = vrot.slane %v1704_v18, 4 }
 0xfbd   :  { %v1706_v24 = vmax.f32 %v1702_v4, %v1705_v40 }
 0xfbe   :  { %v1712_v61 = vmax.f32 %v1704_v18, %v1711_v60 }
 0xfbf   :  { %v1707_v0 = vrot.slane %v1706_v24, 2 }
 0xfc0   :  { %v1713_v41 = vrot.slane %v1712_v61, 2 }
 0xfc1   :  { %v1708_v15 = vmax.f32 %v1706_v24, %v1707_v0 }
 0xfc2   :  { %v1714_v48 = vmax.f32 %v1712_v61, %v1713_v41 }
 0xfc3   :  { %v1709_v21 = vrot.slane %v1708_v15, 1 }
 0xfc4   :  { %v1715_v49 = vrot.slane %v1714_v48, 1 }
 0xfc5   :  { %v1710_v54 = vmax.f32 %v1708_v15, %v1709_v21 }
 0xfc6   :  { %v1716_v52 = vmax.f32 %v1714_v48, %v1715_v49 }
 0xfc7   :  { %vm1717_vm10 = vcmp.eq.f32.partialorder %v1702_v4, %v1710_v54 }
 0xfc8   :  { %vm1718_vm11 = vcmp.eq.f32.partialorder %v1704_v18, %v1716_v52  ;;  %v1719_v31 = vsel %vm1717_vm10, %v2821_v17, 8 }
 0xfc9   :  { %v1720_v57 = vsel %vm1718_vm11, %v2821_v17, 8  ;;  %v1721_v45 = vrot.slane %v1719_v31, 4 }
 0xfca   :  { %v1730_v9 = vrot.slane %v1720_v57, 4 }
 0xfcb   :  { %vm1722_vm12 = vcmp.lt.s32.totalorder %v1719_v31, %v1721_v45 }
 0xfcc   :  { %vm1731_vm13 = vcmp.lt.s32.totalorder %v1720_v57, %v1730_v9  ;;  %v1723_v10 = vsel %vm1722_vm12, %v1719_v31, %v1721_v45 }
 0xfcd   :  { %v1732_v25 = vsel %vm1731_vm13, %v1720_v57, %v1730_v9  ;;  %v1724_v2 = vrot.slane %v1723_v10, 2 }
 0xfce   :  { %v1733_v3 = vrot.slane %v1732_v25, 2 }
 0xfcf   :  { %vm1725_vm14 = vcmp.lt.s32.totalorder %v1723_v10, %v1724_v2 }
 0xfd0   :  { %vm1734_vm15 = vcmp.lt.s32.totalorder %v1732_v25, %v1733_v3  ;;  %v1726_v5 = vsel %vm1725_vm14, %v1723_v10, %v1724_v2 }
 0xfd1   :  { %v1735_v22 = vsel %vm1734_vm15, %v1732_v25, %v1733_v3  ;;  %v1727_v55 = vrot.slane %v1726_v5, 1 }
 0xfd2   :  { %v1736_v11 = vrot.slane %v1735_v22, 1 }
 0xfd3   :  { %vm1728_vm1 = vcmp.lt.s32.totalorder %v1726_v5, %v1727_v55 }
 0xfd4   :  { %vm1737_vm2 = vcmp.lt.s32.totalorder %v1735_v22, %v1736_v11  ;;  %v1729_v56 = vsel %vm1728_vm1, %v1726_v5, %v1727_v55 }
 0xfd5   :  { %v1738_v34 = vsel %vm1737_vm2, %v1735_v22, %v1736_v11  ;;  %vm1739_vm3 = vcmp.eq.s32.totalorder %v2821_v17, %v1729_v56 }
 0xfd6   :  { %vm1740_vm4 = vcmp.eq.s32.totalorder %v2821_v17, %v1738_v34  ;;  %vm2413_vm5 = vmpackc.low %vm1739_vm3, %vm1739_vm3  ;;  %v2409_v14 = vsel %vm1739_vm3, 1.0, %v2735_v12 }
 0xfd7   :  { %vm2411_vm6 = vmpackc.low %vm1740_vm4, %vm1740_vm4  ;;  %v2410_v39 = vsel %vm1740_vm4, 1.0, %v2735_v12 }
 0xfd8   :  { %2412 = vmatprep.mubr.msk.bf16.mxu0 %vm2411_vm6, %v2736_v38  ;;  %v1791_v58 = vadd.f32 %v2410_v39, %v2409_v14 }
 0xfd9   :  { %2414 = vmatmul.mubr.msk.bf16.vlgmr.msra.gmra.mxu0 %vm2413_vm5, %v2736_v38 }
 0xfda   :  { %2126 = vmatpush1.msra.mxu0 %v3081_v6  ;;  %1792 = vadd.xlane.f32.xlu0 %v1791_v58 }
 0xfdb   :  { %2127 = vmatprep.subr.mxu0 %v3066_v30  ;;  %2165 = vmatprep.mubr.f32.mxu0 %v2735_v12 }
 0xfdc   :  { %2128 = vmatpush1.msra.mxu0 %v3084_v1 }
 0xfdd   :  { %2129 = vmatprep.subr.mxu0 %v3069_v23 }
 0xfde   :  { %2130 = vmatpush1.msra.mxu0 %v3087_v43 }
 0xfdf   :  { %2131 = vmatprep.subr.mxu0 %v3072_v33 }
 0xfe0   :  { %2132 = vmatpush1.msra.mxu0 %v3094_v7 }
0x1063   :  { %v1793_v53 = vpop.xlane.xlu0 %1792 }
0x1064   :  { %v1794_v19 = vmax.f32 %v1793_v53, 1.0 }
0x1066   :  { %2563 = vrcp.f32 %v1794_v19 }
0x1073   :  { %v2564_v8 = vpop.eup %2563 }
0x1099   :  { %v1785_v6 = vpop.f32.mrf.mxu0 }
0x109a   :  { %v1796_v26 = vmul.f32 %v2564_v8, %v1785_v6 }
0x109b   :  { %v1787_v35 = vpop.f32.mrf.mxu0 }
0x109c   :  { %v1797_v30 = vmul.f32 %v1796_v26, %v1796_v26 }
0x109d   :  { %v1788_v50 = vpop.f32.mrf.mxu0 }
0x109e   :  { %v1798_v27 = vsel %vm408_vm0, %v1797_v30, 0.0 }
0x109f   :  { %v1789_v1 = vpop.f32.mrf.mxu0  ;;  %1799 = vadd.xlane.f32.xlu1 %v1798_v27 }
0x1128   :  { %v1800_v23 = vpop.xlane.xlu1 %1799 }
0x1129   :  { %v1801_v51 = vadd.f32 1e-12, %v1800_v23 }
0x112b   :  { %2565 = vrsqrt.f32 %v1801_v51 }
0x1138   :  { %v2566_v43 = vpop.eup %2565 }
0x1139   :  { %v1803_v33 = vmul.f32 %v2566_v43, %v1796_v26 }
0x113b   :  { %2415 = vmatmul.mubr.msk.f32.vlgmr.msra.gmra.mxu1 %vm408_vm0, %v1803_v33 }
0x113c   :  { %2058 = vmatpush1.bf16.xpose.msra.mxu1 %v3032_v28 }
0x113d   :  { %2059 = vmatprep.subr.bf16.mxu1 %v2963_v62 }
0x1144   :  { %2060 = vmatpush1.bf16.xpose.msra.mxu1 %v2967_v63 }
0x11fb   :  { %v1873_v7 = vpop.f32.mrf.mxu1 }
0x11fc   :  { %v1878_v36 = vrot.slane %v1873_v7, 4 }
0x11fd   :  { %v1875_v32 = vpop.f32.mrf.mxu1 }
0x11fe   :  { %v1879_v46 = vmax.f32 %v1873_v7, %v1878_v36  ;;  %v1884_v44 = vrot.slane %v1875_v32, 4 }
0x1200   :  { %v1880_v47 = vrot.slane %v1879_v46, 2  ;;  %v1885_v4 = vmax.f32 %v1875_v32, %v1884_v44 }
0x1202   :  { %v1881_v18 = vmax.f32 %v1879_v46, %v1880_v47  ;;  %v1886_v40 = vrot.slane %v1885_v4, 2 }
0x1204   :  { %v1882_v60 = vrot.slane %v1881_v18, 1  ;;  %v1887_v24 = vmax.f32 %v1885_v4, %v1886_v40 }
0x1206   :  { %v1883_v61 = vmax.f32 %v1881_v18, %v1882_v60  ;;  %v1888_v0 = vrot.slane %v1887_v24, 1 }
0x1208   :  { %v1890_v41 = vsub.f32 %v1873_v7, %v1883_v61  ;;  %v1889_v15 = vmax.f32 %v1887_v24, %v1888_v0 }
0x120a   :  { %v1892_v28 = vmul.f32 1.442695, %v1890_v41  ;;  %v1891_v48 = vsub.f32 %v1875_v32, %v1889_v15 }
0x120c   :  { %2567 = vpow2.f32 %v1892_v28  ;;  %v1894_v62 = vmul.f32 1.442695, %v1891_v48 }
0x120e   :  { %2569 = vpow2.f32 %v1894_v62 }
0x1219   :  { %v2568_v63 = vpop.eup %2567 }
0x121a   :  { %v1896_v21 = vrot.slane %v2568_v63, 4 }
0x121b   :  { %v2570_v49 = vpop.eup %2569 }
0x121c   :  { %v1902_v54 = vrot.slane %v2570_v49, 4  ;;  %v1897_v52 = vadd.f32 %v2568_v63, %v1896_v21 }
0x121e   :  { %v1898_v31 = vrot.slane %v1897_v52, 2  ;;  %v1903_v57 = vadd.f32 %v2570_v49, %v1902_v54 }
0x1220   :  { %v1899_v45 = vadd.f32 %v1898_v31, %v1897_v52  ;;  %v1904_v9 = vrot.slane %v1903_v57, 2 }
0x1222   :  { %v1900_v10 = vrot.slane %v1899_v45, 1  ;;  %v1905_v25 = vadd.f32 %v1904_v9, %v1903_v57 }
0x1224   :  { %v1901_v2 = vadd.f32 %v1900_v10, %v1899_v45  ;;  %v1906_v3 = vrot.slane %v1905_v25, 1 }
0x1226   :  { %v1907_v5 = vadd.f32 %v1906_v3, %v1905_v25  ;;  %2571 = vrcp.f32 %v1901_v2 }
0x1228   :  { %2573 = vrcp.f32 %v1907_v5 }
0x1233   :  { %v2572_v22 = vpop.eup %2571 }
0x1234   :  { %v1909_v55 = vmul.f32 %v2572_v22, %v2568_v63 }
0x1235   :  { %v2574_v11 = vpop.eup %2573 }
0x1236   :  { %v1911_v56 = vmul.f32 %v2574_v11, %v2570_v49  ;;  %v1912_v34 = vmul.f32 20.0, %v1909_v55 }
0x1238   :  { %v1913_v14 = vmul.f32 20.0, %v1911_v56  ;;  %v1914_v39 = vmul.f32 1.442695, %v1912_v34 }
0x123a   :  { %v1916_v58 = vmul.f32 1.442695, %v1913_v14  ;;  %2575 = vpow2.f32 %v1914_v39 }
0x123c   :  { %2577 = vpow2.f32 %v1916_v58 }
0x1247   :  { %v2576_v53 = vpop.eup %2575 }
0x1249   :  { %v2578_v19 = vpop.eup %2577 }
0x124a   :  { %v1918_v8 = vadd.f32 %v2578_v19, %v2576_v53 }
0x124c   :  { %1919 = vadd.xlane.f32.xlu0 %v1918_v8 }
0x12d5   :  { %v1920_v6 = vpop.xlane.xlu0 %1919 }
0x12d6   :  { %v1921_v26 = vrot.slane %v1920_v6, 4 }
0x12d8   :  { %v1922_v35 = vadd.f32 %v1921_v26, %v1920_v6 }
0x12da   :  { %v1923_v30 = vrot.slane %v1922_v35, 2 }
0x12dc   :  { %v1924_v50 = vadd.f32 %v1923_v30, %v1922_v35 }
0x12de   :  { %v1925_v27 = vrot.slane %v1924_v50, 1 }
0x12e0   :  { %v1926_v1 = vadd.f32 %v1925_v27, %v1924_v50  ;;  %v1284_v27 = vrot.slane %v3195_v29, 4 }
0x12e2   :  { %2579 = vrcp.f32 %v1926_v1  ;;  %v1278_v1 = vrot.slane %v3193_v20, 4 }
0x12ef   :  { %v2580_v23 = vpop.eup %2579 }
0x12f0   :  { %v1928_v51 = vmul.f32 %v2580_v23, %v2576_v53  ;;  %v1929_v43 = vmul.f32 %v2580_v23, %v2578_v19  ;;  %v1285_v23 = vmax.f32 %v3195_v29, %v1284_v27 }
0x12f2   :  { %v1930_v33 = vadd.f32 %v1929_v43, %v1928_v51 }
0x12f4   :  { %1931 = vadd.xlane.f32.xlu1 %v1930_v33 }
0x137d   :  { %v1932_v7 = vpop.xlane.xlu1 %1931 }
0x137e   :  { %v1933_v36 = vmul.f32 8.0, %v1932_v7 }
0x1380   :  { %2581 = vrcp.f32 %v1933_v36 }
0x138d   :  { %v2582_v32 = vpop.eup %2581 }
0x138e   :  { %v1935_v46 = vmul.f32 %v2582_v32, %v1928_v51  ;;  %v1936_v44 = vmul.f32 %v2582_v32, %v1929_v43  ;;  %v1279_v51 = vmax.f32 %v3193_v20, %v1278_v1  ;;  %v1286_v43 = vrot.slane %v1285_v23, 2 }
0x1390   :  { %v1937_v47 = vrot.slane %v1935_v46, 4  ;;  %v1943_v4 = vrot.slane %v1936_v44, 4  ;;  %v1280_v33 = vrot.slane %v1279_v51, 2  ;;  %v1287_v7 = vmax.f32 %v1285_v23, %v1286_v43 }
0x1392   :  { %v1938_v18 = vadd.f32 %v1937_v47, %v1935_v46  ;;  %v1944_v40 = vadd.f32 %v1943_v4, %v1936_v44  ;;  %v1281_v36 = vmax.f32 %v1279_v51, %v1280_v33  ;;  %v1288_v32 = vrot.slane %v1287_v7, 1 }
0x1394   :  { %v1939_v60 = vrot.slane %v1938_v18, 2  ;;  %v1945_v24 = vrot.slane %v1944_v40, 2 }
0x1396   :  { %v1940_v61 = vadd.f32 %v1939_v60, %v1938_v18  ;;  %v1946_v0 = vadd.f32 %v1945_v24, %v1944_v40 }
0x1398   :  { %v1941_v41 = vrot.slane %v1940_v61, 1  ;;  %v1947_v15 = vrot.slane %v1946_v0, 1 }
0x139a   :  { %v1942_v28 = vadd.f32 %v1941_v41, %v1940_v61  ;;  %v1948_v48 = vadd.f32 %v1947_v15, %v1946_v0 }
0x139c   :  { %v1949_v62 = vmul.f32 256.0, %v1942_v28  ;;  %v1950_v63 = vmul.f32 256.0, %v1948_v48 }
0x139e   :  { %2583 = vrcp.f32 %v1949_v62 }
0x139f   :  { %2585 = vrcp.f32 %v1950_v63 }
0x13ab   :  { %v2584_v21 = vpop.eup %2583 }
0x13ac   :  { %v2586_v49 = vpop.eup %2585  ;;  %v1952_v54 = vmul.f32 %v2584_v21, %v1935_v46  ;;  %v1282_v46 = vrot.slane %v1281_v36, 1 }
0x13ad   :  { %v1954_v52 = vmul.f32 %v2586_v49, %v1936_v44  ;;  %v1289_v44 = vmax.f32 %v1287_v7, %v1288_v32 }
0x13ae   :  { %v1283_v47 = vmax.f32 %v1281_v36, %v1282_v46 }
0x13af   :  { %v1955_v31 = vadd.f32 %v1954_v52, %v1952_v54  ;;  %v1291_v4 = vsub.f32 %v3195_v29, %v1289_v44 }
0x13b0   :  { %v1290_v18 = vsub.f32 %v3193_v20, %v1283_v47 }
0x13b1   :  { %1956 = vadd.xlane.f32.xlu0 %v1955_v31  ;;  %v1294_v40 = vmul.f32 1.442695, %v1291_v4 }
0x13b2   :  { %v1292_v60 = vmul.f32 1.442695, %v1290_v18 }
0x143a   :  { %v1957_v57 = vpop.xlane.xlu0 %1956 }
0x143b   :  { %v1958_v45 = vmul.f32 8.0, %v1957_v57 }
0x143d   :  { %2587 = vrcp.f32 %v1958_v45 }
0x144a   :  { %v2588_v9 = vpop.eup %2587 }
0x144b   :  { %v1960_v10 = vmul.f32 %v2588_v9, %v1952_v54  ;;  %v1961_v25 = vmul.f32 %v2588_v9, %v1954_v52 }
0x144d   :  { %v1962_v2 = vrot.slane %v1960_v10, 4  ;;  %v1968_v3 = vrot.slane %v1961_v25, 4 }
0x144f   :  { %v1963_v5 = vadd.f32 %v1962_v2, %v1960_v10  ;;  %v1969_v22 = vadd.f32 %v1968_v3, %v1961_v25 }
0x1451   :  { %v1964_v55 = vrot.slane %v1963_v5, 2  ;;  %v1970_v11 = vrot.slane %v1969_v22, 2 }
0x1453   :  { %v1965_v56 = vadd.f32 %v1964_v55, %v1963_v5  ;;  %v1971_v34 = vadd.f32 %v1970_v11, %v1969_v22 }
0x1455   :  { %v1966_v14 = vrot.slane %v1965_v56, 1  ;;  %v1972_v39 = vrot.slane %v1971_v34, 1 }
0x1457   :  { %v1967_v58 = vadd.f32 %v1966_v14, %v1965_v56  ;;  %v1973_v53 = vadd.f32 %v1972_v39, %v1971_v34 }
0x1459   :  { %v1974_v19 = vmul.f32 256.0, %v1967_v58  ;;  %v1975_v8 = vmul.f32 256.0, %v1973_v53 }
0x145b   :  { %2589 = vrcp.f32 %v1974_v19 }
0x145c   :  { %2591 = vrcp.f32 %v1975_v8 }
0x145d   :  { %2593 = vpow2.f32 %v1294_v40 }
0x145e   :  { %2595 = vpow2.f32 %v1292_v60 }
0x1468   :  { %v2590_v6 = vpop.eup %2589 }
0x1469   :  { %v2592_v26 = vpop.eup %2591  ;;  %v1977_v35 = vmul.f32 %v2590_v6, %v1960_v10 }
0x146a   :  { %v1979_v30 = vmul.f32 %v2592_v26, %v1961_v25  ;;  %v2594_v0 = vpop.eup %2593 }
0x146b   :  { %v2596_v41 = vpop.eup %2595  ;;  %v1302_v15 = vrot.slane %v2594_v0, 4 }
0x146c   :  { %v1980_v50 = vadd.f32 %v1979_v30, %v1977_v35  ;;  %v1296_v28 = vrot.slane %v2596_v41, 4 }
0x146d   :  { %v1303_v62 = vadd.f32 %v2594_v0, %v1302_v15 }
0x146e   :  { %1981 = vadd.xlane.f32.xlu1 %v1980_v50  ;;  %v1297_v49 = vadd.f32 %v2596_v41, %v1296_v28 }
0x146f   :  { %v1304_v52 = vrot.slane %v1303_v62, 2 }
0x1470   :  { %v1298_v57 = vrot.slane %v1297_v49, 2 }
0x1471   :  { %v1305_v10 = vadd.f32 %v1304_v52, %v1303_v62 }
0x1472   :  { %v1299_v3 = vadd.f32 %v1298_v57, %v1297_v49 }
0x1473   :  { %v1306_v55 = vrot.slane %v1305_v10, 1 }
0x1474   :  { %v1300_v34 = vrot.slane %v1299_v3, 1 }
0x1475   :  { %v1307_v14 = vadd.f32 %v1306_v55, %v1305_v10 }
0x1476   :  { %v1301_v39 = vadd.f32 %v1300_v34, %v1299_v3 }
0x14f7   :  { %v1982_v24 = vpop.xlane.xlu1 %1981 }
0x14f8   :  { %v1983_v61 = vmul.f32 8.0, %v1982_v24 }
0x14fa   :  { %2597 = vrcp.f32 %v1983_v61 }
0x1507   :  { %v2598_v48 = vpop.eup %2597 }
0x1508   :  { %v1985_v63 = vmul.f32 %v2598_v48, %v1977_v35  ;;  %v1986_v21 = vmul.f32 %v2598_v48, %v1979_v30 }
0x150a   :  { %v1987_v54 = vrot.slane %v1985_v63, 4  ;;  %v1993_v29 = vrot.slane %v1986_v21, 4 }
0x150c   :  { %v1988_v20 = vadd.f32 %v1987_v54, %v1985_v63  ;;  %v1994_v31 = vadd.f32 %v1993_v29, %v1986_v21 }
0x150e   :  { %v1989_v45 = vrot.slane %v1988_v20, 2  ;;  %v1995_v9 = vrot.slane %v1994_v31, 2 }
0x1510   :  { %v1990_v25 = vadd.f32 %v1989_v45, %v1988_v20  ;;  %v1996_v2 = vadd.f32 %v1995_v9, %v1994_v31 }
0x1512   :  { %v1991_v5 = vrot.slane %v1990_v25, 1  ;;  %v1997_v22 = vrot.slane %v1996_v2, 1 }
0x1514   :  { %v1992_v11 = vadd.f32 %v1991_v5, %v1990_v25  ;;  %v1998_v56 = vadd.f32 %v1997_v22, %v1996_v2 }
0x1516   :  { %2599 = vrcp.f32 %v1992_v11 }
0x1517   :  { %2601 = vrcp.f32 %v1998_v56 }
0x1518   :  { %2603 = vrcp.f32 %v1307_v14 }
0x1519   :  { %2605 = vrcp.f32 %v1301_v39 }
0x1523   :  { %v2600_v58 = vpop.eup %2599 }
0x1524   :  { %v2602_v53 = vpop.eup %2601  ;;  %v2000_v19 = vmul.f32 %v2600_v58, %v1985_v63 }
0x1525   :  { %v2002_v8 = vmul.f32 %v2602_v53, %v1986_v21  ;;  %v2604_v35 = vpop.eup %2603 }
0x1526   :  { %v2003_v6 = vrot.slane %v2000_v19, 4  ;;  %v2606_v27 = vpop.eup %2605  ;;  %v1311_v51 = vmul.f32 %v2604_v35, %v2594_v0 }
0x1527   :  { %v2009_v26 = vrot.slane %v2002_v8, 4  ;;  %v1309_v7 = vmul.f32 %v2606_v27, %v2596_v41 }
0x1528   :  { %v2004_v30 = vmax.f32 %v2000_v19, %v2003_v6  ;;  %v1313_v46 = vmul.f32 20.0, %v1311_v51 }
0x1529   :  { %v2010_v50 = vmax.f32 %v2002_v8, %v2009_v26  ;;  %v1312_v4 = vmul.f32 20.0, %v1309_v7 }
0x152a   :  { %v2005_v1 = vrot.slane %v2004_v30, 2  ;;  %v1316_v40 = vmul.f32 1.442695, %v1313_v46 }
0x152b   :  { %v2011_v23 = vrot.slane %v2010_v50, 2  ;;  %v1314_v15 = vmul.f32 1.442695, %v1312_v4 }
0x152c   :  { %v2006_v43 = vmax.f32 %v2004_v30, %v2005_v1  ;;  %2607 = vpow2.f32 %v1316_v40 }
0x152d   :  { %v2012_v33 = vmax.f32 %v2010_v50, %v2011_v23  ;;  %2609 = vpow2.f32 %v1314_v15 }
0x152e   :  { %v2007_v36 = vrot.slane %v2006_v43, 1 }
0x152f   :  { %v2013_v32 = vrot.slane %v2012_v33, 1 }
0x1530   :  { %v2008_v44 = vmax.f32 %v2006_v43, %v2007_v36 }
0x1531   :  { %v2014_v47 = vmax.f32 %v2012_v33, %v2013_v32 }
0x1532   :  { %vm2015_vm7 = vcmp.eq.f32.partialorder %v2000_v19, %v2008_v44 }
0x1533   :  { %vm2016_vm8 = vcmp.eq.f32.partialorder %v2002_v8, %v2014_v47  ;;  %v2017_v18 = vsel %vm2015_vm7, %v2821_v17, 8 }
0x1534   :  { %v2018_v60 = vsel %vm2016_vm8, %v2821_v17, 8  ;;  %v2019_v24 = vrot.slane %v2017_v18, 4 }
0x1535   :  { %v2028_v61 = vrot.slane %v2018_v60, 4 }
0x1536   :  { %vm2020_vm9 = vcmp.lt.s32.totalorder %v2017_v18, %v2019_v24 }
0x1537   :  { %vm2029_vm10 = vcmp.lt.s32.totalorder %v2018_v60, %v2028_v61  ;;  %v2021_v0 = vsel %vm2020_vm9, %v2017_v18, %v2019_v24 }
0x1538   :  { %v2030_v41 = vsel %vm2029_vm10, %v2018_v60, %v2028_v61  ;;  %v2022_v28 = vrot.slane %v2021_v0, 2 }
0x1539   :  { %v2031_v48 = vrot.slane %v2030_v41, 2  ;;  %v2608_v57 = vpop.eup %2607 }
0x153a   :  { %vm2023_vm11 = vcmp.lt.s32.totalorder %v2021_v0, %v2022_v28  ;;  %v2610_v45 = vpop.eup %2609 }
0x153b   :  { %vm2032_vm12 = vcmp.lt.s32.totalorder %v2030_v41, %v2031_v48  ;;  %v2024_v62 = vsel %vm2023_vm11, %v2021_v0, %v2022_v28  ;;  %v1318_v9 = vadd.f32 %v2610_v45, %v2608_v57  ;;  %vm3262_vm11 = vcmp.lt.s32.totalorder %v57_v16, 256 }
0x153c   :  { %v2033_v63 = vsel %vm2032_vm12, %v2030_v41, %v2031_v48  ;;  %v2025_v21 = vrot.slane %v2024_v62, 1 }
0x153d   :  { %v2034_v49 = vrot.slane %v2033_v63, 1 }
0x153e   :  { %vm2026_vm13 = vcmp.lt.s32.totalorder %v2024_v62, %v2025_v21 }
0x153f   :  { %vm2035_vm14 = vcmp.lt.s32.totalorder %v2033_v63, %v2034_v49  ;;  %v2027_v54 = vsel %vm2026_vm13, %v2024_v62, %v2025_v21 }
0x1540   :  { %v2036_v29 = vsel %vm2035_vm14, %v2033_v63, %v2034_v49  ;;  %vm2037_vm15 = vcmp.eq.s32.totalorder %v2821_v17, %v2027_v54 }
0x1541   :  { %vm2038_vm1 = vcmp.eq.s32.totalorder %v2821_v17, %v2036_v29  ;;  %vm2420_vm2 = vmpackc.low %vm2037_vm15, %vm2037_vm15  ;;  %v2416_v52 = vsel %vm2037_vm15, 1.0, %v2735_v12 }
0x1542   :  { %vm2418_vm3 = vmpackc.low %vm2038_vm1, %vm2038_vm1  ;;  %v2417_v20 = vsel %vm2038_vm1, 1.0, %v2735_v12 }
0x1543   :  { %2419 = vmatprep.mubr.msk.bf16.mxu1 %vm2418_vm3, %v2736_v38  ;;  %v2085_v31 = vadd.f32 %v2417_v20, %v2416_v52 }
0x1544   :  { %2421 = vmatmul.mubr.msk.bf16.vlgmr.msra.gmra.mxu1 %vm2420_vm2, %v2736_v38 }
0x1545   :  { %2086 = vadd.xlane.f32.xlu0 %v2085_v31 }
0x1549   :  { %1319 = vadd.xlane.f32.xlu0 %v1318_v9 }
0x15ce   :  { %v2087_v10 = vpop.xlane.xlu0 %2086 }
0x15cf   :  { %v2088_v39 = vmax.f32 %v2087_v10, 1.0 }
0x15d2   :  { %v1320_v25 = vpop.xlane.xlu0 %1319 }
0x15d3   :  { %v1321_v2 = vrot.slane %v1320_v25, 4 }
0x15d5   :  { %v1322_v3 = vadd.f32 %v1321_v2, %v1320_v25 }
0x15d7   :  { %v1323_v5 = vrot.slane %v1322_v3, 2 }
0x15d9   :  { %v1324_v22 = vadd.f32 %v1323_v5, %v1322_v3 }
0x15db   :  { %v1325_v55 = vrot.slane %v1324_v22, 1 }
0x15dd   :  { %v1326_v11 = vadd.f32 %v1325_v55, %v1324_v22 }
0x15df   :  { %2611 = vrcp.f32 %v1326_v11 }
0x15e0   :  { %2613 = vrcp.f32 %v2088_v39 }
0x15ec   :  { %v2612_v12 = vpop.eup %2611 }
0x15ed   :  { %v1328_v56 = vmul.f32 %v2612_v12, %v2610_v45  ;;  %v1329_v34 = vmul.f32 %v2612_v12, %v2608_v57  ;;  %v2614_v38 = vpop.eup %2613 }
0x15ef   :  { %v1330_v14 = vadd.f32 %v1329_v34, %v1328_v56 }
0x15f1   :  { %1331 = vadd.xlane.f32.xlu0 %v1330_v14 }
0x1604   :  { %v2079_v58 = vpop.f32.mrf.mxu1 }
0x1605   :  { %v2090_v53 = vmul.f32 %v2614_v38, %v2079_v58 }
0x1606   :  { %v2081_v19 = vpop.f32.mrf.mxu1 }
0x1607   :  { %v2091_v8 = vmul.f32 %v2090_v53, %v2090_v53 }
0x1608   :  { %v2082_v6 = vpop.f32.mrf.mxu1 }
0x1609   :  { %v2092_v26 = vsel %vm408_vm0, %v2091_v8, 0.0 }
0x160a   :  { %v2083_v35 = vpop.f32.mrf.mxu1  ;;  %2093 = vadd.xlane.f32.xlu1 %v2092_v26 }
0x167a   :  { %v1332_v30 = vpop.xlane.xlu0 %1331 }
0x167b   :  { %v1333_v50 = vmul.f32 8.0, %v1332_v30 }
0x167d   :  { %2615 = vrcp.f32 %v1333_v50 }
0x168a   :  { %v2616_v27 = vpop.eup %2615 }
0x168b   :  { %v1335_v1 = vmul.f32 %v2616_v27, %v1328_v56  ;;  %v1336_v23 = vmul.f32 %v2616_v27, %v1329_v34 }
0x168d   :  { %v1337_v51 = vrot.slane %v1335_v1, 4  ;;  %v1343_v43 = vrot.slane %v1336_v23, 4 }
0x168f   :  { %v1338_v33 = vadd.f32 %v1337_v51, %v1335_v1  ;;  %v1344_v7 = vadd.f32 %v1343_v43, %v1336_v23 }
0x1691   :  { %v1339_v36 = vrot.slane %v1338_v33, 2  ;;  %v1345_v32 = vrot.slane %v1344_v7, 2 }
0x1693   :  { %v2094_v46 = vpop.xlane.xlu1 %2093  ;;  %v1340_v44 = vadd.f32 %v1339_v36, %v1338_v33  ;;  %v1346_v47 = vadd.f32 %v1345_v32, %v1344_v7 }
0x1694   :  { %v2095_v4 = vadd.f32 1e-12, %v2094_v46 }
0x1695   :  { %v1341_v18 = vrot.slane %v1340_v44, 1  ;;  %v1347_v40 = vrot.slane %v1346_v47, 1 }
0x1696   :  { %2617 = vrsqrt.f32 %v2095_v4 }
0x1697   :  { %v1342_v60 = vadd.f32 %v1341_v18, %v1340_v44  ;;  %v1348_v24 = vadd.f32 %v1347_v40, %v1346_v47  ;;  %v402_v44 = vld [vmem:[%s3290_s4] sm:$0xf]  ;;  %s2738_s4 = smov [#allocation2]  }
0x1698   :  { %s2355_s28 = sshll.u32 %s2738_s4, 4  ;;  %s2356_s28 = int_to_ptr.vmem [resolvable:$true] %s2355_s28 }
0x1699   :  { %v1349_v61 = vmul.f32 256.0, %v1342_v60  ;;  %v1350_v15 = vmul.f32 256.0, %v1348_v24  ;;  %s2667_s29 = scalar_lea.vmem %s2356_s28, 256  ;;  %p2672_p1 = scmp.lt.s32.totalorder %s2356_s28, %s2356_s28 }
0x169a   :  { %p2668_p0 = scmp.ne.s32.totalorder %s2356_s28, %s2667_s29  ;;  %p2673_p2 = scmp.lt.s32.totalorder %s2667_s29, %s2667_s29 }
0x169b   :  { %2619 = vrcp.f32 %v1349_v61 }
0x169c   :  { %2621 = vrcp.f32 %v1350_v15  ;;  %p2674_p3 = por %p2673_p2, %p2672_p1 }
0x169e   :  { %p2675_p4 = pnand %p2674_p3, %p2668_p0 }
0x16a3   :  { %v2618_v0 = vpop.eup %2617 }
0x16a4   :  { %v2097_v41 = vmul.f32 %v2618_v0, %v2090_v53 }
0x16a6   :  { %2422 = vmatmul.mubr.msk.f32.vlgmr.msra.gmra.mxu0 %vm408_vm0, %v2097_v41 }
0x16a8   :  { %v2620_v28 = vpop.eup %2619 }
0x16a9   :  { %v2622_v48 = vpop.eup %2621  ;;  %v1352_v62 = vmul.f32 %v2620_v28, %v1335_v1 }
0x16aa   :  { %v1354_v63 = vmul.f32 %v2622_v48, %v1336_v23 }
0x16ac   :  { %v1355_v21 = vadd.f32 %v1354_v63, %v1352_v62 }
0x16ae   :  { %1356 = vadd.xlane.f32.xlu0 %v1355_v21 }
0x1737   :  { %v1357_v49 = vpop.xlane.xlu0 %1356 }
0x1738   :  { %v1358_v54 = vmul.f32 8.0, %v1357_v49 }
0x173a   :  { %2623 = vrcp.f32 %v1358_v54 }
0x1747   :  { %v2624_v29 = vpop.eup %2623 }
0x1748   :  { %v1360_v52 = vmul.f32 %v2624_v29, %v1352_v62  ;;  %v1361_v20 = vmul.f32 %v2624_v29, %v1354_v63 }
0x174a   :  { %v1362_v31 = vrot.slane %v1360_v52, 4  ;;  %v1368_v57 = vrot.slane %v1361_v20, 4 }
0x174c   :  { %v1363_v45 = vadd.f32 %v1362_v31, %v1360_v52  ;;  %v1369_v9 = vadd.f32 %v1368_v57, %v1361_v20 }
0x174e   :  { %v1364_v10 = vrot.slane %v1363_v45, 2  ;;  %v1370_v25 = vrot.slane %v1369_v9, 2 }
0x1750   :  { %v1365_v2 = vadd.f32 %v1364_v10, %v1363_v45  ;;  %v1371_v3 = vadd.f32 %v1370_v25, %v1369_v9 }
0x1752   :  { %v1366_v5 = vrot.slane %v1365_v2, 1  ;;  %v1372_v22 = vrot.slane %v1371_v3, 1 }
0x1754   :  { %v1367_v55 = vadd.f32 %v1366_v5, %v1365_v2  ;;  %v1373_v11 = vadd.f32 %v1372_v22, %v1371_v3 }
0x1756   :  { %v1374_v12 = vmul.f32 256.0, %v1367_v55  ;;  %v1375_v56 = vmul.f32 256.0, %v1373_v11 }
0x1758   :  { %2625 = vrcp.f32 %v1374_v12 }
0x1759   :  { %2627 = vrcp.f32 %v1375_v56 }
0x1765   :  { %v2626_v34 = vpop.eup %2625 }
0x1766   :  { %v2628_v14 = vpop.eup %2627  ;;  %v2167_v39 = vpop.f32.mrf.mxu0  ;;  %v3234_v38 = vmul.f32 %v2626_v34, %v1360_v52 }
0x1767   :  { %v2172_v58 = vrot.slane %v2167_v39, 4  ;;  %v3236_v53 = vmul.f32 %v2628_v14, %v1361_v20 }
0x1768   :  { %v2169_v19 = vpop.f32.mrf.mxu0 }
0x1769   :  { %v2173_v8 = vmax.f32 %v2167_v39, %v2172_v58  ;;  %v2178_v6 = vrot.slane %v2169_v19, 4  ;;  %v1380_v26 = vadd.f32 %v3236_v53, %v3234_v38 }
0x176b   :  { %v2174_v35 = vrot.slane %v2173_v8, 2  ;;  %v2179_v30 = vmax.f32 %v2169_v19, %v2178_v6  ;;  %1381 = vadd.xlane.f32.xlu0 %v1380_v26 }
0x176d   :  { %v2175_v50 = vmax.f32 %v2173_v8, %v2174_v35  ;;  %v2180_v27 = vrot.slane %v2179_v30, 2 }
0x176f   :  { %v2176_v1 = vrot.slane %v2175_v50, 1  ;;  %v2181_v23 = vmax.f32 %v2179_v30, %v2180_v27 }
0x1771   :  { %v2177_v51 = vmax.f32 %v2175_v50, %v2176_v1  ;;  %v2182_v43 = vrot.slane %v2181_v23, 1 }
0x1773   :  { %v2184_v33 = vsub.f32 %v2167_v39, %v2177_v51  ;;  %v2183_v7 = vmax.f32 %v2181_v23, %v2182_v43 }
0x1775   :  { %v2186_v36 = vmul.f32 1.442695, %v2184_v33  ;;  %v2185_v32 = vsub.f32 %v2169_v19, %v2183_v7 }
0x1777   :  { %2629 = vpow2.f32 %v2186_v36  ;;  %v2188_v46 = vmul.f32 1.442695, %v2185_v32 }
0x1779   :  { %2631 = vpow2.f32 %v2188_v46 }
0x1781   :  { %405 = vperm.xlu0 %2446, %v402_v44  }
0x1784   :  { %v2630_v47 = vpop.eup %2629 }
0x1785   :  { %v2190_v4 = vrot.slane %v2630_v47, 4 }
0x1786   :  { %v2632_v18 = vpop.eup %2631 }
0x1787   :  { %v2196_v40 = vrot.slane %v2632_v18, 4  ;;  %v2191_v60 = vadd.f32 %v2630_v47, %v2190_v4 }
0x1789   :  { %v2197_v24 = vadd.f32 %v2632_v18, %v2196_v40  ;;  %v2192_v61 = vrot.slane %v2191_v60, 2 }
0x178b   :  { %v2193_v15 = vadd.f32 %v2192_v61, %v2191_v60  ;;  %v2198_v0 = vrot.slane %v2197_v24, 2 }
0x178d   :  { %v2194_v41 = vrot.slane %v2193_v15, 1  ;;  %v2199_v28 = vadd.f32 %v2198_v0, %v2197_v24  ;;  %v2737_v0 = vmov 1966171168  }
0x178f   :  { %v2195_v48 = vadd.f32 %v2194_v41, %v2193_v15  ;;  %v2200_v62 = vrot.slane %v2199_v28, 1  ;;  %v1441_v41 = vunpack.c.l.s4 %v2737_v0 }
0x1791   :  { %v2201_v63 = vadd.f32 %v2200_v62, %v2199_v28  ;;  %2633 = vrcp.f32 %v2195_v48 }
0x1793   :  { %2635 = vrcp.f32 %v2201_v63 }
0x179e   :  { %v2634_v21 = vpop.eup %2633 }
0x179f   :  { %v2203_v49 = vmul.f32 %v2634_v21, %v2630_v47  ;;  %v1442_v21 = vunpack.c.0.s8 %v1441_v41 }
0x17a0   :  { %v2636_v54 = vpop.eup %2635 }
0x17a1   :  { %v2205_v29 = vmul.f32 %v2636_v54, %v2632_v18  ;;  %v2206_v52 = vmul.f32 20.0, %v2203_v49 }
0x17a3   :  { %v2207_v20 = vmul.f32 20.0, %v2205_v29  ;;  %v2208_v31 = vmul.f32 1.442695, %v2206_v52 }
0x17a5   :  { %v2210_v57 = vmul.f32 1.442695, %v2207_v20  ;;  %2637 = vpow2.f32 %v2208_v31  ;;  %v3258_v20 = vsub.s32 %v1442_v21, %v2821_v17 }
0x17a7   :  { %2639 = vpow2.f32 %v2210_v57 }
0x17b2   :  { %v3243_v45 = vpop.eup %2637 }
0x17b4   :  { %v3245_v9 = vpop.eup %2639 }
0x17b5   :  { %v2212_v10 = vadd.f32 %v3245_v9, %v3243_v45 }
0x17b7   :  { %2213 = vadd.xlane.f32.xlu1 %v2212_v10 }
0x17f4   :  { %v1382_v25 = vpop.xlane.xlu0 %1381 }
0x17f5   :  { %v1383_v2 = vmul.f32 8.0, %v1382_v25 }
0x17f7   :  { %2641 = vrcp.f32 %v1383_v2 }
0x17fc   :  { %v406_v3 = vpop.permute.xlu0 %405 }
0x17fd   :  { %v479_v5 = vadd.f32 %v3125_v13, %v406_v3  ;;  %v481_v22 = vadd.f32 %v3127_v59, %v406_v3  ;;  %v550_v55 = vadd.f32 %v3146_v37, %v406_v3  ;;  %v552_v11 = vadd.f32 %v3148_v42, %v406_v3 }
0x17ff   :  { %v558_v12 = vcombine.low %v479_v5, %v481_v22  ;;  %v559_v56 = vcombine.low %v550_v55, %v552_v11 }
0x1801   :  { %562 = vst [vmem:[#allocation2] sm:$0xff] %v558_v12  ;;  %563 = vst [vmem:[#allocation2 + $0x8] sm:$0xff] %v559_v56 }
0x1804   :  { %v2642_v34 = vpop.eup %2641 }
0x1805   :  { %v1385_v14 = vmul.f32 %v2642_v34, %v3234_v38  ;;  %v1386_v39 = vmul.f32 %v2642_v34, %v3236_v53 }
0x1807   :  { %v1387_v58 = vrot.slane %v1385_v14, 4  ;;  %v1393_v19 = vrot.slane %v1386_v39, 4 }
0x1809   :  { %v1388_v8 = vadd.f32 %v1387_v58, %v1385_v14  ;;  %v1394_v6 = vadd.f32 %v1393_v19, %v1386_v39 }
0x180b   :  { %v1389_v13 = vrot.slane %v1388_v8, 2  ;;  %v1395_v26 = vrot.slane %v1394_v6, 2 }
0x180d   :  { %v1390_v59 = vadd.f32 %v1389_v13, %v1388_v8  ;;  %v1396_v35 = vadd.f32 %v1395_v26, %v1394_v6 }
0x180f   :  { %v1391_v37 = vrot.slane %v1390_v59, 1  ;;  %v1397_v30 = vrot.slane %v1396_v35, 1 }
0x1811   :  { %v1392_v42 = vadd.f32 %v1391_v37, %v1390_v59  ;;  %v1398_v50 = vadd.f32 %v1397_v30, %v1396_v35 }
0x1813   :  { %2643 = vrcp.f32 %v1392_v42 }
0x1814   :  { %2645 = vrcp.f32 %v1398_v50 }
0x1820   :  { %v2644_v27 = vpop.eup %2643 }
0x1821   :  { %v2646_v1 = vpop.eup %2645  ;;  %v1400_v23 = vmul.f32 %v2644_v27, %v1385_v14 }
0x1822   :  { %v1402_v38 = vmul.f32 %v2646_v1, %v1386_v39 }
0x1823   :  { %v1403_v51 = vrot.slane %v1400_v23, 4  ;;  %1437 = vst [vmem:[#allocation4] sm:$0xff] %v1400_v23 }
0x1824   :  { %v1409_v53 = vrot.slane %v1402_v38, 4  ;;  %1438 = vst [vmem:[#allocation4 + $0x8] sm:$0xff] %v1402_v38 }
0x1825   :  { %v1404_v43 = vmax.f32 %v1400_v23, %v1403_v51 }
0x1826   :  { %v1410_v33 = vmax.f32 %v1402_v38, %v1409_v53 }
0x1827   :  { %v1405_v7 = vrot.slane %v1404_v43, 2 }
0x1828   :  { %v1411_v36 = vrot.slane %v1410_v33, 2 }
0x1829   :  { %v1406_v32 = vmax.f32 %v1404_v43, %v1405_v7 }
0x182a   :  { %v1412_v46 = vmax.f32 %v1410_v33, %v1411_v36 }
0x182b   :  { %v1407_v44 = vrot.slane %v1406_v32, 1 }
0x182c   :  { %v1413_v47 = vrot.slane %v1412_v46, 1 }
0x182d   :  { %v1408_v4 = vmax.f32 %v1406_v32, %v1407_v44 }
0x182e   :  { %v1414_v18 = vmax.f32 %v1412_v46, %v1413_v47 }
0x182f   :  { %vm1415_vm0 = vcmp.eq.f32.partialorder %v1400_v23, %v1408_v4 }
0x1830   :  { %vm1416_vm4 = vcmp.eq.f32.partialorder %v1402_v38, %v1414_v18  ;;  %v1417_v40 = vsel %vm1415_vm0, %v2821_v17, 8 }
0x1831   :  { %v1418_v60 = vsel %vm1416_vm4, %v2821_v17, 8  ;;  %v1419_v24 = vrot.slane %v1417_v40, 4 }
0x1832   :  { %v1428_v61 = vrot.slane %v1418_v60, 4 }
0x1833   :  { %vm1420_vm5 = vcmp.lt.s32.totalorder %v1417_v40, %v1419_v24 }
0x1834   :  { %v1421_v15 = vsel %vm1420_vm5, %v1417_v40, %v1419_v24  ;;  %vm1429_vm6 = vcmp.lt.s32.totalorder %v1418_v60, %v1428_v61 }
0x1835   :  { %v1422_v28 = vrot.slane %v1421_v15, 2  ;;  %v1430_v48 = vsel %vm1429_vm6, %v1418_v60, %v1428_v61 }
0x1836   :  { %v1431_v62 = vrot.slane %v1430_v48, 2 }
0x1837   :  { %vm1423_vm7 = vcmp.lt.s32.totalorder %v1421_v15, %v1422_v28 }
0x1838   :  { %v1424_v63 = vsel %vm1423_vm7, %v1421_v15, %v1422_v28  ;;  %vm1432_vm8 = vcmp.lt.s32.totalorder %v1430_v48, %v1431_v62 }
0x1839   :  { %v1425_v49 = vrot.slane %v1424_v63, 1  ;;  %v1433_v54 = vsel %vm1432_vm8, %v1430_v48, %v1431_v62 }
0x183a   :  { %v1434_v29 = vrot.slane %v1433_v54, 1 }
0x183b   :  { %vm1426_vm9 = vcmp.lt.s32.totalorder %v1424_v63, %v1425_v49 }
0x183c   :  { %v1427_v52 = vsel %vm1426_vm9, %v1424_v63, %v1425_v49  ;;  %vm1435_vm10 = vcmp.lt.s32.totalorder %v1433_v54, %v1434_v29 }
0x183d   :  { %v1436_v31 = vsel %vm1435_vm10, %v1433_v54, %v1434_v29 }
0x183e   :  { %v1439_v57 = vcombine.low %v1427_v52, %v1436_v31 }
0x1840   :  { %v2214_v10 = vpop.xlane.xlu1 %2213  ;;  %v1446_v25 = vrot.slane %v1439_v57, %v3258_v20 }
0x1841   :  { %v2215_v2 = vrot.slane %v2214_v10, 4 }
0x1842   :  { %v1453_v5 = vrot.slane %v1446_v25, %v3258_v20 }
0x1843   :  { %v2216_v22 = vadd.f32 %v2215_v2, %v2214_v10 }
0x1844   :  { %1458 = vst.msk [vmem:[#allocation6] sm:$0x3] %vm3262_vm11, %v1453_v5 }
0x1845   :  { %v2217_v55 = vrot.slane %v2216_v22, 2 }
0x1847   :  { %v2218_v11 = vadd.f32 %v2217_v55, %v2216_v22 }
0x1849   :  { %v2219_v12 = vrot.slane %v2218_v11, 1 }
0x184b   :  { %v2220_v56 = vadd.f32 %v2219_v12, %v2218_v11 }
0x184d   :  { %2647 = vrcp.f32 %v2220_v56 }
0x185a   :  { %v2648_v34 = vpop.eup %2647 }
0x185b   :  { %v2222_v14 = vmul.f32 %v2648_v34, %v3243_v45  ;;  %v2223_v39 = vmul.f32 %v2648_v34, %v3245_v9 }
0x185d   :  { %v2224_v16 = vadd.f32 %v2223_v39, %v2222_v14 }
0x185f   :  { %2225 = vadd.xlane.f32.xlu1 %v2224_v16 }
0x18e8   :  { %v2226_v58 = vpop.xlane.xlu1 %2225 }
0x18e9   :  { %v2227_v19 = vmul.f32 8.0, %v2226_v58 }
0x18eb   :  { %2649 = vrcp.f32 %v2227_v19 }
0x18f8   :  { %v2650_v8 = vpop.eup %2649 }
0x18f9   :  { %v2229_v6 = vmul.f32 %v2650_v8, %v2222_v14  ;;  %v2230_v13 = vmul.f32 %v2650_v8, %v2223_v39 }
0x18fb   :  { %v2231_v26 = vrot.slane %v2229_v6, 4  ;;  %v2237_v59 = vrot.slane %v2230_v13, 4 }
0x18fd   :  { %v2232_v35 = vadd.f32 %v2231_v26, %v2229_v6  ;;  %v2238_v37 = vadd.f32 %v2237_v59, %v2230_v13 }
0x18ff   :  { %v2233_v30 = vrot.slane %v2232_v35, 2  ;;  %v2239_v42 = vrot.slane %v2238_v37, 2 }
0x1901   :  { %v2234_v50 = vadd.f32 %v2233_v30, %v2232_v35  ;;  %v2240_v27 = vadd.f32 %v2239_v42, %v2238_v37 }
0x1903   :  { %v2235_v1 = vrot.slane %v2234_v50, 1  ;;  %v2241_v45 = vrot.slane %v2240_v27, 1 }
0x1905   :  { %v2236_v23 = vadd.f32 %v2235_v1, %v2234_v50  ;;  %v2242_v9 = vadd.f32 %v2241_v45, %v2240_v27 }
0x1907   :  { %v2243_v38 = vmul.f32 256.0, %v2236_v23  ;;  %v2244_v51 = vmul.f32 256.0, %v2242_v9 }
0x1909   :  { %2651 = vrcp.f32 %v2243_v38 }
0x190a   :  { %2653 = vrcp.f32 %v2244_v51 }
0x1916   :  { %v2652_v53 = vpop.eup %2651 }
0x1917   :  { %v2654_v43 = vpop.eup %2653  ;;  %v2246_v33 = vmul.f32 %v2652_v53, %v2229_v6 }
0x1918   :  { %v2248_v7 = vmul.f32 %v2654_v43, %v2230_v13 }
0x191a   :  { %v2249_v36 = vadd.f32 %v2248_v7, %v2246_v33 }
0x191c   :  { %2250 = vadd.xlane.f32.xlu1 %v2249_v36 }
0x19a5   :  { %v2251_v32 = vpop.xlane.xlu1 %2250 }
0x19a6   :  { %v2252_v46 = vmul.f32 8.0, %v2251_v32 }
0x19a8   :  { %2655 = vrcp.f32 %v2252_v46 }
0x19b5   :  { %v2656_v44 = vpop.eup %2655 }
0x19b6   :  { %v2254_v47 = vmul.f32 %v2656_v44, %v2246_v33  ;;  %v2255_v4 = vmul.f32 %v2656_v44, %v2248_v7 }
0x19b8   :  { %v2256_v18 = vrot.slane %v2254_v47, 4  ;;  %v2262_v40 = vrot.slane %v2255_v4, 4 }
0x19ba   :  { %v2257_v60 = vadd.f32 %v2256_v18, %v2254_v47  ;;  %v2263_v24 = vadd.f32 %v2262_v40, %v2255_v4 }
0x19bc   :  { %v2258_v61 = vrot.slane %v2257_v60, 2  ;;  %v2264_v15 = vrot.slane %v2263_v24, 2 }
0x19be   :  { %v2259_v0 = vadd.f32 %v2258_v61, %v2257_v60  ;;  %v2265_v41 = vadd.f32 %v2264_v15, %v2263_v24 }
0x19c0   :  { %v2260_v28 = vrot.slane %v2259_v0, 1  ;;  %v2266_v48 = vrot.slane %v2265_v41, 1 }
0x19c2   :  { %v2261_v62 = vadd.f32 %v2260_v28, %v2259_v0  ;;  %v2267_v63 = vadd.f32 %v2266_v48, %v2265_v41 }
0x19c4   :  { %v2268_v21 = vmul.f32 256.0, %v2261_v62  ;;  %v2269_v49 = vmul.f32 256.0, %v2267_v63 }
0x19c6   :  { %2657 = vrcp.f32 %v2268_v21 }
0x19c7   :  { %2659 = vrcp.f32 %v2269_v49 }
0x19d3   :  { %v2658_v54 = vpop.eup %2657 }
0x19d4   :  { %v2660_v29 = vpop.eup %2659  ;;  %v2271_v52 = vmul.f32 %v2658_v54, %v2254_v47 }
0x19d5   :  { %v2273_v31 = vmul.f32 %v2660_v29, %v2255_v4 }
0x19d7   :  { %v2274_v57 = vadd.f32 %v2273_v31, %v2271_v52 }
0x19d9   :  { %2275 = vadd.xlane.f32.xlu1 %v2274_v57 }
0x19da   :  { %2678 = shalt.err (!%p2675_p4)
}
0x19db   :  { %2358 = dma.vmem_to_hbm [thread:$0]  %s2356_s28, 256, %s3292_s6, [#allocation3]  }
0x19dc   :  { %s2739_s6 = smov [#allocation4]  }
0x19dd   :  { %s2365_s10 = sshll.u32 %s2739_s6, 4  ;;  %s2366_s10 = int_to_ptr.vmem [resolvable:$true] %s2365_s10 }
0x19de   :  { %s2687_s11 = scalar_lea.vmem %s2366_s10, 512  ;;  %p2692_p6 = scmp.lt.s32.totalorder %s2366_s10, %s2366_s10 }
0x19df   :  { %p2688_p5 = scmp.ne.s32.totalorder %s2366_s10, %s2687_s11  ;;  %p2693_p7 = scmp.lt.s32.totalorder %s2687_s11, %s2687_s11 }
0x19e1   :  { %p2694_p8 = por %p2693_p7, %p2692_p6 }
0x19e3   :  { %p2695_p9 = pnand %p2694_p8, %p2688_p5 }
0x1a62   :  { %v2276_v10 = vpop.xlane.xlu1 %2275 }
0x1a63   :  { %v2277_v25 = vmul.f32 8.0, %v2276_v10 }
0x1a65   :  { %2661 = vrcp.f32 %v2277_v25 }
0x1a72   :  { %v2662_v2 = vpop.eup %2661 }
0x1a73   :  { %v2279_v5 = vmul.f32 %v2662_v2, %v2271_v52  ;;  %v2280_v22 = vmul.f32 %v2662_v2, %v2273_v31 }
0x1a75   :  { %v2281_v55 = vrot.slane %v2279_v5, 4  ;;  %v2287_v11 = vrot.slane %v2280_v22, 4 }
0x1a77   :  { %v2282_v12 = vadd.f32 %v2281_v55, %v2279_v5  ;;  %v2288_v56 = vadd.f32 %v2287_v11, %v2280_v22 }
0x1a79   :  { %v2283_v34 = vrot.slane %v2282_v12, 2  ;;  %v2289_v14 = vrot.slane %v2288_v56, 2 }
0x1a7b   :  { %v2284_v39 = vadd.f32 %v2283_v34, %v2282_v12  ;;  %v2290_v16 = vadd.f32 %v2289_v14, %v2288_v56 }
0x1a7d   :  { %v2285_v58 = vrot.slane %v2284_v39, 1  ;;  %v2291_v19 = vrot.slane %v2290_v16, 1 }
0x1a7f   :  { %v2286_v8 = vadd.f32 %v2285_v58, %v2284_v39  ;;  %v2292_v6 = vadd.f32 %v2291_v19, %v2290_v16 }
0x1a81   :  { %2663 = vrcp.f32 %v2286_v8 }
0x1a82   :  { %2665 = vrcp.f32 %v2292_v6 }
0x1a8e   :  { %v2664_v13 = vpop.eup %2663 }
0x1a8f   :  { %v2666_v26 = vpop.eup %2665  ;;  %v2294_v59 = vmul.f32 %v2664_v13, %v2279_v5 }
0x1a90   :  { %v2296_v35 = vmul.f32 %v2666_v26, %v2280_v22 }
0x1a91   :  { %v2297_v37 = vrot.slane %v2294_v59, 4  ;;  %2331 = vst [vmem:[#allocation4 + $0x10] sm:$0xff] %v2294_v59 }
0x1a92   :  { %v2303_v30 = vrot.slane %v2296_v35, 4  ;;  %2332 = vst [vmem:[#allocation4 + $0x18] sm:$0xff] %v2296_v35 }
0x1a93   :  { %2698 = shalt.err (!%p2695_p9)
}
0x1a94   :  { %2368 = dma.vmem_to_hbm [thread:$0]  %s2366_s10, 512, %s3293_s7, [#allocation5]   ;;  %v2298_v42 = vmax.f32 %v2294_v59, %v2297_v37  ;;  %v2304_v50 = vmax.f32 %v2296_v35, %v2303_v30 }
0x1a95   :  { %s2740_s7 = smov [#allocation6]  }
0x1a96   :  { %v2299_v27 = vrot.slane %v2298_v42, 2  ;;  %v2305_v1 = vrot.slane %v2304_v50, 2  ;;  %s2375_s14 = sshll.u32 %s2740_s7, 4  ;;  %s2376_s14 = int_to_ptr.vmem [resolvable:$true] %s2375_s14 }
0x1a97   :  { %s2707_s15 = scalar_lea.vmem %s2376_s14, 64  ;;  %p2712_p11 = scmp.lt.s32.totalorder %s2376_s14, %s2376_s14 }
0x1a98   :  { %v2300_v45 = vmax.f32 %v2298_v42, %v2299_v27  ;;  %v2306_v23 = vmax.f32 %v2304_v50, %v2305_v1  ;;  %p2708_p10 = scmp.ne.s32.totalorder %s2376_s14, %s2707_s15  ;;  %p2713_p12 = scmp.lt.s32.totalorder %s2707_s15, %s2707_s15 }
0x1a9a   :  { %v2301_v9 = vrot.slane %v2300_v45, 1  ;;  %v2307_v38 = vrot.slane %v2306_v23, 1  ;;  %p2714_p13 = por %p2713_p12, %p2712_p11 }
0x1a9c   :  { %v2302_v51 = vmax.f32 %v2300_v45, %v2301_v9  ;;  %v2308_v53 = vmax.f32 %v2306_v23, %v2307_v38  ;;  %p2715_p0 = pnand %p2714_p13, %p2708_p10 }
0x1a9e   :  { %vm2309_vm12 = vcmp.eq.f32.partialorder %v2294_v59, %v2302_v51  ;;  %vm2310_vm13 = vcmp.eq.f32.partialorder %v2296_v35, %v2308_v53 }
0x1a9f   :  { %v2311_v43 = vsel %vm2309_vm12, %v2821_v17, 8  ;;  %v2312_v33 = vsel %vm2310_vm13, %v2821_v17, 8 }
0x1aa0   :  { %v2313_v7 = vrot.slane %v2311_v43, 4  ;;  %v2322_v36 = vrot.slane %v2312_v33, 4 }
0x1aa2   :  { %vm2314_vm14 = vcmp.lt.s32.totalorder %v2311_v43, %v2313_v7  ;;  %vm2323_vm15 = vcmp.lt.s32.totalorder %v2312_v33, %v2322_v36 }
0x1aa3   :  { %v2315_v32 = vsel %vm2314_vm14, %v2311_v43, %v2313_v7  ;;  %v2324_v44 = vsel %vm2323_vm15, %v2312_v33, %v2322_v36 }
0x1aa4   :  { %v2316_v46 = vrot.slane %v2315_v32, 2  ;;  %v2325_v47 = vrot.slane %v2324_v44, 2 }
0x1aa6   :  { %vm2317_vm1 = vcmp.lt.s32.totalorder %v2315_v32, %v2316_v46  ;;  %vm2326_vm2 = vcmp.lt.s32.totalorder %v2324_v44, %v2325_v47 }
0x1aa7   :  { %v2318_v4 = vsel %vm2317_vm1, %v2315_v32, %v2316_v46  ;;  %v2327_v40 = vsel %vm2326_vm2, %v2324_v44, %v2325_v47 }
0x1aa8   :  { %v2319_v18 = vrot.slane %v2318_v4, 1  ;;  %v2328_v60 = vrot.slane %v2327_v40, 1 }
0x1aaa   :  { %vm2320_vm3 = vcmp.lt.s32.totalorder %v2318_v4, %v2319_v18  ;;  %vm2329_vm0 = vcmp.lt.s32.totalorder %v2327_v40, %v2328_v60 }
0x1aab   :  { %v2321_v24 = vsel %vm2320_vm3, %v2318_v4, %v2319_v18  ;;  %v2330_v61 = vsel %vm2329_vm0, %v2327_v40, %v2328_v60 }
0x1aac   :  { %v2333_v15 = vcombine.low %v2321_v24, %v2330_v61 }
0x1aae   :  { %v2340_v17 = vrot.slane %v2333_v15, %v3258_v20 }
0x1ab0   :  { %v2347_v0 = vrot.slane %v2340_v17, %v3258_v20 }
0x1ab2   :  { %2348 = vst.msk [vmem:[#allocation6 + $0x2] sm:$0x3] %vm3262_vm11, %v2347_v0 }
0x1ab3   :  { %2718 = shalt.err (!%p2715_p0)
}
0x1ab4   :  { %2378 = dma.vmem_to_hbm [thread:$0]  %s2376_s14, 64, %s3294_s8, [#allocation5]  }
0x1ab5   :  { %2727 = dma.done.wait [#allocation3], 256  }
0x1ab6   :  { %2728 = vsyncadd [#allocation3], 4294967040 }
0x1ab7   :  { %2729 = dma.done.wait [#allocation5], 576  }
0x1ab8   :  { %2730 = vsyncadd [#allocation5], 4294966720 }
0x1ab9   :  { %2388 = vsyncpa [#allocation3], 1 }
0x1aba   :  { %2389 = vsyncpa [#allocation5], 1 }

</bundles_post_ra>
